<compile_context>
chip_gen: v5e
topology: v5e:2x2
jax: 0.10.0
libtpu: 0.0.40
codegen_flags: <defaults>
</compile_context>

<pallas_src>
import functools

import jax
import jax.numpy as jnp
from jax import lax
from jax.experimental import pallas as pl
from jax.experimental.pallas import tpu as pltpu


def _round_up(x, m):
    return ((x + m - 1) // m) * m


def _num_tensorcores():
    """2 on v7x (two TensorCores per chip), else 1 (v5e / v6e)."""
    try:
        kind = jax.devices()[0].device_kind.lower()
    except Exception:
        return 1
    return 2 if ("v7" in kind or "7x" in kind) else 1


def _lstm_chunk_kernel(gx_ref, whh_hbm, out_ref, cn_ref,
                       whh_vmem, dma_sem, h_sc, c_sc, *,
                       hidden_pad, t_chunk, seq_len, seq_len_pad, unroll):
    """One grid step = (batch tile b, time chunk c); runs t_chunk timesteps."""
    chunk = pl.program_id(1)

    @pl.when(chunk == 0)
    def _():
        # zero initial state (init_hidden) + one-time weight DMA: W_hh^T is
        # DMA'd once per batch tile and stays resident (no dead double buffer).
        h_sc[...] = jnp.zeros_like(h_sc)
        c_sc[...] = jnp.zeros_like(c_sc)
        cp = pltpu.make_async_copy(whh_hbm, whh_vmem, dma_sem)
        cp.start()
        cp.wait()

    H = hidden_pad
    whh = whh_vmem[...]                      # hoisted out of the step loop

    def step(i, carry):
        h, c = carry                          # f32 recurrent state
        # Serial-path work is only the recurrent matmul; x @ W_ih^T + bias is
        # already folded into gx_ref (bf16 stream, f32 accumulation here).
        gates = gx_ref[i] + jnp.dot(h.astype(whh.dtype), whh,
                                    preferred_element_type=jnp.float32)
        # gate-blocked, 128-lane-aligned slices (PyTorch gate order: i, f, g, o)
        i_g = jax.nn.sigmoid(gates[:, 0 * H:1 * H])
        f_g = jax.nn.sigmoid(gates[:, 1 * H:2 * H])
        g_g = jnp.tanh(gates[:, 2 * H:3 * H])
        o_g = jax.nn.sigmoid(gates[:, 3 * H:4 * H])
        c_new = f_g * c + i_g * g_g
        h_new = o_g * jnp.tanh(c_new)
        if seq_len_pad != seq_len:            # static: only if the time axis was padded
            valid = (chunk * t_chunk + i) < seq_len
            h_new = jnp.where(valid, h_new, h)
            c_new = jnp.where(valid, c_new, c)
        out_ref[i] = h_new.astype(out_ref.dtype)   # lane-dense (Btile, Hpad) store
        return h_new, c_new

    h, c = lax.fori_loop(0, t_chunk, step, (h_sc[...], c_sc[...]), unroll=unroll)
    h_sc[...] = h
    c_sc[...] = c

    @pl.when(chunk == pl.num_programs(1) - 1)
    def _():
        cn_ref[...] = c.astype(cn_ref.dtype)


def lstm_encoder_forward(x, w_ih, w_hh, b_ih, b_hh, *, t_chunk=32,
                         stream_dtype=jnp.bfloat16):
    """x: (seq_len, batch, input_size); weights in PyTorch nn.LSTM layout:
       w_ih: (4H, input_size), w_hh: (4H, H), b_ih/b_hh: (4H,).
       Returns (lstm_out, (h_n, c_n)) matching torch.nn.LSTM (zero init state)."""
    seq_len, batch, input_size = x.shape
    H = w_hh.shape[1]
    Hp = _round_up(H, 128)                    # lane-aligned per-gate width
    four_hp = 4 * Hp
    sdt = jnp.dtype(stream_dtype)
    sbytes = sdt.itemsize
    f32 = jnp.float32

    # ---- batch padding / tiling: split across batch only on 2-TC chips (v7x) ----
    sub = 16 if sbytes == 2 else 8            # bf16 packs 16 rows per sublane tile
    Bp = _round_up(batch, sub)
    if _num_tensorcores() >= 2 and Bp >= 2 * sub:
        b_tile = _round_up((Bp + 1) // 2, sub)     # one batch tile per TensorCore
        Bp = 2 * b_tile
        n_btiles = 2
    else:
        b_tile = Bp
        n_btiles = 1

    # ---- time chunking from an explicit VMEM budget; prefer tc | seq_len ----
    whh_bytes = Hp * four_hp * sbytes
    state_bytes = 2 * b_tile * Hp * 4
    budget = max((48 << 20) - whh_bytes - state_bytes, 2 << 20)

    def _pipelined_bytes(tc_):               # double-buffered gx + out blocks
        return 2 * (tc_ * b_tile * four_hp * sbytes + tc_ * b_tile * Hp * sbytes)

    tc = min(seq_len, t_chunk)
    while tc > 8 and _pipelined_bytes(tc) > budget:
        tc = max(8, tc // 2)
    for cand in range(tc, max(tc // 2, 1) - 1, -1):   # avoid tail masking if possible
        if seq_len % cand == 0:
            tc = cand
            break
    Tp = _round_up(seq_len, tc)
    n_chunks = Tp // tc

    vmem_need = (_pipelined_bytes(tc) + whh_bytes + state_bytes
                 + 2 * b_tile * Hp * sbytes)          # c_n output block
    vmem_limit = int(min(100 << 20, max(32 << 20, vmem_need + (4 << 20))))

    # unroll cap: keep the unrolled window's gates footprint within the 64-vreg file
    step_vregs = max(1, (b_tile * four_hp * 4) // 4096)
    unroll = min(tc, 8 if step_vregs <= 16 else (4 if step_vregs <= 64 else 2))

    # ---- gate-blocked, lane-padded weights: gate k occupies lanes [k*Hp,(k+1)*Hp) ----
    wih_t = jnp.transpose(w_ih.reshape(4, H, input_size), (2, 0, 1)).astype(f32)   # (I, 4, H)
    wih_t = jnp.pad(wih_t, ((0, 0), (0, 0), (0, Hp - H))).reshape(input_size, four_hp)
    whh_t = jnp.transpose(w_hh.reshape(4, H, H), (2, 0, 1)).astype(f32)            # (Hin, 4, Hout)
    whh_t = jnp.pad(whh_t, ((0, Hp - H), (0, 0), (0, Hp - H))).reshape(Hp, four_hp)
    whh_t = whh_t.astype(sdt)
    bias = jnp.pad((b_ih + b_hh).astype(f32).reshape(4, H),
                   ((0, 0), (0, Hp - H))).reshape(four_hp)

    # ---- hoisted input projection: one big matmul off the serial path
    #      (bf16 operands, f32 accumulation, bf16 stream to the kernel) ----
    x_p = jnp.pad(x.astype(f32), ((0, Tp - seq_len), (0, Bp - batch), (0, 0)))
    gx = jnp.dot(x_p.reshape(Tp * Bp, input_size).astype(sdt), wih_t.astype(sdt),
                 preferred_element_type=f32) + bias
    gates_x = gx.astype(sdt).reshape(Tp, Bp, four_hp)

    kernel = functools.partial(_lstm_chunk_kernel, hidden_pad=Hp, t_chunk=tc,
                               seq_len=seq_len, seq_len_pad=Tp, unroll=unroll)

    grid_spec = pltpu.PrefetchScalarGridSpec(
        num_scalar_prefetch=0,
        grid=(n_btiles, n_chunks),
        in_specs=[
            pl.BlockSpec((tc, b_tile, four_hp), lambda b, c: (c, b, 0)),  # gates_x chunk
            pl.BlockSpec(memory_space=pl.ANY),                            # W_hh^T (HBM; DMA'd once)
        ],
        out_specs=[
            pl.BlockSpec((tc, b_tile, Hp), lambda b, c: (c, b, 0)),       # lstm_out chunk
            pl.BlockSpec((b_tile, Hp), lambda b, c: (b, 0)),              # c_n (resident)
        ],
        scratch_shapes=[
            pltpu.VMEM((Hp, four_hp), sdt),          # resident W_hh^T
            pltpu.SemaphoreType.DMA,                 # one-time weight DMA
            pltpu.VMEM((b_tile, Hp), jnp.float32),   # h state (f32)
            pltpu.VMEM((b_tile, Hp), jnp.float32),   # c state (f32)
        ],
    )

    out_p, cn_p = pl.pallas_call(
        kernel,
        out_shape=(
            jax.ShapeDtypeStruct((Tp, Bp, Hp), sdt),
            jax.ShapeDtypeStruct((Bp, Hp), sdt),
        ),
        grid_spec=grid_spec,
        compiler_params=pltpu.CompilerParams(
            dimension_semantics=("parallel", "arbitrary"),   # time is a true recurrence
            vmem_limit_bytes=vmem_limit),
    )(gates_x, whh_t)

    lstm_out = out_p[:seq_len, :batch, :H].astype(x.dtype)
    h_n = lstm_out[seq_len - 1][None]          # (1, batch, H): last hidden state
    c_n = cn_p[:batch, :H].astype(x.dtype)[None]
    return lstm_out, (h_n, c_n)


def _lstm_reference(x, w_ih, w_hh, b_ih, b_hh):
    """Pure-JAX reference matching torch.nn.LSTM (1 layer, zero init state)."""
    H = w_hh.shape[1]

    def step(carry, x_t):
        h, c = carry
        gates = x_t @ w_ih.T + h @ w_hh.T + b_ih + b_hh
        i = jax.nn.sigmoid(gates[:, 0 * H:1 * H])
        f = jax.nn.sigmoid(gates[:, 1 * H:2 * H])
        g = jnp.tanh(gates[:, 2 * H:3 * H])
        o = jax.nn.sigmoid(gates[:, 3 * H:4 * H])
        c_new = f * c + i * g
        h_new = o * jnp.tanh(c_new)
        return (h_new, c_new), h_new

    batch = x.shape[1]
    h0 = jnp.zeros((batch, H), jnp.float32)
    c0 = jnp.zeros((batch, H), jnp.float32)
    (h_n, c_n), outs = jax.lax.scan(step, (h0, c0), x)
    return outs, (h_n[None], c_n[None])


if __name__ == "__main__":
    # small shapes consistent with the module's forward
    seq_len, batch = 8, 2
    input_size, hidden_size = 16, 32

    key = jax.random.PRNGKey(0)
    k1, k2, k3, k4, k5 = jax.random.split(key, 5)
    scale = 1.0 / jnp.sqrt(hidden_size)

    x = jax.random.normal(k1, (seq_len, batch, input_size), jnp.float32)
    w_ih = jax.random.uniform(k2, (4 * hidden_size, input_size),
                              jnp.float32, -scale, scale)
    w_hh = jax.random.uniform(k3, (4 * hidden_size, hidden_size),
                              jnp.float32, -scale, scale)
    b_ih = jax.random.uniform(k4, (4 * hidden_size,), jnp.float32, -scale, scale)
    b_hh = jax.random.uniform(k5, (4 * hidden_size,), jnp.float32, -scale, scale)

    lstm_out, (h_n, c_n) = lstm_encoder_forward(x, w_ih, w_hh, b_ih, b_hh)
    jax.block_until_ready((lstm_out, h_n, c_n))

    ref_out, (ref_h, ref_c) = _lstm_reference(x, w_ih, w_hh, b_ih, b_hh)
    assert lstm_out.shape == (seq_len, batch, hidden_size)
    assert h_n.shape == (1, batch, hidden_size) and c_n.shape == (1, batch, hidden_size)
    # bf16 streams (gates_x / outputs) => loosened tolerance vs the f32 reference.
    assert jnp.allclose(lstm_out, ref_out, atol=2e-2, rtol=2e-2)
    assert jnp.allclose(h_n, ref_h, atol=2e-2, rtol=2e-2)
    assert jnp.allclose(c_n, ref_c, atol=2e-2, rtol=2e-2)

    print("KERNEL_OK")
</pallas_src>

<mosaic_0001>
module attributes {stable_mosaic.version = 11 : i64} {
  func.func @_lstm_chunk_kernel(%arg0: i32, %arg1: i32, %arg2: memref<8x16x512xbf16, #tpu.memory_space<vmem>>, %arg3: memref<128x512xbf16, #tpu.memory_space<any>>, %arg4: memref<8x16x128xbf16, #tpu.memory_space<vmem>>, %arg5: memref<16x128xbf16, #tpu.memory_space<vmem>>, %arg6: memref<128x512xbf16, #tpu.memory_space<vmem>>, %arg7: memref<!tpu.dma_semaphore, #tpu.memory_space<semaphore_mem>>, %arg8: memref<16x128xf32, #tpu.memory_space<vmem>>, %arg9: memref<16x128xf32, #tpu.memory_space<vmem>>) attributes {dimension_semantics = [#tpu.dimension_semantics<parallel>, #tpu.dimension_semantics<arbitrary>], iteration_bounds = array<i64: 1, 1>, scalar_prefetch = 0 : i64, scratch_operands = 4 : i64, tpu.core_type = #tpu.core_type<tc>, window_params = [{transform_indices = @transform_0, window_bounds = array<i64: 8, 16, 512>}, {}, {transform_indices = @transform_2, window_bounds = array<i64: 8, 16, 128>}, {transform_indices = @transform_3, window_bounds = array<i64: 16, 128>}]} {
    %c0_i32 = arith.constant 0 : i32
    %0 = arith.cmpi eq, %arg1, %c0_i32 : i32
    %1 = arith.extui %0 : i1 to i32
    %c0_i32_0 = arith.constant 0 : i32
    %2 = arith.cmpi ne, %1, %c0_i32_0 : i32
    scf.if %2 {
      %cst_76 = arith.constant 0.000000e+00 : f32
      %307 = vector.broadcast %cst_76 : f32 to vector<16x128xf32>
      %c0_77 = arith.constant 0 : index
      %c0_78 = arith.constant 0 : index
      %308 = vector.load %arg8[%c0_77, %c0_78] : memref<16x128xf32, #tpu.memory_space<vmem>>, vector<16x128xf32>
      tpu.vector_store %arg8[%c0_77, %c0_78], %307 {strides = array<i32>} : memref<16x128xf32, #tpu.memory_space<vmem>>, vector<16x128xf32>,
      %cst_79 = arith.constant 0.000000e+00 : f32
      %309 = vector.broadcast %cst_79 : f32 to vector<16x128xf32>
      %c0_80 = arith.constant 0 : index
      %c0_81 = arith.constant 0 : index
      %310 = vector.load %arg9[%c0_80, %c0_81] : memref<16x128xf32, #tpu.memory_space<vmem>>, vector<16x128xf32>
      tpu.vector_store %arg9[%c0_80, %c0_81], %309 {strides = array<i32>} : memref<16x128xf32, #tpu.memory_space<vmem>>, vector<16x128xf32>,
      tpu.enqueue_dma source(%arg3 : memref<128x512xbf16, #tpu.memory_space<any>>) target(%arg6 : memref<128x512xbf16, #tpu.memory_space<vmem>>) target_semaphore(%arg7 : memref<!tpu.dma_semaphore, #tpu.memory_space<semaphore_mem>>)
      tpu.wait_dma2 semaphore(%arg7 : memref<!tpu.dma_semaphore, #tpu.memory_space<semaphore_mem>>) src(%arg3 : memref<128x512xbf16, #tpu.memory_space<any>>) dst(%arg6 : memref<128x512xbf16, #tpu.memory_space<vmem>>)
    } else {
    }
    %c0 = arith.constant 0 : index
    %c0_1 = arith.constant 0 : index
    %3 = vector.load %arg6[%c0, %c0_1] : memref<128x512xbf16, #tpu.memory_space<vmem>>, vector<128x512xbf16>
    %c0_2 = arith.constant 0 : index
    %c0_3 = arith.constant 0 : index
    %4 = vector.load %arg8[%c0_2, %c0_3] : memref<16x128xf32, #tpu.memory_space<vmem>>, vector<16x128xf32>
    %c0_4 = arith.constant 0 : index
    %c0_5 = arith.constant 0 : index
    %5 = vector.load %arg9[%c0_4, %c0_5] : memref<16x128xf32, #tpu.memory_space<vmem>>, vector<16x128xf32>
    %c0_i32_6 = arith.constant 0 : i32
    %6 = arith.index_cast %c0_i32_6 : i32 to index
    %c0_7 = arith.constant 0 : index
    %c0_8 = arith.constant 0 : index
    %7 = vector.load %arg2[%6, %c0_7, %c0_8] : memref<8x16x512xbf16, #tpu.memory_space<vmem>>, vector<1x16x512xbf16>
    %8 = vector.shape_cast %7 : vector<1x16x512xbf16> to vector<16x512xbf16>
    %9 = arith.truncf %4 : vector<16x128xf32> to vector<16x128xbf16>
    %cst = arith.constant dense<0.000000e+00> : vector<16x512xf32>
    %10 = tpu.matmul %9, %3, %cst {dimension_numbers = #tpu.dot_dimension_numbers<[1], [0], [0], [1], [0, 0, 1, 1], [], []>} : vector<16x128xbf16>, vector<128x512xbf16>, vector<16x512xf32> -> vector<16x512xf32>
    %11 = arith.extf %8 : vector<16x512xbf16> to vector<16x512xf32>
    %12 = arith.addf %11, %10 : vector<16x512xf32>
    %13 = vector.extract_strided_slice %12 {offsets = [0, 0], sizes = [16, 128], strides = [1, 1]} : vector<16x512xf32> to vector<16x128xf32>
    %14 = arith.negf %13 : vector<16x128xf32>
    %15 = math.exp %14 : vector<16x128xf32>
    %cst_9 = arith.constant 1.000000e+00 : f32
    %16 = vector.broadcast %cst_9 : f32 to vector<16x128xf32>
    %17 = arith.addf %16, %15 : vector<16x128xf32>
    %18 = arith.divf %16, %17 : vector<16x128xf32>
    %19 = vector.extract_strided_slice %12 {offsets = [0, 128], sizes = [16, 128], strides = [1, 1]} : vector<16x512xf32> to vector<16x128xf32>
    %20 = arith.negf %19 : vector<16x128xf32>
    %21 = math.exp %20 : vector<16x128xf32>
    %cst_10 = arith.constant 1.000000e+00 : f32
    %22 = vector.broadcast %cst_10 : f32 to vector<16x128xf32>
    %23 = arith.addf %22, %21 : vector<16x128xf32>
    %24 = arith.divf %22, %23 : vector<16x128xf32>
    %25 = vector.extract_strided_slice %12 {offsets = [0, 256], sizes = [16, 128], strides = [1, 1]} : vector<16x512xf32> to vector<16x128xf32>
    %26 = math.tanh %25 : vector<16x128xf32>
    %27 = vector.extract_strided_slice %12 {offsets = [0, 384], sizes = [16, 128], strides = [1, 1]} : vector<16x512xf32> to vector<16x128xf32>
    %28 = arith.negf %27 : vector<16x128xf32>
    %29 = math.exp %28 : vector<16x128xf32>
    %cst_11 = arith.constant 1.000000e+00 : f32
    %30 = vector.broadcast %cst_11 : f32 to vector<16x128xf32>
    %31 = arith.addf %30, %29 : vector<16x128xf32>
    %32 = arith.divf %30, %31 : vector<16x128xf32>
    %33 = arith.mulf %24, %5 : vector<16x128xf32>
    %34 = arith.mulf %18, %26 : vector<16x128xf32>
    %35 = arith.addf %33, %34 : vector<16x128xf32>
    %36 = math.tanh %35 : vector<16x128xf32>
    %37 = arith.mulf %32, %36 : vector<16x128xf32>
    %38 = arith.truncf %37 : vector<16x128xf32> to vector<16x128xbf16>
    %39 = arith.index_cast %c0_i32_6 : i32 to index
    %c0_12 = arith.constant 0 : index
    %c0_13 = arith.constant 0 : index
    %40 = vector.load %arg4[%39, %c0_12, %c0_13] : memref<8x16x128xbf16, #tpu.memory_space<vmem>>, vector<1x16x128xbf16>
    %41 = vector.shape_cast %40 : vector<1x16x128xbf16> to vector<16x128xbf16>
    %42 = vector.shape_cast %38 : vector<16x128xbf16> to vector<1x16x128xbf16>
    tpu.vector_store %arg4[%39, %c0_12, %c0_13], %42 {strides = array<i32>} : memref<8x16x128xbf16, #tpu.memory_space<vmem>>, vector<1x16x128xbf16>,
    %c1_i32 = arith.constant 1 : i32
    %43 = arith.index_cast %c1_i32 : i32 to index
    %c0_14 = arith.constant 0 : index
    %c0_15 = arith.constant 0 : index
    %44 = vector.load %arg2[%43, %c0_14, %c0_15] : memref<8x16x512xbf16, #tpu.memory_space<vmem>>, vector<1x16x512xbf16>
    %45 = vector.shape_cast %44 : vector<1x16x512xbf16> to vector<16x512xbf16>
    %46 = arith.truncf %37 : vector<16x128xf32> to vector<16x128xbf16>
    %cst_16 = arith.constant dense<0.000000e+00> : vector<16x512xf32>
    %47 = tpu.matmul %46, %3, %cst_16 {dimension_numbers = #tpu.dot_dimension_numbers<[1], [0], [0], [1], [0, 0, 1, 1], [], []>} : vector<16x128xbf16>, vector<128x512xbf16>, vector<16x512xf32> -> vector<16x512xf32>
    %48 = arith.extf %45 : vector<16x512xbf16> to vector<16x512xf32>
    %49 = arith.addf %48, %47 : vector<16x512xf32>
    %50 = vector.extract_strided_slice %49 {offsets = [0, 0], sizes = [16, 128], strides = [1, 1]} : vector<16x512xf32> to vector<16x128xf32>
    %51 = arith.negf %50 : vector<16x128xf32>
    %52 = math.exp %51 : vector<16x128xf32>
    %cst_17 = arith.constant 1.000000e+00 : f32
    %53 = vector.broadcast %cst_17 : f32 to vector<16x128xf32>
    %54 = arith.addf %53, %52 : vector<16x128xf32>
    %55 = arith.divf %53, %54 : vector<16x128xf32>
    %56 = vector.extract_strided_slice %49 {offsets = [0, 128], sizes = [16, 128], strides = [1, 1]} : vector<16x512xf32> to vector<16x128xf32>
    %57 = arith.negf %56 : vector<16x128xf32>
    %58 = math.exp %57 : vector<16x128xf32>
    %cst_18 = arith.constant 1.000000e+00 : f32
    %59 = vector.broadcast %cst_18 : f32 to vector<16x128xf32>
    %60 = arith.addf %59, %58 : vector<16x128xf32>
    %61 = arith.divf %59, %60 : vector<16x128xf32>
    %62 = vector.extract_strided_slice %49 {offsets = [0, 256], sizes = [16, 128], strides = [1, 1]} : vector<16x512xf32> to vector<16x128xf32>
    %63 = math.tanh %62 : vector<16x128xf32>
    %64 = vector.extract_strided_slice %49 {offsets = [0, 384], sizes = [16, 128], strides = [1, 1]} : vector<16x512xf32> to vector<16x128xf32>
    %65 = arith.negf %64 : vector<16x128xf32>
    %66 = math.exp %65 : vector<16x128xf32>
    %cst_19 = arith.constant 1.000000e+00 : f32
    %67 = vector.broadcast %cst_19 : f32 to vector<16x128xf32>
    %68 = arith.addf %67, %66 : vector<16x128xf32>
    %69 = arith.divf %67, %68 : vector<16x128xf32>
    %70 = arith.mulf %61, %35 : vector<16x128xf32>
    %71 = arith.mulf %55, %63 : vector<16x128xf32>
    %72 = arith.addf %70, %71 : vector<16x128xf32>
    %73 = math.tanh %72 : vector<16x128xf32>
    %74 = arith.mulf %69, %73 : vector<16x128xf32>
    %75 = arith.truncf %74 : vector<16x128xf32> to vector<16x128xbf16>
    %76 = arith.index_cast %c1_i32 : i32 to index
    %c0_20 = arith.constant 0 : index
    %c0_21 = arith.constant 0 : index
    %77 = vector.load %arg4[%76, %c0_20, %c0_21] : memref<8x16x128xbf16, #tpu.memory_space<vmem>>, vector<1x16x128xbf16>
    %78 = vector.shape_cast %77 : vector<1x16x128xbf16> to vector<16x128xbf16>
    %79 = vector.shape_cast %75 : vector<16x128xbf16> to vector<1x16x128xbf16>
    tpu.vector_store %arg4[%76, %c0_20, %c0_21], %79 {strides = array<i32>} : memref<8x16x128xbf16, #tpu.memory_space<vmem>>, vector<1x16x128xbf16>,
    %c2_i32 = arith.constant 2 : i32
    %80 = arith.index_cast %c2_i32 : i32 to index
    %c0_22 = arith.constant 0 : index
    %c0_23 = arith.constant 0 : index
    %81 = vector.load %arg2[%80, %c0_22, %c0_23] : memref<8x16x512xbf16, #tpu.memory_space<vmem>>, vector<1x16x512xbf16>
    %82 = vector.shape_cast %81 : vector<1x16x512xbf16> to vector<16x512xbf16>
    %83 = arith.truncf %74 : vector<16x128xf32> to vector<16x128xbf16>
    %cst_24 = arith.constant dense<0.000000e+00> : vector<16x512xf32>
    %84 = tpu.matmul %83, %3, %cst_24 {dimension_numbers = #tpu.dot_dimension_numbers<[1], [0], [0], [1], [0, 0, 1, 1], [], []>} : vector<16x128xbf16>, vector<128x512xbf16>, vector<16x512xf32> -> vector<16x512xf32>
    %85 = arith.extf %82 : vector<16x512xbf16> to vector<16x512xf32>
    %86 = arith.addf %85, %84 : vector<16x512xf32>
    %87 = vector.extract_strided_slice %86 {offsets = [0, 0], sizes = [16, 128], strides = [1, 1]} : vector<16x512xf32> to vector<16x128xf32>
    %88 = arith.negf %87 : vector<16x128xf32>
    %89 = math.exp %88 : vector<16x128xf32>
    %cst_25 = arith.constant 1.000000e+00 : f32
    %90 = vector.broadcast %cst_25 : f32 to vector<16x128xf32>
    %91 = arith.addf %90, %89 : vector<16x128xf32>
    %92 = arith.divf %90, %91 : vector<16x128xf32>
    %93 = vector.extract_strided_slice %86 {offsets = [0, 128], sizes = [16, 128], strides = [1, 1]} : vector<16x512xf32> to vector<16x128xf32>
    %94 = arith.negf %93 : vector<16x128xf32>
    %95 = math.exp %94 : vector<16x128xf32>
    %cst_26 = arith.constant 1.000000e+00 : f32
    %96 = vector.broadcast %cst_26 : f32 to vector<16x128xf32>
    %97 = arith.addf %96, %95 : vector<16x128xf32>
    %98 = arith.divf %96, %97 : vector<16x128xf32>
    %99 = vector.extract_strided_slice %86 {offsets = [0, 256], sizes = [16, 128], strides = [1, 1]} : vector<16x512xf32> to vector<16x128xf32>
    %100 = math.tanh %99 : vector<16x128xf32>
    %101 = vector.extract_strided_slice %86 {offsets = [0, 384], sizes = [16, 128], strides = [1, 1]} : vector<16x512xf32> to vector<16x128xf32>
    %102 = arith.negf %101 : vector<16x128xf32>
    %103 = math.exp %102 : vector<16x128xf32>
    %cst_27 = arith.constant 1.000000e+00 : f32
    %104 = vector.broadcast %cst_27 : f32 to vector<16x128xf32>
    %105 = arith.addf %104, %103 : vector<16x128xf32>
    %106 = arith.divf %104, %105 : vector<16x128xf32>
    %107 = arith.mulf %98, %72 : vector<16x128xf32>
    %108 = arith.mulf %92, %100 : vector<16x128xf32>
    %109 = arith.addf %107, %108 : vector<16x128xf32>
    %110 = math.tanh %109 : vector<16x128xf32>
    %111 = arith.mulf %106, %110 : vector<16x128xf32>
    %112 = arith.truncf %111 : vector<16x128xf32> to vector<16x128xbf16>
    %113 = arith.index_cast %c2_i32 : i32 to index
    %c0_28 = arith.constant 0 : index
    %c0_29 = arith.constant 0 : index
    %114 = vector.load %arg4[%113, %c0_28, %c0_29] : memref<8x16x128xbf16, #tpu.memory_space<vmem>>, vector<1x16x128xbf16>
    %115 = vector.shape_cast %114 : vector<1x16x128xbf16> to vector<16x128xbf16>
    %116 = vector.shape_cast %112 : vector<16x128xbf16> to vector<1x16x128xbf16>
    tpu.vector_store %arg4[%113, %c0_28, %c0_29], %116 {strides = array<i32>} : memref<8x16x128xbf16, #tpu.memory_space<vmem>>, vector<1x16x128xbf16>,
    %c3_i32 = arith.constant 3 : i32
    %117 = arith.index_cast %c3_i32 : i32 to index
    %c0_30 = arith.constant 0 : index
    %c0_31 = arith.constant 0 : index
    %118 = vector.load %arg2[%117, %c0_30, %c0_31] : memref<8x16x512xbf16, #tpu.memory_space<vmem>>, vector<1x16x512xbf16>
    %119 = vector.shape_cast %118 : vector<1x16x512xbf16> to vector<16x512xbf16>
    %120 = arith.truncf %111 : vector<16x128xf32> to vector<16x128xbf16>
    %cst_32 = arith.constant dense<0.000000e+00> : vector<16x512xf32>
    %121 = tpu.matmul %120, %3, %cst_32 {dimension_numbers = #tpu.dot_dimension_numbers<[1], [0], [0], [1], [0, 0, 1, 1], [], []>} : vector<16x128xbf16>, vector<128x512xbf16>, vector<16x512xf32> -> vector<16x512xf32>
    %122 = arith.extf %119 : vector<16x512xbf16> to vector<16x512xf32>
    %123 = arith.addf %122, %121 : vector<16x512xf32>
    %124 = vector.extract_strided_slice %123 {offsets = [0, 0], sizes = [16, 128], strides = [1, 1]} : vector<16x512xf32> to vector<16x128xf32>
    %125 = arith.negf %124 : vector<16x128xf32>
    %126 = math.exp %125 : vector<16x128xf32>
    %cst_33 = arith.constant 1.000000e+00 : f32
    %127 = vector.broadcast %cst_33 : f32 to vector<16x128xf32>
    %128 = arith.addf %127, %126 : vector<16x128xf32>
    %129 = arith.divf %127, %128 : vector<16x128xf32>
    %130 = vector.extract_strided_slice %123 {offsets = [0, 128], sizes = [16, 128], strides = [1, 1]} : vector<16x512xf32> to vector<16x128xf32>
    %131 = arith.negf %130 : vector<16x128xf32>
    %132 = math.exp %131 : vector<16x128xf32>
    %cst_34 = arith.constant 1.000000e+00 : f32
    %133 = vector.broadcast %cst_34 : f32 to vector<16x128xf32>
    %134 = arith.addf %133, %132 : vector<16x128xf32>
    %135 = arith.divf %133, %134 : vector<16x128xf32>
    %136 = vector.extract_strided_slice %123 {offsets = [0, 256], sizes = [16, 128], strides = [1, 1]} : vector<16x512xf32> to vector<16x128xf32>
    %137 = math.tanh %136 : vector<16x128xf32>
    %138 = vector.extract_strided_slice %123 {offsets = [0, 384], sizes = [16, 128], strides = [1, 1]} : vector<16x512xf32> to vector<16x128xf32>
    %139 = arith.negf %138 : vector<16x128xf32>
    %140 = math.exp %139 : vector<16x128xf32>
    %cst_35 = arith.constant 1.000000e+00 : f32
    %141 = vector.broadcast %cst_35 : f32 to vector<16x128xf32>
    %142 = arith.addf %141, %140 : vector<16x128xf32>
    %143 = arith.divf %141, %142 : vector<16x128xf32>
    %144 = arith.mulf %135, %109 : vector<16x128xf32>
    %145 = arith.mulf %129, %137 : vector<16x128xf32>
    %146 = arith.addf %144, %145 : vector<16x128xf32>
    %147 = math.tanh %146 : vector<16x128xf32>
    %148 = arith.mulf %143, %147 : vector<16x128xf32>
    %149 = arith.truncf %148 : vector<16x128xf32> to vector<16x128xbf16>
    %150 = arith.index_cast %c3_i32 : i32 to index
    %c0_36 = arith.constant 0 : index
    %c0_37 = arith.constant 0 : index
    %151 = vector.load %arg4[%150, %c0_36, %c0_37] : memref<8x16x128xbf16, #tpu.memory_space<vmem>>, vector<1x16x128xbf16>
    %152 = vector.shape_cast %151 : vector<1x16x128xbf16> to vector<16x128xbf16>
    %153 = vector.shape_cast %149 : vector<16x128xbf16> to vector<1x16x128xbf16>
    tpu.vector_store %arg4[%150, %c0_36, %c0_37], %153 {strides = array<i32>} : memref<8x16x128xbf16, #tpu.memory_space<vmem>>, vector<1x16x128xbf16>,
    %c4_i32 = arith.constant 4 : i32
    %154 = arith.index_cast %c4_i32 : i32 to index
    %c0_38 = arith.constant 0 : index
    %c0_39 = arith.constant 0 : index
    %155 = vector.load %arg2[%154, %c0_38, %c0_39] : memref<8x16x512xbf16, #tpu.memory_space<vmem>>, vector<1x16x512xbf16>
    %156 = vector.shape_cast %155 : vector<1x16x512xbf16> to vector<16x512xbf16>
    %157 = arith.truncf %148 : vector<16x128xf32> to vector<16x128xbf16>
    %cst_40 = arith.constant dense<0.000000e+00> : vector<16x512xf32>
    %158 = tpu.matmul %157, %3, %cst_40 {dimension_numbers = #tpu.dot_dimension_numbers<[1], [0], [0], [1], [0, 0, 1, 1], [], []>} : vector<16x128xbf16>, vector<128x512xbf16>, vector<16x512xf32> -> vector<16x512xf32>
    %159 = arith.extf %156 : vector<16x512xbf16> to vector<16x512xf32>
    %160 = arith.addf %159, %158 : vector<16x512xf32>
    %161 = vector.extract_strided_slice %160 {offsets = [0, 0], sizes = [16, 128], strides = [1, 1]} : vector<16x512xf32> to vector<16x128xf32>
    %162 = arith.negf %161 : vector<16x128xf32>
    %163 = math.exp %162 : vector<16x128xf32>
    %cst_41 = arith.constant 1.000000e+00 : f32
    %164 = vector.broadcast %cst_41 : f32 to vector<16x128xf32>
    %165 = arith.addf %164, %163 : vector<16x128xf32>
    %166 = arith.divf %164, %165 : vector<16x128xf32>
    %167 = vector.extract_strided_slice %160 {offsets = [0, 128], sizes = [16, 128], strides = [1, 1]} : vector<16x512xf32> to vector<16x128xf32>
    %168 = arith.negf %167 : vector<16x128xf32>
    %169 = math.exp %168 : vector<16x128xf32>
    %cst_42 = arith.constant 1.000000e+00 : f32
    %170 = vector.broadcast %cst_42 : f32 to vector<16x128xf32>
    %171 = arith.addf %170, %169 : vector<16x128xf32>
    %172 = arith.divf %170, %171 : vector<16x128xf32>
    %173 = vector.extract_strided_slice %160 {offsets = [0, 256], sizes = [16, 128], strides = [1, 1]} : vector<16x512xf32> to vector<16x128xf32>
    %174 = math.tanh %173 : vector<16x128xf32>
    %175 = vector.extract_strided_slice %160 {offsets = [0, 384], sizes = [16, 128], strides = [1, 1]} : vector<16x512xf32> to vector<16x128xf32>
    %176 = arith.negf %175 : vector<16x128xf32>
    %177 = math.exp %176 : vector<16x128xf32>
    %cst_43 = arith.constant 1.000000e+00 : f32
    %178 = vector.broadcast %cst_43 : f32 to vector<16x128xf32>
    %179 = arith.addf %178, %177 : vector<16x128xf32>
    %180 = arith.divf %178, %179 : vector<16x128xf32>
    %181 = arith.mulf %172, %146 : vector<16x128xf32>
    %182 = arith.mulf %166, %174 : vector<16x128xf32>
    %183 = arith.addf %181, %182 : vector<16x128xf32>
    %184 = math.tanh %183 : vector<16x128xf32>
    %185 = arith.mulf %180, %184 : vector<16x128xf32>
    %186 = arith.truncf %185 : vector<16x128xf32> to vector<16x128xbf16>
    %187 = arith.index_cast %c4_i32 : i32 to index
    %c0_44 = arith.constant 0 : index
    %c0_45 = arith.constant 0 : index
    %188 = vector.load %arg4[%187, %c0_44, %c0_45] : memref<8x16x128xbf16, #tpu.memory_space<vmem>>, vector<1x16x128xbf16>
    %189 = vector.shape_cast %188 : vector<1x16x128xbf16> to vector<16x128xbf16>
    %190 = vector.shape_cast %186 : vector<16x128xbf16> to vector<1x16x128xbf16>
    tpu.vector_store %arg4[%187, %c0_44, %c0_45], %190 {strides = array<i32>} : memref<8x16x128xbf16, #tpu.memory_space<vmem>>, vector<1x16x128xbf16>,
    %c5_i32 = arith.constant 5 : i32
    %191 = arith.index_cast %c5_i32 : i32 to index
    %c0_46 = arith.constant 0 : index
    %c0_47 = arith.constant 0 : index
    %192 = vector.load %arg2[%191, %c0_46, %c0_47] : memref<8x16x512xbf16, #tpu.memory_space<vmem>>, vector<1x16x512xbf16>
    %193 = vector.shape_cast %192 : vector<1x16x512xbf16> to vector<16x512xbf16>
    %194 = arith.truncf %185 : vector<16x128xf32> to vector<16x128xbf16>
    %cst_48 = arith.constant dense<0.000000e+00> : vector<16x512xf32>
    %195 = tpu.matmul %194, %3, %cst_48 {dimension_numbers = #tpu.dot_dimension_numbers<[1], [0], [0], [1], [0, 0, 1, 1], [], []>} : vector<16x128xbf16>, vector<128x512xbf16>, vector<16x512xf32> -> vector<16x512xf32>
    %196 = arith.extf %193 : vector<16x512xbf16> to vector<16x512xf32>
    %197 = arith.addf %196, %195 : vector<16x512xf32>
    %198 = vector.extract_strided_slice %197 {offsets = [0, 0], sizes = [16, 128], strides = [1, 1]} : vector<16x512xf32> to vector<16x128xf32>
    %199 = arith.negf %198 : vector<16x128xf32>
    %200 = math.exp %199 : vector<16x128xf32>
    %cst_49 = arith.constant 1.000000e+00 : f32
    %201 = vector.broadcast %cst_49 : f32 to vector<16x128xf32>
    %202 = arith.addf %201, %200 : vector<16x128xf32>
    %203 = arith.divf %201, %202 : vector<16x128xf32>
    %204 = vector.extract_strided_slice %197 {offsets = [0, 128], sizes = [16, 128], strides = [1, 1]} : vector<16x512xf32> to vector<16x128xf32>
    %205 = arith.negf %204 : vector<16x128xf32>
    %206 = math.exp %205 : vector<16x128xf32>
    %cst_50 = arith.constant 1.000000e+00 : f32
    %207 = vector.broadcast %cst_50 : f32 to vector<16x128xf32>
    %208 = arith.addf %207, %206 : vector<16x128xf32>
    %209 = arith.divf %207, %208 : vector<16x128xf32>
    %210 = vector.extract_strided_slice %197 {offsets = [0, 256], sizes = [16, 128], strides = [1, 1]} : vector<16x512xf32> to vector<16x128xf32>
    %211 = math.tanh %210 : vector<16x128xf32>
    %212 = vector.extract_strided_slice %197 {offsets = [0, 384], sizes = [16, 128], strides = [1, 1]} : vector<16x512xf32> to vector<16x128xf32>
    %213 = arith.negf %212 : vector<16x128xf32>
    %214 = math.exp %213 : vector<16x128xf32>
    %cst_51 = arith.constant 1.000000e+00 : f32
    %215 = vector.broadcast %cst_51 : f32 to vector<16x128xf32>
    %216 = arith.addf %215, %214 : vector<16x128xf32>
    %217 = arith.divf %215, %216 : vector<16x128xf32>
    %218 = arith.mulf %209, %183 : vector<16x128xf32>
    %219 = arith.mulf %203, %211 : vector<16x128xf32>
    %220 = arith.addf %218, %219 : vector<16x128xf32>
    %221 = math.tanh %220 : vector<16x128xf32>
    %222 = arith.mulf %217, %221 : vector<16x128xf32>
    %223 = arith.truncf %222 : vector<16x128xf32> to vector<16x128xbf16>
    %224 = arith.index_cast %c5_i32 : i32 to index
    %c0_52 = arith.constant 0 : index
    %c0_53 = arith.constant 0 : index
    %225 = vector.load %arg4[%224, %c0_52, %c0_53] : memref<8x16x128xbf16, #tpu.memory_space<vmem>>, vector<1x16x128xbf16>
    %226 = vector.shape_cast %225 : vector<1x16x128xbf16> to vector<16x128xbf16>
    %227 = vector.shape_cast %223 : vector<16x128xbf16> to vector<1x16x128xbf16>
    tpu.vector_store %arg4[%224, %c0_52, %c0_53], %227 {strides = array<i32>} : memref<8x16x128xbf16, #tpu.memory_space<vmem>>, vector<1x16x128xbf16>,
    %c6_i32 = arith.constant 6 : i32
    %228 = arith.index_cast %c6_i32 : i32 to index
    %c0_54 = arith.constant 0 : index
    %c0_55 = arith.constant 0 : index
    %229 = vector.load %arg2[%228, %c0_54, %c0_55] : memref<8x16x512xbf16, #tpu.memory_space<vmem>>, vector<1x16x512xbf16>
    %230 = vector.shape_cast %229 : vector<1x16x512xbf16> to vector<16x512xbf16>
    %231 = arith.truncf %222 : vector<16x128xf32> to vector<16x128xbf16>
    %cst_56 = arith.constant dense<0.000000e+00> : vector<16x512xf32>
    %232 = tpu.matmul %231, %3, %cst_56 {dimension_numbers = #tpu.dot_dimension_numbers<[1], [0], [0], [1], [0, 0, 1, 1], [], []>} : vector<16x128xbf16>, vector<128x512xbf16>, vector<16x512xf32> -> vector<16x512xf32>
    %233 = arith.extf %230 : vector<16x512xbf16> to vector<16x512xf32>
    %234 = arith.addf %233, %232 : vector<16x512xf32>
    %235 = vector.extract_strided_slice %234 {offsets = [0, 0], sizes = [16, 128], strides = [1, 1]} : vector<16x512xf32> to vector<16x128xf32>
    %236 = arith.negf %235 : vector<16x128xf32>
    %237 = math.exp %236 : vector<16x128xf32>
    %cst_57 = arith.constant 1.000000e+00 : f32
    %238 = vector.broadcast %cst_57 : f32 to vector<16x128xf32>
    %239 = arith.addf %238, %237 : vector<16x128xf32>
    %240 = arith.divf %238, %239 : vector<16x128xf32>
    %241 = vector.extract_strided_slice %234 {offsets = [0, 128], sizes = [16, 128], strides = [1, 1]} : vector<16x512xf32> to vector<16x128xf32>
    %242 = arith.negf %241 : vector<16x128xf32>
    %243 = math.exp %242 : vector<16x128xf32>
    %cst_58 = arith.constant 1.000000e+00 : f32
    %244 = vector.broadcast %cst_58 : f32 to vector<16x128xf32>
    %245 = arith.addf %244, %243 : vector<16x128xf32>
    %246 = arith.divf %244, %245 : vector<16x128xf32>
    %247 = vector.extract_strided_slice %234 {offsets = [0, 256], sizes = [16, 128], strides = [1, 1]} : vector<16x512xf32> to vector<16x128xf32>
    %248 = math.tanh %247 : vector<16x128xf32>
    %249 = vector.extract_strided_slice %234 {offsets = [0, 384], sizes = [16, 128], strides = [1, 1]} : vector<16x512xf32> to vector<16x128xf32>
    %250 = arith.negf %249 : vector<16x128xf32>
    %251 = math.exp %250 : vector<16x128xf32>
    %cst_59 = arith.constant 1.000000e+00 : f32
    %252 = vector.broadcast %cst_59 : f32 to vector<16x128xf32>
    %253 = arith.addf %252, %251 : vector<16x128xf32>
    %254 = arith.divf %252, %253 : vector<16x128xf32>
    %255 = arith.mulf %246, %220 : vector<16x128xf32>
    %256 = arith.mulf %240, %248 : vector<16x128xf32>
    %257 = arith.addf %255, %256 : vector<16x128xf32>
    %258 = math.tanh %257 : vector<16x128xf32>
    %259 = arith.mulf %254, %258 : vector<16x128xf32>
    %260 = arith.truncf %259 : vector<16x128xf32> to vector<16x128xbf16>
    %261 = arith.index_cast %c6_i32 : i32 to index
    %c0_60 = arith.constant 0 : index
    %c0_61 = arith.constant 0 : index
    %262 = vector.load %arg4[%261, %c0_60, %c0_61] : memref<8x16x128xbf16, #tpu.memory_space<vmem>>, vector<1x16x128xbf16>
    %263 = vector.shape_cast %262 : vector<1x16x128xbf16> to vector<16x128xbf16>
    %264 = vector.shape_cast %260 : vector<16x128xbf16> to vector<1x16x128xbf16>
    tpu.vector_store %arg4[%261, %c0_60, %c0_61], %264 {strides = array<i32>} : memref<8x16x128xbf16, #tpu.memory_space<vmem>>, vector<1x16x128xbf16>,
    %c7_i32 = arith.constant 7 : i32
    %265 = arith.index_cast %c7_i32 : i32 to index
    %c0_62 = arith.constant 0 : index
    %c0_63 = arith.constant 0 : index
    %266 = vector.load %arg2[%265, %c0_62, %c0_63] : memref<8x16x512xbf16, #tpu.memory_space<vmem>>, vector<1x16x512xbf16>
    %267 = vector.shape_cast %266 : vector<1x16x512xbf16> to vector<16x512xbf16>
    %268 = arith.truncf %259 : vector<16x128xf32> to vector<16x128xbf16>
    %cst_64 = arith.constant dense<0.000000e+00> : vector<16x512xf32>
    %269 = tpu.matmul %268, %3, %cst_64 {dimension_numbers = #tpu.dot_dimension_numbers<[1], [0], [0], [1], [0, 0, 1, 1], [], []>} : vector<16x128xbf16>, vector<128x512xbf16>, vector<16x512xf32> -> vector<16x512xf32>
    %270 = arith.extf %267 : vector<16x512xbf16> to vector<16x512xf32>
    %271 = arith.addf %270, %269 : vector<16x512xf32>
    %272 = vector.extract_strided_slice %271 {offsets = [0, 0], sizes = [16, 128], strides = [1, 1]} : vector<16x512xf32> to vector<16x128xf32>
    %273 = arith.negf %272 : vector<16x128xf32>
    %274 = math.exp %273 : vector<16x128xf32>
    %cst_65 = arith.constant 1.000000e+00 : f32
    %275 = vector.broadcast %cst_65 : f32 to vector<16x128xf32>
    %276 = arith.addf %275, %274 : vector<16x128xf32>
    %277 = arith.divf %275, %276 : vector<16x128xf32>
    %278 = vector.extract_strided_slice %271 {offsets = [0, 128], sizes = [16, 128], strides = [1, 1]} : vector<16x512xf32> to vector<16x128xf32>
    %279 = arith.negf %278 : vector<16x128xf32>
    %280 = math.exp %279 : vector<16x128xf32>
    %cst_66 = arith.constant 1.000000e+00 : f32
    %281 = vector.broadcast %cst_66 : f32 to vector<16x128xf32>
    %282 = arith.addf %281, %280 : vector<16x128xf32>
    %283 = arith.divf %281, %282 : vector<16x128xf32>
    %284 = vector.extract_strided_slice %271 {offsets = [0, 256], sizes = [16, 128], strides = [1, 1]} : vector<16x512xf32> to vector<16x128xf32>
    %285 = math.tanh %284 : vector<16x128xf32>
    %286 = vector.extract_strided_slice %271 {offsets = [0, 384], sizes = [16, 128], strides = [1, 1]} : vector<16x512xf32> to vector<16x128xf32>
    %287 = arith.negf %286 : vector<16x128xf32>
    %288 = math.exp %287 : vector<16x128xf32>
    %cst_67 = arith.constant 1.000000e+00 : f32
    %289 = vector.broadcast %cst_67 : f32 to vector<16x128xf32>
    %290 = arith.addf %289, %288 : vector<16x128xf32>
    %291 = arith.divf %289, %290 : vector<16x128xf32>
    %292 = arith.mulf %283, %257 : vector<16x128xf32>
    %293 = arith.mulf %277, %285 : vector<16x128xf32>
    %294 = arith.addf %292, %293 : vector<16x128xf32>
    %295 = math.tanh %294 : vector<16x128xf32>
    %296 = arith.mulf %291, %295 : vector<16x128xf32>
    %297 = arith.truncf %296 : vector<16x128xf32> to vector<16x128xbf16>
    %298 = arith.index_cast %c7_i32 : i32 to index
    %c0_68 = arith.constant 0 : index
    %c0_69 = arith.constant 0 : index
    %299 = vector.load %arg4[%298, %c0_68, %c0_69] : memref<8x16x128xbf16, #tpu.memory_space<vmem>>, vector<1x16x128xbf16>
    %300 = vector.shape_cast %299 : vector<1x16x128xbf16> to vector<16x128xbf16>
    %301 = vector.shape_cast %297 : vector<16x128xbf16> to vector<1x16x128xbf16>
    tpu.vector_store %arg4[%298, %c0_68, %c0_69], %301 {strides = array<i32>} : memref<8x16x128xbf16, #tpu.memory_space<vmem>>, vector<1x16x128xbf16>,
    %c8_i32 = arith.constant 8 : i32
    %c0_70 = arith.constant 0 : index
    %c0_71 = arith.constant 0 : index
    %302 = vector.load %arg8[%c0_70, %c0_71] : memref<16x128xf32, #tpu.memory_space<vmem>>, vector<16x128xf32>
    tpu.vector_store %arg8[%c0_70, %c0_71], %296 {strides = array<i32>} : memref<16x128xf32, #tpu.memory_space<vmem>>, vector<16x128xf32>,
    %c0_72 = arith.constant 0 : index
    %c0_73 = arith.constant 0 : index
    %303 = vector.load %arg9[%c0_72, %c0_73] : memref<16x128xf32, #tpu.memory_space<vmem>>, vector<16x128xf32>
    tpu.vector_store %arg9[%c0_72, %c0_73], %294 {strides = array<i32>} : memref<16x128xf32, #tpu.memory_space<vmem>>, vector<16x128xf32>,
    %c0_i32_74 = arith.constant 0 : i32
    %304 = arith.cmpi eq, %arg1, %c0_i32_74 : i32
    %305 = arith.extui %304 : i1 to i32
    %c0_i32_75 = arith.constant 0 : i32
    %306 = arith.cmpi ne, %305, %c0_i32_75 : i32
    scf.if %306 {
      %307 = arith.truncf %294 : vector<16x128xf32> to vector<16x128xbf16>
      %c0_76 = arith.constant 0 : index
      %c0_77 = arith.constant 0 : index
      %308 = vector.load %arg5[%c0_76, %c0_77] : memref<16x128xbf16, #tpu.memory_space<vmem>>, vector<16x128xbf16>
      tpu.vector_store %arg5[%c0_76, %c0_77], %307 {strides = array<i32>} : memref<16x128xbf16, #tpu.memory_space<vmem>>, vector<16x128xbf16>,
    } else {
    }
    return
  }
  func.func @transform_0(%arg0: i32, %arg1: i32) -> (i32, i32, i32) {
    %c0_i32 = arith.constant 0 : i32
    %c0_i32_0 = arith.constant 0 : i32
    return %arg1, %arg0, %c0_i32 : i32, i32, i32
  }
  func.func @transform_2(%arg0: i32, %arg1: i32) -> (i32, i32, i32) {
    %c0_i32 = arith.constant 0 : i32
    %c0_i32_0 = arith.constant 0 : i32
    return %arg1, %arg0, %c0_i32 : i32, i32, i32
  }
  func.func @transform_3(%arg0: i32, %arg1: i32) -> (i32, i32) {
    %c0_i32 = arith.constant 0 : i32
    %c0_i32_0 = arith.constant 0 : i32
    return %arg0, %c0_i32 : i32, i32
  }
}

</mosaic_0001>

<bundles_post_ra>
// kernel: tpu_custom_call.1
= control target key start
LH: loop header
LB: loop body
LE: loop exit
PB: predicated region body
PF: predicated region fallthrough
CT: control target
= control target key end

     0   :  { %9 = vsyncpa [#allocation7], 0  ;;  %s3310_s0 = inlined_call_operand.hbm [shape: bf16[8,16,512], index: 0, kind: input, shape index: {}]   ;;  %s3311_s1 = inlined_call_operand.hbm [shape: bf16[128,512], index: 1, kind: input, shape index: {}]   ;;  %s3312_s2 = inlined_call_operand.hbm [shape: bf16[8,16,128], index: 2, kind: output, shape index: {0}]   ;;  %s3313_s3 = inlined_call_operand.hbm [shape: bf16[16,128], index: 3, kind: output, shape index: {1}]  }
   0x1   :  { %10 = vsyncpa [#allocation8], 0 }
   0x2   :  { %11 = vsyncpa [#allocation11], 0  ;;  %s16_s14 = sshll.u32 %s3310_s0, 4  ;;  %s2632_s15 = smov [#allocation6]   ;;  %s17_s14 = int_to_ptr.hbm [resolvable:$true] %s16_s14 }
   0x3   :  { %s18_s16 = sshll.u32 %s2632_s15, 4  ;;  %s2633_s17 = smov 256   ;;  %s19_s16 = int_to_ptr.vmem [resolvable:$true] %s18_s16 }
   0x4   :  { %s2634_s18 = smov 16  }
   0x5   :  { %24 = dma.hbm_to_vmem [thread:$0]  %s17_s14, 4096, %s19_s16, [#allocation7], %s2633_s17, %s2633_s17, %s2634_s18  }
   0x6   :  { %2624 = dma.done.wait [#allocation7], 4096  }
   0x7   :  { %2625 = vsyncadd [#allocation7], 4294963200  ;;  %s44_s21 = sshll.u32 %s3311_s1, 4  ;;  %s2635_s22 = smov [#allocation2]   ;;  %s45_s21 = int_to_ptr.hbm [resolvable:$true] %s44_s21 }
   0x8   :  { %s46_s23 = sshll.u32 %s2635_s22, 4  ;;  %s47_s23 = int_to_ptr.vmem [resolvable:$true] %s46_s23 }
   0x9   :  { %49 = dma.hbm_to_vmem [thread:$0]  %s45_s21, 4096, %s47_s23, [#allocation3] }
   0xa   :  { %2626 = dma.done.wait [#allocation3], 4096 }
   0xb   :  { %2627 = vsyncadd [#allocation3], 4294963200  ;;  %v2123_v0 = vld [vmem:[#allocation2 + $0xe0] sm:$0xf]  ;;  %v2216_v1 = vld [vmem:[#allocation2 + $0xec] sm:$0xf0] }
   0xc   :  { %v2214_v2 = vld [vmem:[#allocation2 + $0xe4] sm:$0xf]  ;;  %v2667_v3 = vor.u32 %v2216_v1, %v2123_v0  ;;  %v2125_v4 = vld [vmem:[#allocation2 + $0xf0] sm:$0xf0]  ;;  %v2215_v5 = vld [vmem:[#allocation2 + $0xec] sm:$0xf] }
   0xd   :  { %v2133_v6 = vld [vmem:[#allocation2 + $0xf8] sm:$0xf0]  ;;  %v2669_v7 = vor.u32 %v2214_v2, %v2125_v4  ;;  %v2107_v9 = vld [vmem:[#allocation2 + $0xc0] sm:$0xf]  ;;  %v2212_v10 = vld [vmem:[#allocation2 + $0xcc] sm:$0xf0] }
   0xe   :  { %v2671_v8 = vor.u32 %v2215_v5, %v2133_v6  ;;  %v2210_v11 = vld [vmem:[#allocation2 + $0xc4] sm:$0xf]  ;;  %255 = vmatpush.bf16.msra.mxu0 %v2667_v3  ;;  %v2674_v12 = vor.u32 %v2212_v10, %v2107_v9  ;;  %v2109_v13 = vld [vmem:[#allocation2 + $0xd0] sm:$0xf0]  ;;  %v2211_v14 = vld [vmem:[#allocation2 + $0xcc] sm:$0xf] }
   0xf   :  { %v2117_v15 = vld [vmem:[#allocation2 + $0xd8] sm:$0xf0]  ;;  %269 = vmatpush.bf16.msra.mxu1 %v2669_v7  ;;  %v2678_v16 = vor.u32 %v2210_v11, %v2109_v13  ;;  %v2131_v18 = vld [vmem:[#allocation2 + $0xe8] sm:$0xf]  ;;  %v2217_v19 = vld [vmem:[#allocation2 + $0xf4] sm:$0xf0] }
  0x10   :  { %297 = vmatpush.bf16.msra.mxu3 %v2671_v8  ;;  %v2680_v17 = vor.u32 %v2211_v14, %v2117_v15  ;;  %v2091_v20 = vld [vmem:[#allocation2 + $0xa0] sm:$0xf]  ;;  %v2682_v21 = vor.u32 %v2217_v19, %v2131_v18  ;;  %v2208_v22 = vld [vmem:[#allocation2 + $0xac] sm:$0xf0]  ;;  %v2206_v23 = vld [vmem:[#allocation2 + $0xa4] sm:$0xf] }
  0x11   :  { %v2093_v24 = vld [vmem:[#allocation2 + $0xb0] sm:$0xf0]  ;;  %v2207_v25 = vld [vmem:[#allocation2 + $0xac] sm:$0xf]  ;;  %v2101_v26 = vld [vmem:[#allocation2 + $0xb8] sm:$0xf0]  ;;  %v2686_v28 = vor.u32 %v2208_v22, %v2091_v20 }
  0x12   :  { %v2115_v27 = vld [vmem:[#allocation2 + $0xc8] sm:$0xf]  ;;  %256 = vmatpush.bf16.msra.mxu0 %v2674_v12  ;;  %283 = vmatpush.bf16.msra.mxu2 %v2682_v21  ;;  %v2213_v29 = vld [vmem:[#allocation2 + $0xd4] sm:$0xf0]  ;;  %v2075_v30 = vld [vmem:[#allocation2 + $0x80] sm:$0xf]  ;;  %v2690_v32 = vor.u32 %v2206_v23, %v2093_v24  ;;  %v2692_v33 = vor.u32 %v2207_v25, %v2101_v26 }
  0x13   :  { %v2204_v31 = vld [vmem:[#allocation2 + $0x8c] sm:$0xf0]  ;;  %270 = vmatpush.bf16.msra.mxu1 %v2678_v16  ;;  %v2694_v34 = vor.u32 %v2213_v29, %v2115_v27  ;;  %v2202_v35 = vld [vmem:[#allocation2 + $0x84] sm:$0xf]  ;;  %v2077_v36 = vld [vmem:[#allocation2 + $0x90] sm:$0xf0] }
  0x14   :  { %298 = vmatpush.bf16.msra.mxu3 %v2680_v17  ;;  %v2203_v37 = vld [vmem:[#allocation2 + $0x8c] sm:$0xf]  ;;  %v2085_v38 = vld [vmem:[#allocation2 + $0x98] sm:$0xf0]  ;;  %v2099_v39 = vld [vmem:[#allocation2 + $0xa8] sm:$0xf]  ;;  %v2698_v41 = vor.u32 %v2204_v31, %v2075_v30  ;;  %v2704_v45 = vor.u32 %v2202_v35, %v2077_v36 }
  0x15   :  { %v2209_v40 = vld [vmem:[#allocation2 + $0xb4] sm:$0xf0]  ;;  %v2059_v43 = vld [vmem:[#allocation2 + $0x60] sm:$0xf]  ;;  %v2200_v44 = vld [vmem:[#allocation2 + $0x6c] sm:$0xf0]  ;;  %v2706_v46 = vor.u32 %v2203_v37, %v2085_v38 }
  0x16   :  { %257 = vmatpush.bf16.msra.mxu0 %v2686_v28  ;;  %284 = vmatpush.bf16.msra.mxu2 %v2694_v34  ;;  %v2700_v42 = vor.u32 %v2209_v40, %v2099_v39  ;;  %v2198_v47 = vld [vmem:[#allocation2 + $0x64] sm:$0xf]  ;;  %v2083_v48 = vld [vmem:[#allocation2 + $0x88] sm:$0xf]  ;;  %v2205_v49 = vld [vmem:[#allocation2 + $0x94] sm:$0xf0]  ;;  %v2710_v53 = vor.u32 %v2200_v44, %v2059_v43 }
  0x17   :  { %271 = vmatpush.bf16.msra.mxu1 %v2690_v32  ;;  %v2061_v50 = vld [vmem:[#allocation2 + $0x70] sm:$0xf0]  ;;  %v2199_v51 = vld [vmem:[#allocation2 + $0x6c] sm:$0xf]  ;;  %v2069_v52 = vld [vmem:[#allocation2 + $0x78] sm:$0xf0]  ;;  %v2712_v54 = vor.u32 %v2205_v49, %v2083_v48 }
  0x18   :  { %299 = vmatpush.bf16.msra.mxu3 %v2692_v33  ;;  %v2043_v55 = vld [vmem:[#allocation2 + $0x40] sm:$0xf]  ;;  %v2196_v56 = vld [vmem:[#allocation2 + $0x4c] sm:$0xf0]  ;;  %v2716_v57 = vor.u32 %v2198_v47, %v2061_v50  ;;  %v2718_v58 = vor.u32 %v2199_v51, %v2069_v52  ;;  %v2194_v59 = vld [vmem:[#allocation2 + $0x44] sm:$0xf] }
  0x19   :  { %v2067_v60 = vld [vmem:[#allocation2 + $0x68] sm:$0xf]  ;;  %v2201_v61 = vld [vmem:[#allocation2 + $0x74] sm:$0xf0]  ;;  %v2045_v62 = vld [vmem:[#allocation2 + $0x50] sm:$0xf0]  ;;  %v2722_v1 = vor.u32 %v2196_v56, %v2043_v55 }
  0x1a   :  { %258 = vmatpush.bf16.msra.mxu0 %v2698_v41  ;;  %285 = vmatpush.bf16.msra.mxu2 %v2700_v42  ;;  %v2195_v63 = vld [vmem:[#allocation2 + $0x4c] sm:$0xf]  ;;  %v2053_v0 = vld [vmem:[#allocation2 + $0x58] sm:$0xf0]  ;;  %v2724_v2 = vor.u32 %v2201_v61, %v2067_v60  ;;  %v2027_v4 = vld [vmem:[#allocation2 + $0x20] sm:$0xf]  ;;  %v2728_v6 = vor.u32 %v2194_v59, %v2045_v62 }
  0x1b   :  { %272 = vmatpush.bf16.msra.mxu1 %v2704_v45  ;;  %v2192_v5 = vld [vmem:[#allocation2 + $0x2c] sm:$0xf0]  ;;  %v2730_v9 = vor.u32 %v2195_v63, %v2053_v0  ;;  %v2190_v10 = vld [vmem:[#allocation2 + $0x24] sm:$0xf]  ;;  %v2051_v11 = vld [vmem:[#allocation2 + $0x48] sm:$0xf] }
  0x1c   :  { %300 = vmatpush.bf16.msra.mxu3 %v2706_v46  ;;  %v2197_v13 = vld [vmem:[#allocation2 + $0x54] sm:$0xf0]  ;;  %v2029_v14 = vld [vmem:[#allocation2 + $0x30] sm:$0xf0]  ;;  %v2191_v15 = vld [vmem:[#allocation2 + $0x2c] sm:$0xf]  ;;  %v2734_v19 = vor.u32 %v2192_v5, %v2027_v4 }
  0x1d   :  { %v2037_v18 = vld [vmem:[#allocation2 + $0x38] sm:$0xf0]  ;;  %v2736_v20 = vor.u32 %v2197_v13, %v2051_v11  ;;  %v2011_v22 = vld [vmem:[#allocation2] sm:$0xf]  ;;  %v2188_v23 = vld [vmem:[#allocation2 + $0xc] sm:$0xf0]  ;;  %v2740_v24 = vor.u32 %v2190_v10, %v2029_v14 }
  0x1e   :  { %259 = vmatpush.bf16.msra.mxu0 %v2710_v53  ;;  %286 = vmatpush.bf16.msra.mxu2 %v2712_v54  ;;  %v2742_v25 = vor.u32 %v2191_v15, %v2037_v18  ;;  %v2186_v26 = vld [vmem:[#allocation2 + $0x4] sm:$0xf]  ;;  %v2035_v27 = vld [vmem:[#allocation2 + $0x28] sm:$0xf]  ;;  %v2193_v29 = vld [vmem:[#allocation2 + $0x34] sm:$0xf0]  ;;  %v2746_v36 = vor.u32 %v2188_v23, %v2011_v22 }
  0x1f   :  { %273 = vmatpush.bf16.msra.mxu1 %v2716_v57  ;;  %v2013_v30 = vld [vmem:[#allocation2 + $0x10] sm:$0xf0]  ;;  %v2187_v31 = vld [vmem:[#allocation2 + $0xc] sm:$0xf]  ;;  %v2021_v35 = vld [vmem:[#allocation2 + $0x18] sm:$0xf0]  ;;  %v2748_v37 = vor.u32 %v2193_v29, %v2035_v27 }
  0x20   :  { %301 = vmatpush.bf16.msra.mxu3 %v2718_v58  ;;  %v2752_v38 = vor.u32 %v2186_v26, %v2013_v30  ;;  %v2754_v39 = vor.u32 %v2187_v31, %v2021_v35  ;;  %v2019_v40 = vld [vmem:[#allocation2 + $0x8] sm:$0xf]  ;;  %v2189_v43 = vld [vmem:[#allocation2 + $0x14] sm:$0xf0]  ;;  %v2636_v47 = vmov 0.0|0.0   ;;  %v90_v48 = vld [vmem:[#allocation6] sm:$0xff] }
  0x21   :  { %v2760_v44 = vor.u32 %v2189_v43, %v2019_v40  ;;  %v311_v49 = vunpack.c.l.bf16 %v90_v48  ;;  %v312_v50 = vunpack.c.h.bf16 %v90_v48  ;;  %v91_v56 = vld [vmem:[#allocation6 + $0x8] sm:$0xff]  ;;  %v92_v60 = vld [vmem:[#allocation6 + $0x10] sm:$0xff]  ;;  %v93_v15 = vld [vmem:[#allocation6 + $0x18] sm:$0xff]  ;;  %s2637_s0 = smov [#allocation10]   ;;  %s1985_s26 = sshll.u32 %s3313_s3, 4  ;;  %s1986_s26 = int_to_ptr.hbm [resolvable:$true] %s1985_s26 }
  0x22   :  { %260 = vmatpush.bf16.msra.mxu0 %v2722_v1  ;;  %287 = vmatpush.bf16.msra.mxu2 %v2724_v2  ;;  %v314_v63 = vunpack.c.h.bf16 %v91_v56  ;;  %v315_v0 = vunpack.c.l.bf16 %v92_v60  ;;  %v316_v4 = vunpack.c.h.bf16 %v92_v60  ;;  %v318_v31 = vunpack.c.h.bf16 %v93_v15  ;;  %s1983_s1 = sshll.u32 %s2637_s0, 4  ;;  %s2638_s3 = smov 64   ;;  %s1984_s1 = int_to_ptr.vmem [resolvable:$true] %s1983_s1 }
  0x23   :  { %274 = vmatpush.bf16.msra.mxu1 %v2728_v6  ;;  %v313_v43 = vunpack.c.l.bf16 %v91_v56  ;;  %s2639_s27 = smov 4   ;;  %s2640_s28 = smov [#allocation9]  }
  0x24   :  { %302 = vmatpush.bf16.msra.mxu3 %v2730_v9  ;;  %s1970_s29 = sshll.u32 %s2640_s28, 4  ;;  %s1972_s5 = sshll.u32 %s3312_s2, 4  ;;  %s1971_s29 = int_to_ptr.vmem [resolvable:$true] %s1970_s29  ;;  %s1973_s5 = int_to_ptr.hbm [resolvable:$true] %s1972_s5 }
  0x26   :  { %261 = vmatpush.bf16.msra.mxu0 %v2734_v19  ;;  %288 = vmatpush.bf16.msra.mxu2 %v2736_v20 }
  0x27   :  { %275 = vmatpush.bf16.msra.mxu1 %v2740_v24 }
  0x28   :  { %303 = vmatpush.bf16.msra.mxu3 %v2742_v25 }
  0x2a   :  { %262 = vmatpush.bf16.msra.mxu0 %v2746_v36  ;;  %289 = vmatpush.bf16.msra.mxu2 %v2748_v37 }
  0x2b   :  { %276 = vmatpush.bf16.msra.mxu1 %v2752_v38 }
  0x2c   :  { %304 = vmatpush.bf16.msra.mxu3 %v2754_v39 }
  0x2d   :  { %263 = vmatmul.bf16.vlgmr.msra.gmra.mxu0 %v2636_v47 }
  0x2e   :  { %468 = vmatpush.bf16.msrb.mxu0 %v2667_v3  ;;  %277 = vmatmul.bf16.vlgmr.msra.gmra.mxu1 %v2636_v47 }
  0x2f   :  { %482 = vmatpush.bf16.msrb.mxu1 %v2669_v7  ;;  %305 = vmatmul.bf16.vlgmr.msra.gmra.mxu3 %v2636_v47 }
  0x30   :  { %510 = vmatpush.bf16.msrb.mxu3 %v2671_v8  ;;  %290 = vmatpush.bf16.msra.mxu2 %v2760_v44 }
  0x32   :  { %469 = vmatpush.bf16.msrb.mxu0 %v2674_v12 }
  0x33   :  { %483 = vmatpush.bf16.msrb.mxu1 %v2678_v16  ;;  %291 = vmatmul.bf16.vlgmr.msra.gmra.mxu2 %v2636_v47 }
  0x34   :  { %496 = vmatpush.bf16.msrb.mxu2 %v2682_v21  ;;  %511 = vmatpush.bf16.msrb.mxu3 %v2680_v17 }
  0x36   :  { %470 = vmatpush.bf16.msrb.mxu0 %v2686_v28 }
  0x37   :  { %484 = vmatpush.bf16.msrb.mxu1 %v2690_v32 }
  0x38   :  { %497 = vmatpush.bf16.msrb.mxu2 %v2694_v34  ;;  %512 = vmatpush.bf16.msrb.mxu3 %v2692_v33 }
  0x3a   :  { %471 = vmatpush.bf16.msrb.mxu0 %v2698_v41 }
  0x3b   :  { %485 = vmatpush.bf16.msrb.mxu1 %v2704_v45 }
  0x3c   :  { %498 = vmatpush.bf16.msrb.mxu2 %v2700_v42  ;;  %513 = vmatpush.bf16.msrb.mxu3 %v2706_v46 }
  0x3e   :  { %472 = vmatpush.bf16.msrb.mxu0 %v2710_v53 }
  0x3f   :  { %486 = vmatpush.bf16.msrb.mxu1 %v2716_v57 }
  0x40   :  { %499 = vmatpush.bf16.msrb.mxu2 %v2712_v54  ;;  %514 = vmatpush.bf16.msrb.mxu3 %v2718_v58 }
  0x42   :  { %473 = vmatpush.bf16.msrb.mxu0 %v2722_v1 }
  0x43   :  { %487 = vmatpush.bf16.msrb.mxu1 %v2728_v6 }
  0x44   :  { %500 = vmatpush.bf16.msrb.mxu2 %v2724_v2  ;;  %515 = vmatpush.bf16.msrb.mxu3 %v2730_v9 }
  0x46   :  { %474 = vmatpush.bf16.msrb.mxu0 %v2734_v19 }
  0x47   :  { %488 = vmatpush.bf16.msrb.mxu1 %v2740_v24 }
  0x48   :  { %501 = vmatpush.bf16.msrb.mxu2 %v2736_v20  ;;  %516 = vmatpush.bf16.msrb.mxu3 %v2742_v25 }
  0x4a   :  { %475 = vmatpush.bf16.msrb.mxu0 %v2746_v36 }
  0x4b   :  { %489 = vmatpush.bf16.msrb.mxu1 %v2752_v38 }
  0x4c   :  { %502 = vmatpush.bf16.msrb.mxu2 %v2748_v37  ;;  %517 = vmatpush.bf16.msrb.mxu3 %v2754_v39 }
  0x4e   :  { %682 = vmatpush.bf16.msra.mxu0 %v2667_v3 }
  0x4f   :  { %696 = vmatpush.bf16.msra.mxu1 %v2669_v7 }
  0x50   :  { %724 = vmatpush.bf16.msra.mxu3 %v2671_v8  ;;  %503 = vmatpush.bf16.msrb.mxu2 %v2760_v44 }
  0x52   :  { %683 = vmatpush.bf16.msra.mxu0 %v2674_v12 }
  0x53   :  { %697 = vmatpush.bf16.msra.mxu1 %v2678_v16 }
  0x54   :  { %710 = vmatpush.bf16.msra.mxu2 %v2682_v21  ;;  %725 = vmatpush.bf16.msra.mxu3 %v2680_v17 }
  0x56   :  { %684 = vmatpush.bf16.msra.mxu0 %v2686_v28 }
  0x57   :  { %698 = vmatpush.bf16.msra.mxu1 %v2690_v32 }
  0x58   :  { %711 = vmatpush.bf16.msra.mxu2 %v2694_v34  ;;  %726 = vmatpush.bf16.msra.mxu3 %v2692_v33 }
  0x5a   :  { %685 = vmatpush.bf16.msra.mxu0 %v2698_v41 }
  0x5b   :  { %699 = vmatpush.bf16.msra.mxu1 %v2704_v45 }
  0x5c   :  { %712 = vmatpush.bf16.msra.mxu2 %v2700_v42  ;;  %727 = vmatpush.bf16.msra.mxu3 %v2706_v46 }
  0x5e   :  { %686 = vmatpush.bf16.msra.mxu0 %v2710_v53 }
  0x5f   :  { %700 = vmatpush.bf16.msra.mxu1 %v2716_v57 }
  0x60   :  { %713 = vmatpush.bf16.msra.mxu2 %v2712_v54  ;;  %728 = vmatpush.bf16.msra.mxu3 %v2718_v58 }
  0x62   :  { %687 = vmatpush.bf16.msra.mxu0 %v2722_v1 }
  0x63   :  { %701 = vmatpush.bf16.msra.mxu1 %v2728_v6 }
  0x64   :  { %714 = vmatpush.bf16.msra.mxu2 %v2724_v2  ;;  %729 = vmatpush.bf16.msra.mxu3 %v2730_v9 }
  0x66   :  { %688 = vmatpush.bf16.msra.mxu0 %v2734_v19 }
  0x67   :  { %702 = vmatpush.bf16.msra.mxu1 %v2740_v24 }
  0x68   :  { %715 = vmatpush.bf16.msra.mxu2 %v2736_v20  ;;  %730 = vmatpush.bf16.msra.mxu3 %v2742_v25 }
  0x6a   :  { %689 = vmatpush.bf16.msra.mxu0 %v2746_v36 }
  0x6b   :  { %703 = vmatpush.bf16.msra.mxu1 %v2752_v38 }
  0x6c   :  { %716 = vmatpush.bf16.msra.mxu2 %v2748_v37  ;;  %731 = vmatpush.bf16.msra.mxu3 %v2754_v39 }
  0x70   :  { %717 = vmatpush.bf16.msra.mxu2 %v2760_v44 }
  0xaa   :  { %v264_v51 = vpop.f32.mrf.mxu0 }
  0xab   :  { %v319_v52 = vadd.f32 %v311_v49, %v264_v51  ;;  %v278_v55 = vpop.f32.mrf.mxu1 }
  0xac   :  { %v320_v59 = vadd.f32 %v312_v50, %v278_v55 }
  0xad   :  { %v2137_v61 = vmul.f32 -1.442695, %v319_v52 }
  0xae   :  { %v2139_v62 = vmul.f32 -1.442695, %v320_v59 }
  0xaf   :  { %2272 = vpow2.f32 %v2137_v61 }
  0xb0   :  { %2274 = vpow2.f32 %v2139_v62 }
  0xb2   :  { %v306_v5 = vpop.f32.mrf.mxu3  ;;  %v266_v11 = vpop.f32.mrf.mxu0 }
  0xb3   :  { %v322_v10 = vadd.f32 %v314_v63, %v306_v5  ;;  %v323_v13 = vadd.f32 %v315_v0, %v266_v11  ;;  %v280_v14 = vpop.f32.mrf.mxu1 }
  0xb4   :  { %v324_v22 = vadd.f32 %v316_v4, %v280_v14  ;;  %v317_v14 = vunpack.c.l.bf16 %v93_v15 }
  0xb5   :  { %v2141_v18 = vmul.f32 -1.442695, %v322_v10  ;;  %v2273_v23 = vpop.eup %2272  ;;  %v2138_v26 = vmul.f32 -1.442695, %v323_v13 }
  0xb6   :  { %v2275_v27 = vpop.eup %2274  ;;  %v333_v29 = vadd.f32 1.0, %v2273_v23  ;;  %v2140_v30 = vmul.f32 -1.442695, %v324_v22  ;;  %v292_v40 = vpop.f32.mrf.mxu2 }
  0xb7   :  { %2276 = vpow2.f32 %v2141_v18  ;;  %v371_v35 = vadd.f32 1.0, %v2275_v27  ;;  %v321_v55 = vadd.f32 %v313_v43, %v292_v40 }
  0xb8   :  { %2278 = vpow2.f32 %v2138_v26  ;;  %v344_v5 = vand.u32 2147483647, %v333_v29  ;;  %v346_v13 = vand.u32 2147483648, %v333_v29  ;;  %vm340_vm1 = vweird.f32 %v333_v29 }
  0xb9   :  { %2280 = vrcp.f32 %v333_v29  ;;  %v384_v11 = vand.u32 2147483648, %v371_v35  ;;  %v382_v27 = vand.u32 2147483647, %v371_v35  ;;  %vm378_vm3 = vweird.f32 %v371_v35 }
  0xba   :  { %2282 = vrcp.f32 %v371_v35  ;;  %v308_v47 = vpop.f32.mrf.mxu3  ;;  %vm345_vm4 = vcmp.eq.f32.partialorder %v344_v5, 8.507059e+37  ;;  %v347_v15 = vor.u32 1.1754944e-38, %v346_v13 }
  0xbb   :  { %2284 = vpow2.f32 %v2140_v30  ;;  %v326_v48 = vadd.f32 %v318_v31, %v308_v47  ;;  %v385_v47 = vor.u32 1.1754944e-38, %v384_v11  ;;  %vm383_vm7 = vcmp.eq.f32.partialorder %v382_v27, 8.507059e+37 }
  0xbd   :  { %v2277_v49 = vpop.eup %2276  ;;  %v2142_v50 = vmul.f32 -1.442695, %v326_v48 }
  0xbe   :  { %v2279_v51 = vpop.eup %2278  ;;  %v2827_v52 = vadd.f32 1.0, %v2277_v49  ;;  %v294_v22 = vpop.f32.mrf.mxu2 }
  0xbf   :  { %v2281_v59 = vpop.eup %2280  ;;  %v2829_v60 = vadd.f32 1.0, %v2279_v51  ;;  %2286 = vpow2.f32 %v2142_v50  ;;  %v325_v49 = vadd.f32 %v317_v14, %v294_v22 }
  0xc0   :  { %v2283_v61 = vpop.eup %2282  ;;  %v336_v62 = vmul.f32 %v2281_v59, %v333_v29  ;;  %2288 = vrcp.f32 %v2827_v52  ;;  %vm341_vm0 = vweird.f32 %v2281_v59 }
  0xc1   :  { %v2285_v63 = vpop.eup %2284  ;;  %v374_v0 = vmul.f32 %v2283_v61, %v371_v35  ;;  %2290 = vrcp.f32 %v2829_v60  ;;  %vm379_vm2 = vweird.f32 %v2283_v61  ;;  %vm342_vm5 = vmor %vm340_vm1, %vm341_vm0  ;;  %v361_v5 = vand.u32 2147483648, %v2829_v60 }
  0xc2   :  { %v337_v56 = vsub.f32 1.0, %v336_v62  ;;  %v2833_v4 = vadd.f32 1.0, %v2285_v63  ;;  %2292 = vtanh.f32 %v321_v55  ;;  %vm380_vm6 = vmor %vm378_vm3, %vm379_vm2  ;;  %v359_v14 = vand.u32 2147483647, %v2829_v60 }
  0xc3   :  { %v375_v10 = vsub.f32 1.0, %v374_v0  ;;  %vm355_vm9 = vweird.f32 %v2829_v60  ;;  %v362_v27 = vor.u32 1.1754944e-38, %v361_v5  ;;  %vm418_vm1 = vweird.f32 %v2827_v52 }
  0xc4   :  { %2294 = vrcp.f32 %v2833_v4  ;;  %v338_v18 = vmul.f32 %v2281_v59, %v337_v56  ;;  %vm360_vm12 = vcmp.eq.f32.partialorder %v359_v14, 8.507059e+37  ;;  %vm393_vm13 = vweird.f32 %v2833_v4 }
  0xc5   :  { %v2287_v23 = vpop.eup %2286  ;;  %v376_v26 = vmul.f32 %v2283_v61, %v375_v10 }
  0xc6   :  { %v2836_v30 = vpop.eup %2288  ;;  %v339_v31 = vadd.f32 %v2281_v59, %v338_v18  ;;  %v2838_v40 = vadd.f32 1.0, %v2287_v23  ;;  %v399_v23 = vand.u32 2147483648, %v2833_v4 }
  0xc7   :  { %v2291_v43 = vpop.eup %2290  ;;  %v377_v48 = vadd.f32 %v2283_v61, %v376_v26  ;;  %v414_v51 = vmul.f32 %v2836_v30, %v2827_v52  ;;  %vm419_vm0 = vweird.f32 %v2836_v30 }
  0xc8   :  { %v2293_v50 = vpop.eup %2292  ;;  %v351_v29 = vmul.f32 %v2291_v43, %v2829_v60  ;;  %v343_v55 = vsel %vm342_vm5, %v2281_v59, %v339_v31  ;;  %2296 = vrcp.f32 %v2838_v40  ;;  %vm356_vm8 = vweird.f32 %v2291_v43  ;;  %vm420_vm2 = vmor %vm418_vm1, %vm419_vm0 }
  0xc9   :  { %v348_v35 = vsel %vm345_vm4, %v347_v15, %v343_v55  ;;  %v381_v62 = vsel %vm380_vm6, %v2283_v61, %v377_v48  ;;  %v415_v18 = vsub.f32 1.0, %v414_v51  ;;  %2298 = vtanh.f32 %v325_v49  ;;  %vm357_vm10 = vmor %vm355_vm9, %vm356_vm8 }
  0xca   :  { %v2295_v63 = vpop.eup %2294  ;;  %v352_v0 = vsub.f32 1.0, %v351_v29  ;;  %v386_v56 = vsel %vm383_vm7, %v385_v47, %v381_v62  ;;  %v445_v13 = vmul.f32 %v2293_v50, %v348_v35  ;;  %v397_v31 = vand.u32 2147483647, %v2833_v4 }
  0xcb   :  { %v389_v10 = vmul.f32 %v2295_v63, %v2833_v4  ;;  %v443_v11 = vmul.f32 0.0, %v386_v56  ;;  %vm394_vm11 = vweird.f32 %v2295_v63  ;;  %v416_v50 = vmul.f32 %v2836_v30, %v415_v18 }
  0xcc   :  { %v353_v59 = vmul.f32 %v2291_v43, %v352_v0  ;;  %v400_v35 = vor.u32 1.1754944e-38, %v399_v23  ;;  %vm395_vm14 = vmor %vm393_vm13, %vm394_vm11  ;;  %vm398_vm15 = vcmp.eq.f32.partialorder %v397_v31, 8.507059e+37  ;;  %vm433_vm4 = vweird.f32 %v2838_v40 }
  0xcd   :  { %v390_v22 = vsub.f32 1.0, %v389_v10  ;;  %v2851_v15 = vadd.f32 %v445_v13, %v443_v11  ;;  %v424_v10 = vand.u32 2147483648, %v2827_v52  ;;  %v422_v11 = vand.u32 2147483647, %v2827_v52 }
  0xce   :  { %v2297_v61 = vpop.eup %2296  ;;  %v354_v26 = vadd.f32 %v2291_v43, %v353_v59  ;;  %v437_v23 = vand.u32 2147483647, %v2838_v40 }
  0xcf   :  { %v391_v47 = vmul.f32 %v2295_v63, %v390_v22  ;;  %v429_v48 = vmul.f32 %v2297_v61, %v2838_v40  ;;  %v2299_v55 = vpop.eup %2298  ;;  %2300 = vtanh.f32 %v2851_v15  ;;  %vm434_vm3 = vweird.f32 %v2297_v61 }
  0xd0   :  { %v358_v49 = vsel %vm357_vm10, %v2291_v43, %v354_v26  ;;  %v417_v43 = vadd.f32 %v2836_v30, %v416_v50  ;;  %v425_v59 = vor.u32 1.1754944e-38, %v424_v10  ;;  %v439_v22 = vand.u32 2147483648, %v2838_v40  ;;  %vm435_vm6 = vmor %vm433_vm4, %vm434_vm3  ;;  %v458_v40 = vld [vmem:[#allocation6 + $0x20] sm:$0xff]  ;;  %v460_v10 = vld [vmem:[#allocation6 + $0x30] sm:$0xff] }
  0xd1   :  { %v430_v60 = vsub.f32 1.0, %v429_v48  ;;  %v363_v51 = vsel %vm360_vm12, %v362_v27, %v358_v49  ;;  %v392_v29 = vadd.f32 %v2295_v63, %v391_v47  ;;  %vm423_vm5 = vcmp.eq.f32.partialorder %v422_v11, 8.507059e+37 }
  0xd2   :  { %v446_v0 = vmul.f32 %v2299_v55, %v363_v51  ;;  %v440_v31 = vor.u32 1.1754944e-38, %v439_v22  ;;  %vm438_vm7 = vcmp.eq.f32.partialorder %v437_v23, 8.507059e+37 }
  0xd3   :  { %v396_v62 = vsel %vm395_vm14, %v2295_v63, %v392_v29  ;;  %v431_v56 = vmul.f32 %v2297_v61, %v430_v60  ;;  %v421_v63 = vsel %vm420_vm2, %v2836_v30, %v417_v43  ;;  %v459_v43 = vld [vmem:[#allocation6 + $0x28] sm:$0xff] }
  0xd4   :  { %v401_v5 = vsel %vm398_vm15, %v400_v35, %v396_v62  ;;  %v426_v52 = vsel %vm423_vm5, %v425_v59, %v421_v63  ;;  %v525_v35 = vunpack.c.h.bf16 %v458_v40  ;;  %v527_v63 = vunpack.c.h.bf16 %v459_v43 }
  0xd5   :  { %v444_v4 = vmul.f32 0.0, %v401_v5  ;;  %v432_v14 = vadd.f32 %v2297_v61, %v431_v56  ;;  %v2301_v18 = vpop.eup %2300 }
  0xd6   :  { %v451_v27 = vmul.f32 %v2301_v18, %v426_v52  ;;  %v529_v18 = vunpack.c.h.bf16 %v460_v10 }
  0xd7   :  { %v2862_v13 = vadd.f32 %v446_v0, %v444_v4  ;;  %v436_v26 = vsel %vm435_vm6, %v2297_v61, %v432_v14  ;;  %v524_v61 = vunpack.c.l.bf16 %v458_v40  ;;  %v528_v14 = vunpack.c.l.bf16 %v460_v10 }
  0xd8   :  { %v441_v30 = vsel %vm438_vm7, %v440_v31, %v436_v26  ;;  %v453_v50 = vpack.c.bf16 %v451_v27, %v451_v27  ;;  %v526_v40 = vunpack.c.l.bf16 %v459_v43 }
  0xd9   :  { %2302 = vtanh.f32 %v2862_v13 }
  0xda   :  { %v464_v51 = vunpack.c.l.b16 %v453_v50 }
  0xdf   :  { %v2303_v47 = vpop.eup %2302 }
  0xe0   :  { %v452_v48 = vmul.f32 %v2303_v47, %v441_v30  ;;  %v461_v47 = vld [vmem:[#allocation6 + $0x38] sm:$0xff] }
  0xe1   :  { %v530_v43 = vunpack.c.l.bf16 %v461_v47 }
  0xe2   :  { %v454_v49 = vpack.c.bf16 %v452_v48, %v452_v48  ;;  %v2221_v60 = vpack.c.bf16 %v452_v48, %v451_v27 }
  0xe4   :  { %2222 = vst [vmem:[#allocation9] sm:$0xff] %v2221_v60   ;;  %v465_v29 = vunpack.c.l.b16 %v454_v49 }
  0xe6   :  { %v466_v55 = vpack.c.b16 %v465_v29, %v464_v51 }
  0xe8   :  { %476 = vmatmul.bf16.vlgmr.msrb.gmra.mxu0 %v466_v55  ;;  %490 = vmatmul.bf16.vlgmr.msrb.gmra.mxu1 %v466_v55 }
  0xe9   :  { %504 = vmatmul.bf16.vlgmr.msrb.gmra.mxu2 %v466_v55  ;;  %518 = vmatmul.bf16.vlgmr.msrb.gmra.mxu3 %v466_v55  ;;  %v531_v55 = vunpack.c.h.bf16 %v461_v47 }
  0xea   :  { %896 = vmatpush.bf16.msrb.mxu0 %v2667_v3  ;;  %910 = vmatpush.bf16.msrb.mxu1 %v2669_v7 }
  0xeb   :  { %924 = vmatpush.bf16.msrb.mxu2 %v2682_v21  ;;  %938 = vmatpush.bf16.msrb.mxu3 %v2671_v8 }
  0xee   :  { %897 = vmatpush.bf16.msrb.mxu0 %v2674_v12  ;;  %911 = vmatpush.bf16.msrb.mxu1 %v2678_v16 }
  0xef   :  { %925 = vmatpush.bf16.msrb.mxu2 %v2694_v34  ;;  %939 = vmatpush.bf16.msrb.mxu3 %v2680_v17 }
  0xf2   :  { %898 = vmatpush.bf16.msrb.mxu0 %v2686_v28  ;;  %912 = vmatpush.bf16.msrb.mxu1 %v2690_v32 }
  0xf3   :  { %926 = vmatpush.bf16.msrb.mxu2 %v2700_v42  ;;  %940 = vmatpush.bf16.msrb.mxu3 %v2692_v33 }
  0xf6   :  { %899 = vmatpush.bf16.msrb.mxu0 %v2698_v41  ;;  %913 = vmatpush.bf16.msrb.mxu1 %v2704_v45 }
  0xf7   :  { %927 = vmatpush.bf16.msrb.mxu2 %v2712_v54  ;;  %941 = vmatpush.bf16.msrb.mxu3 %v2706_v46 }
  0xfa   :  { %900 = vmatpush.bf16.msrb.mxu0 %v2710_v53  ;;  %914 = vmatpush.bf16.msrb.mxu1 %v2716_v57 }
  0xfb   :  { %928 = vmatpush.bf16.msrb.mxu2 %v2724_v2  ;;  %942 = vmatpush.bf16.msrb.mxu3 %v2718_v58 }
  0xfe   :  { %901 = vmatpush.bf16.msrb.mxu0 %v2722_v1  ;;  %915 = vmatpush.bf16.msrb.mxu1 %v2728_v6 }
  0xff   :  { %929 = vmatpush.bf16.msrb.mxu2 %v2736_v20  ;;  %943 = vmatpush.bf16.msrb.mxu3 %v2730_v9 }
 0x102   :  { %902 = vmatpush.bf16.msrb.mxu0 %v2734_v19  ;;  %916 = vmatpush.bf16.msrb.mxu1 %v2740_v24 }
 0x103   :  { %930 = vmatpush.bf16.msrb.mxu2 %v2748_v37  ;;  %944 = vmatpush.bf16.msrb.mxu3 %v2742_v25 }
 0x106   :  { %903 = vmatpush.bf16.msrb.mxu0 %v2746_v36  ;;  %917 = vmatpush.bf16.msrb.mxu1 %v2752_v38 }
 0x107   :  { %931 = vmatpush.bf16.msrb.mxu2 %v2760_v44  ;;  %945 = vmatpush.bf16.msrb.mxu3 %v2754_v39 }
 0x165   :  { %v477_v62 = vpop.f32.mrf.mxu0  ;;  %v491_v0 = vpop.f32.mrf.mxu1 }
 0x166   :  { %v532_v56 = vadd.f32 %v524_v61, %v477_v62  ;;  %v533_v5 = vadd.f32 %v525_v35, %v491_v0 }
 0x168   :  { %v2143_v4 = vmul.f32 -1.442695, %v532_v56  ;;  %v2145_v11 = vmul.f32 -1.442695, %v533_v5 }
 0x16a   :  { %2304 = vpow2.f32 %v2143_v4 }
 0x16b   :  { %2306 = vpow2.f32 %v2145_v11 }
 0x16c   :  { %v519_v59 = vpop.f32.mrf.mxu3  ;;  %v505_v29 = vpop.f32.mrf.mxu2 }
 0x16d   :  { %v535_v22 = vadd.f32 %v527_v63, %v519_v59  ;;  %v479_v23 = vpop.f32.mrf.mxu0  ;;  %v493_v52 = vpop.f32.mrf.mxu1  ;;  %v534_v56 = vadd.f32 %v526_v40, %v505_v29 }
 0x16e   :  { %v536_v26 = vadd.f32 %v528_v14, %v479_v23  ;;  %v537_v27 = vadd.f32 %v529_v18, %v493_v52 }
 0x16f   :  { %v2147_v31 = vmul.f32 -1.442695, %v535_v22 }
 0x170   :  { %v2305_v30 = vpop.eup %2304  ;;  %v2144_v48 = vmul.f32 -1.442695, %v536_v26  ;;  %v2146_v60 = vmul.f32 -1.442695, %v537_v27 }
 0x171   :  { %v2307_v50 = vpop.eup %2306  ;;  %v546_v49 = vadd.f32 1.0, %v2305_v30  ;;  %2308 = vpow2.f32 %v2147_v31 }
 0x172   :  { %v584_v51 = vadd.f32 1.0, %v2307_v50  ;;  %2310 = vpow2.f32 %v2144_v48 }
 0x173   :  { %2312 = vrcp.f32 %v546_v49  ;;  %v557_v27 = vand.u32 2147483647, %v546_v49  ;;  %v559_v31 = vand.u32 2147483648, %v546_v49  ;;  %vm553_vm10 = vweird.f32 %v546_v49 }
 0x174   :  { %2314 = vrcp.f32 %v584_v51  ;;  %v521_v61 = vpop.f32.mrf.mxu3  ;;  %v507_v52 = vpop.f32.mrf.mxu2  ;;  %v597_v30 = vand.u32 2147483648, %v584_v51  ;;  %vm591_vm11 = vweird.f32 %v584_v51 }
 0x175   :  { %2316 = vpow2.f32 %v2146_v60  ;;  %v539_v35 = vadd.f32 %v531_v55, %v521_v61  ;;  %v595_v60 = vand.u32 2147483647, %v584_v51  ;;  %v538_v29 = vadd.f32 %v530_v43, %v507_v52 }
 0x176   :  { %vm558_vm13 = vcmp.eq.f32.partialorder %v557_v27, 8.507059e+37  ;;  %v560_v61 = vor.u32 1.1754944e-38, %v559_v31 }
 0x177   :  { %v2309_v62 = vpop.eup %2308  ;;  %v2148_v11 = vmul.f32 -1.442695, %v539_v35  ;;  %vm596_vm15 = vcmp.eq.f32.partialorder %v595_v60, 8.507059e+37 }
 0x178   :  { %v2311_v0 = vpop.eup %2310  ;;  %v2901_v5 = vadd.f32 1.0, %v2309_v62 }
 0x179   :  { %v2313_v10 = vpop.eup %2312  ;;  %v2903_v4 = vadd.f32 1.0, %v2311_v0  ;;  %v598_v0 = vor.u32 1.1754944e-38, %v597_v30 }
 0x17a   :  { %v2315_v63 = vpop.eup %2314  ;;  %v549_v14 = vmul.f32 %v2313_v10, %v546_v49  ;;  %2318 = vrcp.f32 %v2901_v5  ;;  %vm554_vm8 = vweird.f32 %v2313_v10 }
 0x17b   :  { %v2317_v18 = vpop.eup %2316  ;;  %v587_v59 = vmul.f32 %v2315_v63, %v584_v51  ;;  %2320 = vrcp.f32 %v2903_v4  ;;  %vm592_vm9 = vweird.f32 %v2315_v63  ;;  %vm555_vm12 = vmor %vm553_vm10, %vm554_vm8  ;;  %v572_v52 = vand.u32 2147483647, %v2903_v4 }
 0x17c   :  { %v550_v22 = vsub.f32 1.0, %v549_v14  ;;  %2322 = vtanh.f32 %v534_v56  ;;  %v2907_v23 = vadd.f32 1.0, %v2317_v18  ;;  %vm593_vm14 = vmor %vm591_vm11, %vm592_vm9  ;;  %v574_v30 = vand.u32 2147483648, %v2903_v4 }
 0x17d   :  { %v588_v26 = vsub.f32 1.0, %v587_v59  ;;  %2324 = vpow2.f32 %v2148_v11  ;;  %vm568_vm1 = vweird.f32 %v2903_v4  ;;  %vm573_vm4 = vcmp.eq.f32.partialorder %v572_v52, 8.507059e+37 }
 0x17e   :  { %v551_v48 = vmul.f32 %v2313_v10, %v550_v22  ;;  %2326 = vrcp.f32 %v2907_v23  ;;  %v612_v60 = vand.u32 2147483648, %v2907_v23  ;;  %vm606_vm5 = vweird.f32 %v2907_v23 }
 0x17f   :  { %v589_v50 = vmul.f32 %v2315_v63, %v588_v26  ;;  %2328 = vtanh.f32 %v538_v29  ;;  %vm631_vm9 = vweird.f32 %v2901_v5 }
 0x180   :  { %v2910_v55 = vpop.eup %2318  ;;  %v552_v47 = vadd.f32 %v2313_v10, %v551_v48 }
 0x181   :  { %v2321_v40 = vpop.eup %2320  ;;  %v590_v35 = vadd.f32 %v2315_v63, %v589_v50  ;;  %v627_v11 = vmul.f32 %v2910_v55, %v2901_v5  ;;  %vm632_vm8 = vweird.f32 %v2910_v55 }
 0x182   :  { %v2323_v62 = vpop.eup %2322  ;;  %v556_v56 = vsel %vm555_vm12, %v2313_v10, %v552_v47  ;;  %v564_v14 = vmul.f32 %v2321_v40, %v2903_v4  ;;  %vm569_vm0 = vweird.f32 %v2321_v40  ;;  %v610_v47 = vand.u32 2147483647, %v2907_v23  ;;  %vm633_vm10 = vmor %vm631_vm9, %vm632_vm8 }
 0x183   :  { %v2325_v18 = vpop.eup %2324  ;;  %v561_v59 = vsel %vm558_vm13, %v560_v61, %v556_v56  ;;  %v594_v43 = vsel %vm593_vm14, %v2315_v63, %v590_v35  ;;  %v628_v48 = vsub.f32 1.0, %v627_v11  ;;  %vm570_vm3 = vmor %vm568_vm1, %vm569_vm0  ;;  %v613_v4 = vor.u32 1.1754944e-38, %v612_v60 }
 0x184   :  { %v2327_v49 = vpop.eup %2326  ;;  %v599_v51 = vsel %vm596_vm15, %v598_v0, %v594_v43  ;;  %v565_v22 = vsub.f32 1.0, %v564_v14  ;;  %v625_v26 = vadd.f32 1.0, %v2325_v18  ;;  %v658_v31 = vmul.f32 %v2323_v62, %v561_v59 }
 0x185   :  { %v656_v27 = vmul.f32 %v599_v51, %v2851_v15  ;;  %v602_v10 = vmul.f32 %v2327_v49, %v2907_v23  ;;  %v2329_v61 = vpop.eup %2328  ;;  %vm607_vm2 = vweird.f32 %v2327_v49  ;;  %v575_v62 = vor.u32 1.1754944e-38, %v574_v30 }
 0x186   :  { %v566_v50 = vmul.f32 %v2321_v40, %v565_v22  ;;  %2330 = vrcp.f32 %v625_v26  ;;  %v629_v0 = vmul.f32 %v2910_v55, %v628_v48  ;;  %vm608_vm6 = vmor %vm606_vm5, %vm607_vm2  ;;  %vm611_vm7 = vcmp.eq.f32.partialorder %v610_v47, 8.507059e+37 }
 0x187   :  { %v603_v63 = vsub.f32 1.0, %v602_v10  ;;  %v2922_v35 = vadd.f32 %v658_v31, %v656_v27  ;;  %v635_v31 = vand.u32 2147483647, %v2901_v5  ;;  %vm646_vm12 = vweird.f32 %v625_v26 }
 0x188   :  { %v567_v29 = vadd.f32 %v2321_v40, %v566_v50  ;;  %v630_v27 = vadd.f32 %v2910_v55, %v629_v0 }
 0x189   :  { %v604_v15 = vmul.f32 %v2327_v49, %v603_v63  ;;  %2332 = vtanh.f32 %v2922_v35  ;;  %v652_v63 = vand.u32 2147483648, %v625_v26  ;;  %vm636_vm13 = vcmp.eq.f32.partialorder %v635_v31, 8.507059e+37 }
 0x18a   :  { %v571_v56 = vsel %vm570_vm3, %v2321_v40, %v567_v29  ;;  %v637_v40 = vand.u32 2147483648, %v2901_v5  ;;  %v634_v30 = vsel %vm633_vm10, %v2910_v55, %v630_v27 }
 0x18b   :  { %v576_v11 = vsel %vm573_vm4, %v575_v62, %v571_v56  ;;  %v605_v14 = vadd.f32 %v2327_v49, %v604_v15 }
 0x18c   :  { %v2331_v18 = vpop.eup %2330  ;;  %v659_v43 = vmul.f32 %v2329_v61, %v576_v11  ;;  %v638_v50 = vor.u32 1.1754944e-38, %v637_v40  ;;  %v653_v61 = vor.u32 1.1754944e-38, %v652_v63 }
 0x18d   :  { %v609_v59 = vsel %vm608_vm6, %v2327_v49, %v605_v14  ;;  %v642_v51 = vmul.f32 %v2331_v18, %v625_v26  ;;  %vm647_vm11 = vweird.f32 %v2331_v18 }
 0x18e   :  { %v614_v22 = vsel %vm611_vm7, %v613_v4, %v609_v59  ;;  %vm648_vm14 = vmor %vm646_vm12, %vm647_vm11  ;;  %v639_v29 = vsel %vm636_vm13, %v638_v50, %v634_v30 }
 0x18f   :  { %v657_v23 = vmul.f32 %v614_v22, %v2862_v13  ;;  %v643_v52 = vsub.f32 1.0, %v642_v51  ;;  %v2333_v48 = vpop.eup %2332  ;;  %v650_v13 = vand.u32 2147483647, %v625_v26  ;;  %v672_v26 = vld [vmem:[#allocation6 + $0x40] sm:$0xff] }
 0x190   :  { %v664_v5 = vmul.f32 %v2333_v48, %v639_v29 }
 0x191   :  { %v2933_v10 = vadd.f32 %v659_v43, %v657_v23  ;;  %v644_v49 = vmul.f32 %v2331_v18, %v643_v52  ;;  %vm651_vm15 = vcmp.eq.f32.partialorder %v650_v13, 8.507059e+37  ;;  %v739_v43 = vunpack.c.h.bf16 %v672_v26  ;;  %v673_v23 = vld [vmem:[#allocation6 + $0x48] sm:$0xff]  ;;  %v674_v52 = vld [vmem:[#allocation6 + $0x50] sm:$0xff] }
 0x192   :  { %v666_v56 = vpack.c.bf16 %v664_v5, %v664_v5  ;;  %v741_v30 = vunpack.c.h.bf16 %v673_v23  ;;  %v742_v48 = vunpack.c.l.bf16 %v674_v52  ;;  %v743_v50 = vunpack.c.h.bf16 %v674_v52 }
 0x193   :  { %2334 = vtanh.f32 %v2933_v10  ;;  %v645_v60 = vadd.f32 %v2331_v18, %v644_v49 }
 0x194   :  { %v678_v14 = vunpack.c.l.b16 %v666_v56 }
 0x195   :  { %v649_v47 = vsel %vm648_vm14, %v2331_v18, %v645_v60  ;;  %v738_v18 = vunpack.c.l.bf16 %v672_v26  ;;  %v740_v26 = vunpack.c.l.bf16 %v673_v23 }
 0x196   :  { %v654_v62 = vsel %vm651_vm15, %v653_v61, %v649_v47 }
 0x199   :  { %v2335_v15 = vpop.eup %2334 }
 0x19a   :  { %v665_v0 = vmul.f32 %v2335_v15, %v654_v62  ;;  %v675_v15 = vld [vmem:[#allocation6 + $0x58] sm:$0xff] }
 0x19b   :  { %v744_v23 = vunpack.c.l.bf16 %v675_v15 }
 0x19c   :  { %v667_v55 = vpack.c.bf16 %v665_v0, %v665_v0  ;;  %v2226_v11 = vpack.c.bf16 %v665_v0, %v664_v5 }
 0x19e   :  { %2227 = vst [vmem:[#allocation9 + $0x8] sm:$0xff] %v2226_v11   ;;  %v679_v4 = vunpack.c.l.b16 %v667_v55 }
 0x1a0   :  { %v680_v59 = vpack.c.b16 %v679_v4, %v678_v14 }
 0x1a2   :  { %690 = vmatmul.bf16.vlgmr.msra.gmra.mxu0 %v680_v59  ;;  %704 = vmatmul.bf16.vlgmr.msra.gmra.mxu1 %v680_v59 }
 0x1a3   :  { %718 = vmatmul.bf16.vlgmr.msra.gmra.mxu2 %v680_v59  ;;  %732 = vmatmul.bf16.vlgmr.msra.gmra.mxu3 %v680_v59  ;;  %v745_v59 = vunpack.c.h.bf16 %v675_v15 }
 0x1a4   :  { %1110 = vmatpush.bf16.msra.mxu0 %v2667_v3  ;;  %1124 = vmatpush.bf16.msra.mxu1 %v2669_v7 }
 0x1a5   :  { %1138 = vmatpush.bf16.msra.mxu2 %v2682_v21  ;;  %1152 = vmatpush.bf16.msra.mxu3 %v2671_v8 }
 0x1a8   :  { %1111 = vmatpush.bf16.msra.mxu0 %v2674_v12  ;;  %1125 = vmatpush.bf16.msra.mxu1 %v2678_v16 }
 0x1a9   :  { %1139 = vmatpush.bf16.msra.mxu2 %v2694_v34  ;;  %1153 = vmatpush.bf16.msra.mxu3 %v2680_v17 }
 0x1ac   :  { %1112 = vmatpush.bf16.msra.mxu0 %v2686_v28  ;;  %1126 = vmatpush.bf16.msra.mxu1 %v2690_v32 }
 0x1ad   :  { %1140 = vmatpush.bf16.msra.mxu2 %v2700_v42  ;;  %1154 = vmatpush.bf16.msra.mxu3 %v2692_v33 }
 0x1b0   :  { %1113 = vmatpush.bf16.msra.mxu0 %v2698_v41  ;;  %1127 = vmatpush.bf16.msra.mxu1 %v2704_v45 }
 0x1b1   :  { %1141 = vmatpush.bf16.msra.mxu2 %v2712_v54  ;;  %1155 = vmatpush.bf16.msra.mxu3 %v2706_v46 }
 0x1b4   :  { %1114 = vmatpush.bf16.msra.mxu0 %v2710_v53  ;;  %1128 = vmatpush.bf16.msra.mxu1 %v2716_v57 }
 0x1b5   :  { %1142 = vmatpush.bf16.msra.mxu2 %v2724_v2  ;;  %1156 = vmatpush.bf16.msra.mxu3 %v2718_v58 }
 0x1b8   :  { %1115 = vmatpush.bf16.msra.mxu0 %v2722_v1  ;;  %1129 = vmatpush.bf16.msra.mxu1 %v2728_v6 }
 0x1b9   :  { %1143 = vmatpush.bf16.msra.mxu2 %v2736_v20  ;;  %1157 = vmatpush.bf16.msra.mxu3 %v2730_v9 }
 0x1bc   :  { %1116 = vmatpush.bf16.msra.mxu0 %v2734_v19  ;;  %1130 = vmatpush.bf16.msra.mxu1 %v2740_v24 }
 0x1bd   :  { %1144 = vmatpush.bf16.msra.mxu2 %v2748_v37  ;;  %1158 = vmatpush.bf16.msra.mxu3 %v2742_v25 }
 0x1c0   :  { %1117 = vmatpush.bf16.msra.mxu0 %v2746_v36  ;;  %1131 = vmatpush.bf16.msra.mxu1 %v2752_v38 }
 0x1c1   :  { %1145 = vmatpush.bf16.msra.mxu2 %v2760_v44  ;;  %1159 = vmatpush.bf16.msra.mxu3 %v2754_v39 }
 0x21f   :  { %v691_v51 = vpop.f32.mrf.mxu0  ;;  %v705_v22 = vpop.f32.mrf.mxu1 }
 0x220   :  { %v746_v27 = vadd.f32 %v738_v18, %v691_v51  ;;  %v747_v40 = vadd.f32 %v739_v43, %v705_v22 }
 0x222   :  { %v2149_v31 = vmul.f32 -1.442695, %v746_v27  ;;  %v2151_v49 = vmul.f32 -1.442695, %v747_v40 }
 0x224   :  { %2336 = vpow2.f32 %v2149_v31 }
 0x225   :  { %2338 = vpow2.f32 %v2151_v49 }
 0x226   :  { %v733_v63 = vpop.f32.mrf.mxu3  ;;  %v719_v4 = vpop.f32.mrf.mxu2 }
 0x227   :  { %v749_v60 = vadd.f32 %v741_v30, %v733_v63  ;;  %v693_v13 = vpop.f32.mrf.mxu0  ;;  %v707_v29 = vpop.f32.mrf.mxu1  ;;  %v748_v27 = vadd.f32 %v740_v26, %v719_v4 }
 0x228   :  { %v750_v47 = vadd.f32 %v742_v48, %v693_v13  ;;  %v751_v5 = vadd.f32 %v743_v50, %v707_v29 }
 0x229   :  { %v2153_v61 = vmul.f32 -1.442695, %v749_v60 }
 0x22a   :  { %v2337_v62 = vpop.eup %2336  ;;  %v2150_v0 = vmul.f32 -1.442695, %v750_v47  ;;  %v2152_v11 = vmul.f32 -1.442695, %v751_v5 }
 0x22b   :  { %v2339_v56 = vpop.eup %2338  ;;  %v760_v55 = vadd.f32 1.0, %v2337_v62  ;;  %2340 = vpow2.f32 %v2153_v61 }
 0x22c   :  { %v798_v14 = vadd.f32 1.0, %v2339_v56  ;;  %2342 = vpow2.f32 %v2150_v0 }
 0x22d   :  { %2344 = vrcp.f32 %v760_v55  ;;  %v771_v5 = vand.u32 2147483647, %v760_v55  ;;  %v773_v61 = vand.u32 2147483648, %v760_v55  ;;  %vm767_vm2 = vweird.f32 %v760_v55 }
 0x22e   :  { %2346 = vrcp.f32 %v798_v14  ;;  %v735_v18 = vpop.f32.mrf.mxu3  ;;  %v721_v29 = vpop.f32.mrf.mxu2  ;;  %v811_v62 = vand.u32 2147483648, %v798_v14  ;;  %vm805_vm3 = vweird.f32 %v798_v14 }
 0x22f   :  { %2348 = vpow2.f32 %v2152_v11  ;;  %v753_v43 = vadd.f32 %v745_v59, %v735_v18  ;;  %v809_v11 = vand.u32 2147483647, %v798_v14  ;;  %v752_v4 = vadd.f32 %v744_v23, %v721_v29 }
 0x230   :  { %vm772_vm5 = vcmp.eq.f32.partialorder %v771_v5, 8.507059e+37  ;;  %v774_v18 = vor.u32 1.1754944e-38, %v773_v61 }
 0x231   :  { %v2341_v51 = vpop.eup %2340  ;;  %v2154_v49 = vmul.f32 -1.442695, %v753_v43  ;;  %vm810_vm7 = vcmp.eq.f32.partialorder %v809_v11, 8.507059e+37 }
 0x232   :  { %v2343_v22 = vpop.eup %2342  ;;  %v2969_v40 = vadd.f32 1.0, %v2341_v51 }
 0x233   :  { %v2345_v52 = vpop.eup %2344  ;;  %v2971_v31 = vadd.f32 1.0, %v2343_v22  ;;  %v812_v22 = vor.u32 1.1754944e-38, %v811_v62 }
 0x234   :  { %v2347_v30 = vpop.eup %2346  ;;  %v763_v48 = vmul.f32 %v2345_v52, %v760_v55  ;;  %2350 = vrcp.f32 %v2969_v40  ;;  %vm768_vm0 = vweird.f32 %v2345_v52 }
 0x235   :  { %v2349_v50 = vpop.eup %2348  ;;  %v801_v63 = vmul.f32 %v2347_v30, %v798_v14  ;;  %2352 = vrcp.f32 %v2971_v31  ;;  %vm806_vm1 = vweird.f32 %v2347_v30  ;;  %vm769_vm4 = vmor %vm767_vm2, %vm768_vm0  ;;  %v786_v29 = vand.u32 2147483647, %v2971_v31 }
 0x236   :  { %v764_v60 = vsub.f32 1.0, %v763_v48  ;;  %2354 = vtanh.f32 %v748_v27  ;;  %v2975_v13 = vadd.f32 1.0, %v2349_v50  ;;  %vm807_vm6 = vmor %vm805_vm3, %vm806_vm1  ;;  %v788_v62 = vand.u32 2147483648, %v2971_v31 }
 0x237   :  { %v802_v47 = vsub.f32 1.0, %v801_v63  ;;  %2356 = vpow2.f32 %v2154_v49  ;;  %vm782_vm9 = vweird.f32 %v2971_v31  ;;  %vm787_vm12 = vcmp.eq.f32.partialorder %v786_v29, 8.507059e+37 }
 0x238   :  { %v765_v0 = vmul.f32 %v2345_v52, %v764_v60  ;;  %2358 = vrcp.f32 %v2975_v13  ;;  %v826_v11 = vand.u32 2147483648, %v2975_v13  ;;  %vm820_vm13 = vweird.f32 %v2975_v13 }
 0x239   :  { %v803_v56 = vmul.f32 %v2347_v30, %v802_v47  ;;  %2360 = vtanh.f32 %v752_v4  ;;  %vm845_vm1 = vweird.f32 %v2969_v40 }
 0x23a   :  { %v2978_v59 = vpop.eup %2350  ;;  %v766_v15 = vadd.f32 %v2345_v52, %v765_v0 }
 0x23b   :  { %v2353_v26 = vpop.eup %2352  ;;  %v804_v43 = vadd.f32 %v2347_v30, %v803_v56  ;;  %v841_v49 = vmul.f32 %v2978_v59, %v2969_v40  ;;  %vm846_vm0 = vweird.f32 %v2978_v59 }
 0x23c   :  { %v2355_v51 = vpop.eup %2354  ;;  %v770_v27 = vsel %vm769_vm4, %v2345_v52, %v766_v15  ;;  %v778_v48 = vmul.f32 %v2353_v26, %v2971_v31  ;;  %vm783_vm8 = vweird.f32 %v2353_v26  ;;  %v824_v15 = vand.u32 2147483647, %v2975_v13  ;;  %vm847_vm2 = vmor %vm845_vm1, %vm846_vm0 }
 0x23d   :  { %v2357_v50 = vpop.eup %2356  ;;  %v775_v63 = vsel %vm772_vm5, %v774_v18, %v770_v27  ;;  %v808_v23 = vsel %vm807_vm6, %v2347_v30, %v804_v43  ;;  %v842_v0 = vsub.f32 1.0, %v841_v49  ;;  %vm784_vm11 = vmor %vm782_vm9, %vm783_vm8  ;;  %v827_v31 = vor.u32 1.1754944e-38, %v826_v11 }
 0x23e   :  { %v2359_v55 = vpop.eup %2358  ;;  %v813_v14 = vsel %vm810_vm7, %v812_v22, %v808_v23  ;;  %v779_v60 = vsub.f32 1.0, %v778_v48  ;;  %v839_v47 = vadd.f32 1.0, %v2357_v50  ;;  %v872_v61 = vmul.f32 %v2355_v51, %v775_v63 }
 0x23f   :  { %v870_v5 = vmul.f32 %v813_v14, %v2922_v35  ;;  %v816_v52 = vmul.f32 %v2359_v55, %v2975_v13  ;;  %v2361_v18 = vpop.eup %2360  ;;  %vm821_vm10 = vweird.f32 %v2359_v55  ;;  %v789_v51 = vor.u32 1.1754944e-38, %v788_v62 }
 0x240   :  { %v780_v56 = vmul.f32 %v2353_v26, %v779_v60  ;;  %2362 = vrcp.f32 %v839_v47  ;;  %v843_v22 = vmul.f32 %v2978_v59, %v842_v0  ;;  %vm822_vm14 = vmor %vm820_vm13, %vm821_vm10  ;;  %vm825_vm15 = vcmp.eq.f32.partialorder %v824_v15, 8.507059e+37 }
 0x241   :  { %v817_v30 = vsub.f32 1.0, %v816_v52  ;;  %v2990_v43 = vadd.f32 %v872_v61, %v870_v5  ;;  %v849_v61 = vand.u32 2147483647, %v2969_v40  ;;  %vm860_vm4 = vweird.f32 %v839_v47 }
 0x242   :  { %v781_v4 = vadd.f32 %v2353_v26, %v780_v56  ;;  %v844_v5 = vadd.f32 %v2978_v59, %v843_v22 }
 0x243   :  { %v818_v35 = vmul.f32 %v2359_v55, %v817_v30  ;;  %2364 = vtanh.f32 %v2990_v43  ;;  %v866_v30 = vand.u32 2147483648, %v839_v47  ;;  %vm850_vm5 = vcmp.eq.f32.partialorder %v849_v61, 8.507059e+37 }
 0x244   :  { %v785_v27 = vsel %vm784_vm11, %v2353_v26, %v781_v4  ;;  %v851_v26 = vand.u32 2147483648, %v2969_v40  ;;  %v848_v62 = vsel %vm847_vm2, %v2978_v59, %v844_v5 }
 0x245   :  { %v790_v49 = vsel %vm787_vm12, %v789_v51, %v785_v27  ;;  %v819_v48 = vadd.f32 %v2359_v55, %v818_v35 }
 0x246   :  { %v2363_v50 = vpop.eup %2362  ;;  %v873_v23 = vmul.f32 %v2361_v18, %v790_v49  ;;  %v852_v56 = vor.u32 1.1754944e-38, %v851_v26  ;;  %v867_v18 = vor.u32 1.1754944e-38, %v866_v30 }
 0x247   :  { %v823_v63 = vsel %vm822_vm14, %v2359_v55, %v819_v48  ;;  %v856_v14 = vmul.f32 %v2363_v50, %v839_v47  ;;  %vm861_vm3 = vweird.f32 %v2363_v50 }
 0x248   :  { %v828_v60 = vsel %vm825_vm15, %v827_v31, %v823_v63  ;;  %vm862_vm6 = vmor %vm860_vm4, %vm861_vm3  ;;  %v853_v4 = vsel %vm850_vm5, %v852_v56, %v848_v62 }
 0x249   :  { %v871_v13 = vmul.f32 %v828_v60, %v2933_v10  ;;  %v857_v29 = vsub.f32 1.0, %v856_v14  ;;  %v2365_v0 = vpop.eup %2364  ;;  %v864_v10 = vand.u32 2147483647, %v839_v47  ;;  %v886_v47 = vld [vmem:[#allocation6 + $0x60] sm:$0xff] }
 0x24a   :  { %v878_v40 = vmul.f32 %v2365_v0, %v853_v4 }
 0x24b   :  { %v3001_v52 = vadd.f32 %v873_v23, %v871_v13  ;;  %v858_v55 = vmul.f32 %v2363_v50, %v857_v29  ;;  %vm865_vm7 = vcmp.eq.f32.partialorder %v864_v10, 8.507059e+37  ;;  %v953_v23 = vunpack.c.h.bf16 %v886_v47  ;;  %v887_v13 = vld [vmem:[#allocation6 + $0x68] sm:$0xff]  ;;  %v888_v29 = vld [vmem:[#allocation6 + $0x70] sm:$0xff] }
 0x24c   :  { %v880_v27 = vpack.c.bf16 %v878_v40, %v878_v40  ;;  %v955_v62 = vunpack.c.h.bf16 %v887_v13  ;;  %v956_v0 = vunpack.c.l.bf16 %v888_v29  ;;  %v957_v56 = vunpack.c.h.bf16 %v888_v29 }
 0x24d   :  { %2366 = vtanh.f32 %v3001_v52  ;;  %v859_v11 = vadd.f32 %v2363_v50, %v858_v55 }
 0x24e   :  { %v892_v48 = vunpack.c.l.b16 %v880_v27 }
 0x24f   :  { %v863_v15 = vsel %vm862_vm6, %v2363_v50, %v859_v11  ;;  %v952_v50 = vunpack.c.l.bf16 %v886_v47  ;;  %v954_v47 = vunpack.c.l.bf16 %v887_v13 }
 0x250   :  { %v868_v51 = vsel %vm865_vm7, %v867_v18, %v863_v15 }
 0x253   :  { %v2367_v35 = vpop.eup %2366 }
 0x254   :  { %v879_v22 = vmul.f32 %v2367_v35, %v868_v51  ;;  %v889_v35 = vld [vmem:[#allocation6 + $0x78] sm:$0xff] }
 0x255   :  { %v958_v13 = vunpack.c.l.bf16 %v889_v35 }
 0x256   :  { %v881_v59 = vpack.c.bf16 %v879_v22, %v879_v22  ;;  %v2231_v49 = vpack.c.bf16 %v879_v22, %v878_v40 }
 0x258   :  { %2232 = vst [vmem:[#allocation9 + $0x10] sm:$0xff] %v2231_v49   ;;  %v893_v31 = vunpack.c.l.b16 %v881_v59 }
 0x25a   :  { %v894_v63 = vpack.c.b16 %v893_v31, %v892_v48 }
 0x25c   :  { %904 = vmatmul.bf16.vlgmr.msrb.gmra.mxu0 %v894_v63  ;;  %918 = vmatmul.bf16.vlgmr.msrb.gmra.mxu1 %v894_v63 }
 0x25d   :  { %932 = vmatmul.bf16.vlgmr.msrb.gmra.mxu2 %v894_v63  ;;  %946 = vmatmul.bf16.vlgmr.msrb.gmra.mxu3 %v894_v63  ;;  %v959_v63 = vunpack.c.h.bf16 %v889_v35 }
 0x25e   :  { %1324 = vmatpush.bf16.msrb.mxu0 %v2667_v3  ;;  %1338 = vmatpush.bf16.msrb.mxu1 %v2669_v7 }
 0x25f   :  { %1352 = vmatpush.bf16.msrb.mxu2 %v2682_v21  ;;  %1366 = vmatpush.bf16.msrb.mxu3 %v2671_v8 }
 0x262   :  { %1325 = vmatpush.bf16.msrb.mxu0 %v2674_v12  ;;  %1339 = vmatpush.bf16.msrb.mxu1 %v2678_v16 }
 0x263   :  { %1353 = vmatpush.bf16.msrb.mxu2 %v2694_v34  ;;  %1367 = vmatpush.bf16.msrb.mxu3 %v2680_v17 }
 0x266   :  { %1326 = vmatpush.bf16.msrb.mxu0 %v2686_v28  ;;  %1340 = vmatpush.bf16.msrb.mxu1 %v2690_v32 }
 0x267   :  { %1354 = vmatpush.bf16.msrb.mxu2 %v2700_v42  ;;  %1368 = vmatpush.bf16.msrb.mxu3 %v2692_v33 }
 0x26a   :  { %1327 = vmatpush.bf16.msrb.mxu0 %v2698_v41  ;;  %1341 = vmatpush.bf16.msrb.mxu1 %v2704_v45 }
 0x26b   :  { %1355 = vmatpush.bf16.msrb.mxu2 %v2712_v54  ;;  %1369 = vmatpush.bf16.msrb.mxu3 %v2706_v46 }
 0x26e   :  { %1328 = vmatpush.bf16.msrb.mxu0 %v2710_v53  ;;  %1342 = vmatpush.bf16.msrb.mxu1 %v2716_v57 }
 0x26f   :  { %1356 = vmatpush.bf16.msrb.mxu2 %v2724_v2  ;;  %1370 = vmatpush.bf16.msrb.mxu3 %v2718_v58 }
 0x272   :  { %1329 = vmatpush.bf16.msrb.mxu0 %v2722_v1  ;;  %1343 = vmatpush.bf16.msrb.mxu1 %v2728_v6 }
 0x273   :  { %1357 = vmatpush.bf16.msrb.mxu2 %v2736_v20  ;;  %1371 = vmatpush.bf16.msrb.mxu3 %v2730_v9 }
 0x276   :  { %1330 = vmatpush.bf16.msrb.mxu0 %v2734_v19  ;;  %1344 = vmatpush.bf16.msrb.mxu1 %v2740_v24 }
 0x277   :  { %1358 = vmatpush.bf16.msrb.mxu2 %v2748_v37  ;;  %1372 = vmatpush.bf16.msrb.mxu3 %v2742_v25 }
 0x27a   :  { %1331 = vmatpush.bf16.msrb.mxu0 %v2746_v36  ;;  %1345 = vmatpush.bf16.msrb.mxu1 %v2752_v38 }
 0x27b   :  { %1359 = vmatpush.bf16.msrb.mxu2 %v2760_v44  ;;  %1373 = vmatpush.bf16.msrb.mxu3 %v2754_v39 }
 0x2d9   :  { %v905_v14 = vpop.f32.mrf.mxu0  ;;  %v919_v60 = vpop.f32.mrf.mxu1 }
 0x2da   :  { %v960_v5 = vadd.f32 %v952_v50, %v905_v14  ;;  %v961_v26 = vadd.f32 %v953_v23, %v919_v60 }
 0x2dc   :  { %v2155_v61 = vmul.f32 -1.442695, %v960_v5  ;;  %v2157_v55 = vmul.f32 -1.442695, %v961_v26 }
 0x2de   :  { %2368 = vpow2.f32 %v2155_v61 }
 0x2df   :  { %2370 = vpow2.f32 %v2157_v55 }
 0x2e0   :  { %v947_v30 = vpop.f32.mrf.mxu3  ;;  %v933_v31 = vpop.f32.mrf.mxu2 }
 0x2e1   :  { %v963_v11 = vadd.f32 %v955_v62, %v947_v30  ;;  %v907_v10 = vpop.f32.mrf.mxu0  ;;  %v921_v4 = vpop.f32.mrf.mxu1  ;;  %v962_v5 = vadd.f32 %v954_v47, %v933_v31 }
 0x2e2   :  { %v964_v15 = vadd.f32 %v956_v0, %v907_v10  ;;  %v965_v40 = vadd.f32 %v957_v56, %v921_v4 }
 0x2e3   :  { %v2159_v18 = vmul.f32 -1.442695, %v963_v11 }
 0x2e4   :  { %v2369_v51 = vpop.eup %2368  ;;  %v2156_v22 = vmul.f32 -1.442695, %v964_v15  ;;  %v2158_v49 = vmul.f32 -1.442695, %v965_v40 }
 0x2e5   :  { %v2371_v27 = vpop.eup %2370  ;;  %v974_v59 = vadd.f32 1.0, %v2369_v51  ;;  %2372 = vpow2.f32 %v2159_v18 }
 0x2e6   :  { %v1012_v48 = vadd.f32 1.0, %v2371_v27  ;;  %2374 = vpow2.f32 %v2156_v22 }
 0x2e7   :  { %2376 = vrcp.f32 %v974_v59  ;;  %v985_v40 = vand.u32 2147483647, %v974_v59  ;;  %v987_v18 = vand.u32 2147483648, %v974_v59  ;;  %vm981_vm10 = vweird.f32 %v974_v59 }
 0x2e8   :  { %2378 = vrcp.f32 %v1012_v48  ;;  %v949_v50 = vpop.f32.mrf.mxu3  ;;  %v935_v4 = vpop.f32.mrf.mxu2  ;;  %v1025_v51 = vand.u32 2147483648, %v1012_v48  ;;  %vm1019_vm11 = vweird.f32 %v1012_v48 }
 0x2e9   :  { %2380 = vpow2.f32 %v2158_v49  ;;  %v967_v23 = vadd.f32 %v959_v63, %v949_v50  ;;  %v1023_v49 = vand.u32 2147483647, %v1012_v48  ;;  %v966_v31 = vadd.f32 %v958_v13, %v935_v4 }
 0x2ea   :  { %vm986_vm13 = vcmp.eq.f32.partialorder %v985_v40, 8.507059e+37  ;;  %v988_v50 = vor.u32 1.1754944e-38, %v987_v18 }
 0x2eb   :  { %v2373_v14 = vpop.eup %2372  ;;  %v2160_v55 = vmul.f32 -1.442695, %v967_v23  ;;  %vm1024_vm15 = vcmp.eq.f32.partialorder %v1023_v49, 8.507059e+37 }
 0x2ec   :  { %v2375_v60 = vpop.eup %2374  ;;  %v3037_v26 = vadd.f32 1.0, %v2373_v14 }
 0x2ed   :  { %v2377_v29 = vpop.eup %2376  ;;  %v3039_v61 = vadd.f32 1.0, %v2375_v60  ;;  %v1026_v60 = vor.u32 1.1754944e-38, %v1025_v51 }
 0x2ee   :  { %v2379_v62 = vpop.eup %2378  ;;  %v977_v0 = vmul.f32 %v2377_v29, %v974_v59  ;;  %2382 = vrcp.f32 %v3037_v26  ;;  %vm982_vm8 = vweird.f32 %v2377_v29 }
 0x2ef   :  { %v2381_v56 = vpop.eup %2380  ;;  %v1015_v30 = vmul.f32 %v2379_v62, %v1012_v48  ;;  %2384 = vrcp.f32 %v3039_v61  ;;  %vm1020_vm9 = vweird.f32 %v2379_v62  ;;  %vm983_vm12 = vmor %vm981_vm10, %vm982_vm8  ;;  %v1000_v4 = vand.u32 2147483647, %v3039_v61 }
 0x2f0   :  { %v978_v11 = vsub.f32 1.0, %v977_v0  ;;  %2386 = vtanh.f32 %v962_v5  ;;  %v3043_v10 = vadd.f32 1.0, %v2381_v56  ;;  %vm1021_vm14 = vmor %vm1019_vm11, %vm1020_vm9  ;;  %v1002_v51 = vand.u32 2147483648, %v3039_v61 }
 0x2f1   :  { %v1016_v15 = vsub.f32 1.0, %v1015_v30  ;;  %2388 = vpow2.f32 %v2160_v55  ;;  %vm996_vm1 = vweird.f32 %v3039_v61  ;;  %vm1001_vm4 = vcmp.eq.f32.partialorder %v1000_v4, 8.507059e+37 }
 0x2f2   :  { %v979_v22 = vmul.f32 %v2377_v29, %v978_v11  ;;  %2390 = vrcp.f32 %v3043_v10  ;;  %v1040_v49 = vand.u32 2147483648, %v3043_v10  ;;  %vm1034_vm5 = vweird.f32 %v3043_v10 }
 0x2f3   :  { %v1017_v27 = vmul.f32 %v2379_v62, %v1016_v15  ;;  %2392 = vtanh.f32 %v966_v31  ;;  %vm1059_vm9 = vweird.f32 %v3037_v26 }
 0x2f4   :  { %v3046_v63 = vpop.eup %2382  ;;  %v980_v35 = vadd.f32 %v2377_v29, %v979_v22 }
 0x2f5   :  { %v2385_v47 = vpop.eup %2384  ;;  %v1018_v23 = vadd.f32 %v2379_v62, %v1017_v27  ;;  %v1055_v55 = vmul.f32 %v3046_v63, %v3037_v26  ;;  %vm1060_vm8 = vweird.f32 %v3046_v63 }
 0x2f6   :  { %v2387_v14 = vpop.eup %2386  ;;  %v984_v5 = vsel %vm983_vm12, %v2377_v29, %v980_v35  ;;  %v992_v0 = vmul.f32 %v2385_v47, %v3039_v61  ;;  %vm997_vm0 = vweird.f32 %v2385_v47  ;;  %v1038_v35 = vand.u32 2147483647, %v3043_v10  ;;  %vm1061_vm10 = vmor %vm1059_vm9, %vm1060_vm8 }
 0x2f7   :  { %v2389_v56 = vpop.eup %2388  ;;  %v989_v30 = vsel %vm986_vm13, %v988_v50, %v984_v5  ;;  %v1022_v13 = vsel %vm1021_vm14, %v2379_v62, %v1018_v23  ;;  %v1056_v22 = vsub.f32 1.0, %v1055_v55  ;;  %vm998_vm3 = vmor %vm996_vm1, %vm997_vm0  ;;  %v1041_v61 = vor.u32 1.1754944e-38, %v1040_v49 }
 0x2f8   :  { %v2391_v59 = vpop.eup %2390  ;;  %v1027_v48 = vsel %vm1024_vm15, %v1026_v60, %v1022_v13  ;;  %v993_v11 = vsub.f32 1.0, %v992_v0  ;;  %v1053_v15 = vadd.f32 1.0, %v2389_v56  ;;  %v1086_v18 = vmul.f32 %v2387_v14, %v989_v30 }
 0x2f9   :  { %v1084_v40 = vmul.f32 %v1027_v48, %v2990_v43  ;;  %v1030_v29 = vmul.f32 %v2391_v59, %v3043_v10  ;;  %v2393_v50 = vpop.eup %2392  ;;  %vm1035_vm2 = vweird.f32 %v2391_v59  ;;  %v1003_v14 = vor.u32 1.1754944e-38, %v1002_v51 }
 0x2fa   :  { %v994_v27 = vmul.f32 %v2385_v47, %v993_v11  ;;  %2394 = vrcp.f32 %v1053_v15  ;;  %v1057_v60 = vmul.f32 %v3046_v63, %v1056_v22  ;;  %vm1036_vm6 = vmor %vm1034_vm5, %vm1035_vm2  ;;  %vm1039_vm7 = vcmp.eq.f32.partialorder %v1038_v35, 8.507059e+37 }
 0x2fb   :  { %v1031_v62 = vsub.f32 1.0, %v1030_v29  ;;  %v3058_v23 = vadd.f32 %v1086_v18, %v1084_v40  ;;  %v1063_v18 = vand.u32 2147483647, %v3037_v26  ;;  %vm1074_vm12 = vweird.f32 %v1053_v15 }
 0x2fc   :  { %v995_v31 = vadd.f32 %v2385_v47, %v994_v27  ;;  %v1058_v40 = vadd.f32 %v3046_v63, %v1057_v60 }
 0x2fd   :  { %v1032_v43 = vmul.f32 %v2391_v59, %v1031_v62  ;;  %2396 = vtanh.f32 %v3058_v23  ;;  %v1080_v62 = vand.u32 2147483648, %v1053_v15  ;;  %vm1064_vm13 = vcmp.eq.f32.partialorder %v1063_v18, 8.507059e+37 }
 0x2fe   :  { %v999_v5 = vsel %vm998_vm3, %v2385_v47, %v995_v31  ;;  %v1065_v47 = vand.u32 2147483648, %v3037_v26  ;;  %v1062_v51 = vsel %vm1061_vm10, %v3046_v63, %v1058_v40 }
 0x2ff   :  { %v1004_v55 = vsel %vm1001_vm4, %v1003_v14, %v999_v5  ;;  %v1033_v0 = vadd.f32 %v2391_v59, %v1032_v43 }
 0x300   :  { %v2395_v56 = vpop.eup %2394  ;;  %v1087_v13 = vmul.f32 %v2393_v50, %v1004_v55  ;;  %v1066_v27 = vor.u32 1.1754944e-38, %v1065_v47  ;;  %v1081_v50 = vor.u32 1.1754944e-38, %v1080_v62 }
 0x301   :  { %v1037_v30 = vsel %vm1036_vm6, %v2391_v59, %v1033_v0  ;;  %v1070_v48 = vmul.f32 %v2395_v56, %v1053_v15  ;;  %vm1075_vm11 = vweird.f32 %v2395_v56 }
 0x302   :  { %v1042_v11 = vsel %vm1039_vm7, %v1041_v61, %v1037_v30  ;;  %vm1076_vm14 = vmor %vm1074_vm12, %vm1075_vm11  ;;  %v1067_v31 = vsel %vm1064_vm13, %v1066_v27, %v1062_v51 }
 0x303   :  { %v1085_v10 = vmul.f32 %v1042_v11, %v3001_v52  ;;  %v1071_v4 = vsub.f32 1.0, %v1070_v48  ;;  %v2397_v22 = vpop.eup %2396  ;;  %v1078_v52 = vand.u32 2147483647, %v1053_v15  ;;  %v1100_v15 = vld [vmem:[#allocation6 + $0x80] sm:$0xff] }
 0x304   :  { %v1092_v26 = vmul.f32 %v2397_v22, %v1067_v31 }
 0x305   :  { %v3069_v29 = vadd.f32 %v1087_v13, %v1085_v10  ;;  %v1072_v59 = vmul.f32 %v2395_v56, %v1071_v4  ;;  %vm1079_vm15 = vcmp.eq.f32.partialorder %v1078_v52, 8.507059e+37  ;;  %v1167_v13 = vunpack.c.h.bf16 %v1100_v15  ;;  %v1101_v10 = vld [vmem:[#allocation6 + $0x88] sm:$0xff]  ;;  %v1102_v4 = vld [vmem:[#allocation6 + $0x90] sm:$0xff] }
 0x306   :  { %v1094_v5 = vpack.c.bf16 %v1092_v26, %v1092_v26  ;;  %v1169_v51 = vunpack.c.h.bf16 %v1101_v10  ;;  %v1170_v22 = vunpack.c.l.bf16 %v1102_v4  ;;  %v1171_v27 = vunpack.c.h.bf16 %v1102_v4 }
 0x307   :  { %2398 = vtanh.f32 %v3069_v29  ;;  %v1073_v49 = vadd.f32 %v2395_v56, %v1072_v59 }
 0x308   :  { %v1106_v0 = vunpack.c.l.b16 %v1094_v5 }
 0x309   :  { %v1077_v35 = vsel %vm1076_vm14, %v2395_v56, %v1073_v49  ;;  %v1166_v56 = vunpack.c.l.bf16 %v1100_v15  ;;  %v1168_v15 = vunpack.c.l.bf16 %v1101_v10 }
 0x30a   :  { %v1082_v14 = vsel %vm1079_vm15, %v1081_v50, %v1077_v35 }
 0x30d   :  { %v2399_v43 = vpop.eup %2398 }
 0x30e   :  { %v1093_v60 = vmul.f32 %v2399_v43, %v1082_v14  ;;  %v1103_v43 = vld [vmem:[#allocation6 + $0x98] sm:$0xff] }
 0x30f   :  { %v1172_v10 = vunpack.c.l.bf16 %v1103_v43 }
 0x310   :  { %v1095_v63 = vpack.c.bf16 %v1093_v60, %v1093_v60  ;;  %v2236_v55 = vpack.c.bf16 %v1093_v60, %v1092_v26 }
 0x312   :  { %2237 = vst [vmem:[#allocation9 + $0x18] sm:$0xff] %v2236_v55   ;;  %v1107_v61 = vunpack.c.l.b16 %v1095_v63 }
 0x314   :  { %v1108_v30 = vpack.c.b16 %v1107_v61, %v1106_v0 }
 0x316   :  { %1118 = vmatmul.bf16.vlgmr.msra.gmra.mxu0 %v1108_v30  ;;  %1132 = vmatmul.bf16.vlgmr.msra.gmra.mxu1 %v1108_v30 }
 0x317   :  { %1146 = vmatmul.bf16.vlgmr.msra.gmra.mxu2 %v1108_v30  ;;  %1160 = vmatmul.bf16.vlgmr.msra.gmra.mxu3 %v1108_v30  ;;  %v1173_v30 = vunpack.c.h.bf16 %v1103_v43 }
 0x318   :  { %1538 = vmatpush.bf16.msra.mxu0 %v2667_v3  ;;  %1552 = vmatpush.bf16.msra.mxu1 %v2669_v7 }
 0x319   :  { %1566 = vmatpush.bf16.msra.mxu2 %v2682_v21  ;;  %1580 = vmatpush.bf16.msra.mxu3 %v2671_v8 }
 0x31c   :  { %1539 = vmatpush.bf16.msra.mxu0 %v2674_v12  ;;  %1553 = vmatpush.bf16.msra.mxu1 %v2678_v16 }
 0x31d   :  { %1567 = vmatpush.bf16.msra.mxu2 %v2694_v34  ;;  %1581 = vmatpush.bf16.msra.mxu3 %v2680_v17 }
 0x320   :  { %1540 = vmatpush.bf16.msra.mxu0 %v2686_v28  ;;  %1554 = vmatpush.bf16.msra.mxu1 %v2690_v32 }
 0x321   :  { %1568 = vmatpush.bf16.msra.mxu2 %v2700_v42  ;;  %1582 = vmatpush.bf16.msra.mxu3 %v2692_v33 }
 0x324   :  { %1541 = vmatpush.bf16.msra.mxu0 %v2698_v41  ;;  %1555 = vmatpush.bf16.msra.mxu1 %v2704_v45 }
 0x325   :  { %1569 = vmatpush.bf16.msra.mxu2 %v2712_v54  ;;  %1583 = vmatpush.bf16.msra.mxu3 %v2706_v46 }
 0x328   :  { %1542 = vmatpush.bf16.msra.mxu0 %v2710_v53  ;;  %1556 = vmatpush.bf16.msra.mxu1 %v2716_v57 }
 0x329   :  { %1570 = vmatpush.bf16.msra.mxu2 %v2724_v2  ;;  %1584 = vmatpush.bf16.msra.mxu3 %v2718_v58 }
 0x32c   :  { %1543 = vmatpush.bf16.msra.mxu0 %v2722_v1  ;;  %1557 = vmatpush.bf16.msra.mxu1 %v2728_v6 }
 0x32d   :  { %1571 = vmatpush.bf16.msra.mxu2 %v2736_v20  ;;  %1585 = vmatpush.bf16.msra.mxu3 %v2730_v9 }
 0x330   :  { %1544 = vmatpush.bf16.msra.mxu0 %v2734_v19  ;;  %1558 = vmatpush.bf16.msra.mxu1 %v2740_v24 }
 0x331   :  { %1572 = vmatpush.bf16.msra.mxu2 %v2748_v37  ;;  %1586 = vmatpush.bf16.msra.mxu3 %v2742_v25 }
 0x334   :  { %1545 = vmatpush.bf16.msra.mxu0 %v2746_v36  ;;  %1559 = vmatpush.bf16.msra.mxu1 %v2752_v38 }
 0x335   :  { %1573 = vmatpush.bf16.msra.mxu2 %v2760_v44  ;;  %1587 = vmatpush.bf16.msra.mxu3 %v2754_v39 }
 0x393   :  { %v1119_v48 = vpop.f32.mrf.mxu0  ;;  %v1133_v11 = vpop.f32.mrf.mxu1 }
 0x394   :  { %v1174_v40 = vadd.f32 %v1166_v56, %v1119_v48  ;;  %v1175_v47 = vadd.f32 %v1167_v13, %v1133_v11 }
 0x396   :  { %v2161_v18 = vmul.f32 -1.442695, %v1174_v40  ;;  %v2163_v59 = vmul.f32 -1.442695, %v1175_v47 }
 0x398   :  { %2400 = vpow2.f32 %v2161_v18 }
 0x399   :  { %2402 = vpow2.f32 %v2163_v59 }
 0x39a   :  { %v1161_v62 = vpop.f32.mrf.mxu3  ;;  %v1147_v61 = vpop.f32.mrf.mxu2 }
 0x39b   :  { %v1177_v49 = vadd.f32 %v1169_v51, %v1161_v62  ;;  %v1121_v52 = vpop.f32.mrf.mxu0  ;;  %v1135_v31 = vpop.f32.mrf.mxu1  ;;  %v1176_v40 = vadd.f32 %v1168_v15, %v1147_v61 }
 0x39c   :  { %v1178_v35 = vadd.f32 %v1170_v22, %v1121_v52  ;;  %v1179_v26 = vadd.f32 %v1171_v27, %v1135_v31 }
 0x39d   :  { %v2165_v50 = vmul.f32 -1.442695, %v1177_v49 }
 0x39e   :  { %v2401_v14 = vpop.eup %2400  ;;  %v2162_v60 = vmul.f32 -1.442695, %v1178_v35  ;;  %v2164_v55 = vmul.f32 -1.442695, %v1179_v26 }
 0x39f   :  { %v2403_v5 = vpop.eup %2402  ;;  %v1188_v63 = vadd.f32 1.0, %v2401_v14  ;;  %2404 = vpow2.f32 %v2165_v50 }
 0x3a0   :  { %v1226_v0 = vadd.f32 1.0, %v2403_v5  ;;  %2406 = vpow2.f32 %v2162_v60 }
 0x3a1   :  { %2408 = vrcp.f32 %v1188_v63  ;;  %v1199_v26 = vand.u32 2147483647, %v1188_v63  ;;  %v1201_v50 = vand.u32 2147483648, %v1188_v63  ;;  %vm1195_vm2 = vweird.f32 %v1188_v63 }
 0x3a2   :  { %2410 = vrcp.f32 %v1226_v0  ;;  %v1163_v56 = vpop.f32.mrf.mxu3  ;;  %v1149_v31 = vpop.f32.mrf.mxu2  ;;  %v1239_v14 = vand.u32 2147483648, %v1226_v0  ;;  %vm1233_vm3 = vweird.f32 %v1226_v0 }
 0x3a3   :  { %2412 = vpow2.f32 %v2164_v55  ;;  %v1181_v13 = vadd.f32 %v1173_v30, %v1163_v56  ;;  %v1237_v55 = vand.u32 2147483647, %v1226_v0  ;;  %v1180_v61 = vadd.f32 %v1172_v10, %v1149_v31 }
 0x3a4   :  { %vm1200_vm5 = vcmp.eq.f32.partialorder %v1199_v26, 8.507059e+37  ;;  %v1202_v56 = vor.u32 1.1754944e-38, %v1201_v50 }
 0x3a5   :  { %v2405_v48 = vpop.eup %2404  ;;  %v2166_v59 = vmul.f32 -1.442695, %v1181_v13  ;;  %vm1238_vm7 = vcmp.eq.f32.partialorder %v1237_v55, 8.507059e+37 }
 0x3a6   :  { %v2407_v11 = vpop.eup %2406  ;;  %v3105_v47 = vadd.f32 1.0, %v2405_v48 }
 0x3a7   :  { %v2409_v4 = vpop.eup %2408  ;;  %v3107_v18 = vadd.f32 1.0, %v2407_v11  ;;  %v1240_v11 = vor.u32 1.1754944e-38, %v1239_v14 }
 0x3a8   :  { %v2411_v51 = vpop.eup %2410  ;;  %v1191_v22 = vmul.f32 %v2409_v4, %v1188_v63  ;;  %2414 = vrcp.f32 %v3105_v47  ;;  %vm1196_vm0 = vweird.f32 %v2409_v4 }
 0x3a9   :  { %v2413_v27 = vpop.eup %2412  ;;  %v1229_v62 = vmul.f32 %v2411_v51, %v1226_v0  ;;  %2416 = vrcp.f32 %v3107_v18  ;;  %vm1234_vm1 = vweird.f32 %v2411_v51  ;;  %vm1197_vm4 = vmor %vm1195_vm2, %vm1196_vm0  ;;  %v1214_v31 = vand.u32 2147483647, %v3107_v18 }
 0x3aa   :  { %v1192_v49 = vsub.f32 1.0, %v1191_v22  ;;  %2418 = vtanh.f32 %v1176_v40  ;;  %v3111_v52 = vadd.f32 1.0, %v2413_v27  ;;  %vm1235_vm6 = vmor %vm1233_vm3, %vm1234_vm1  ;;  %v1216_v14 = vand.u32 2147483648, %v3107_v18 }
 0x3ab   :  { %v1230_v35 = vsub.f32 1.0, %v1229_v62  ;;  %2420 = vpow2.f32 %v2166_v59  ;;  %vm1210_vm9 = vweird.f32 %v3107_v18  ;;  %vm1215_vm12 = vcmp.eq.f32.partialorder %v1214_v31, 8.507059e+37 }
 0x3ac   :  { %v1193_v60 = vmul.f32 %v2409_v4, %v1192_v49  ;;  %2422 = vrcp.f32 %v3111_v52  ;;  %v1254_v55 = vand.u32 2147483648, %v3111_v52  ;;  %vm1248_vm13 = vweird.f32 %v3111_v52 }
 0x3ad   :  { %v1231_v5 = vmul.f32 %v2411_v51, %v1230_v35  ;;  %2424 = vtanh.f32 %v1180_v61  ;;  %vm1273_vm1 = vweird.f32 %v3105_v47 }
 0x3ae   :  { %v3114_v30 = vpop.eup %2414  ;;  %v1194_v43 = vadd.f32 %v2409_v4, %v1193_v60 }
 0x3af   :  { %v2417_v15 = vpop.eup %2416  ;;  %v1232_v13 = vadd.f32 %v2411_v51, %v1231_v5  ;;  %v1269_v59 = vmul.f32 %v3114_v30, %v3105_v47  ;;  %vm1274_vm0 = vweird.f32 %v3114_v30 }
 0x3b0   :  { %v2419_v48 = vpop.eup %2418  ;;  %v1198_v40 = vsel %vm1197_vm4, %v2409_v4, %v1194_v43  ;;  %v1206_v22 = vmul.f32 %v2417_v15, %v3107_v18  ;;  %vm1211_vm8 = vweird.f32 %v2417_v15  ;;  %v1252_v43 = vand.u32 2147483647, %v3111_v52  ;;  %vm1275_vm2 = vmor %vm1273_vm1, %vm1274_vm0 }
 0x3b1   :  { %v2421_v27 = vpop.eup %2420  ;;  %v1203_v62 = vsel %vm1200_vm5, %v1202_v56, %v1198_v40  ;;  %v1236_v10 = vsel %vm1235_vm6, %v2411_v51, %v1232_v13  ;;  %v1270_v60 = vsub.f32 1.0, %v1269_v59  ;;  %vm1212_vm11 = vmor %vm1210_vm9, %vm1211_vm8  ;;  %v1255_v18 = vor.u32 1.1754944e-38, %v1254_v55 }
 0x3b2   :  { %v2423_v63 = vpop.eup %2422  ;;  %v1241_v0 = vsel %vm1238_vm7, %v1240_v11, %v1236_v10  ;;  %v1207_v49 = vsub.f32 1.0, %v1206_v22  ;;  %v1267_v35 = vadd.f32 1.0, %v2421_v27  ;;  %v1300_v50 = vmul.f32 %v2419_v48, %v1203_v62 }
 0x3b3   :  { %v1298_v26 = vmul.f32 %v1241_v0, %v3058_v23  ;;  %v1244_v4 = vmul.f32 %v2423_v63, %v3111_v52  ;;  %v2425_v56 = vpop.eup %2424  ;;  %vm1249_vm10 = vweird.f32 %v2423_v63  ;;  %v1217_v48 = vor.u32 1.1754944e-38, %v1216_v14 }
 0x3b4   :  { %v1208_v5 = vmul.f32 %v2417_v15, %v1207_v49  ;;  %2426 = vrcp.f32 %v1267_v35  ;;  %v1271_v11 = vmul.f32 %v3114_v30, %v1270_v60  ;;  %vm1250_vm14 = vmor %vm1248_vm13, %vm1249_vm10  ;;  %vm1253_vm15 = vcmp.eq.f32.partialorder %v1252_v43, 8.507059e+37 }
 0x3b5   :  { %v1245_v51 = vsub.f32 1.0, %v1244_v4  ;;  %v3126_v13 = vadd.f32 %v1300_v50, %v1298_v26  ;;  %v1277_v50 = vand.u32 2147483647, %v3105_v47  ;;  %vm1288_vm4 = vweird.f32 %v1267_v35 }
 0x3b6   :  { %v1209_v61 = vadd.f32 %v2417_v15, %v1208_v5  ;;  %v1272_v26 = vadd.f32 %v3114_v30, %v1271_v11 }
 0x3b7   :  { %v1246_v23 = vmul.f32 %v2423_v63, %v1245_v51  ;;  %2428 = vtanh.f32 %v3126_v13  ;;  %v1294_v51 = vand.u32 2147483648, %v1267_v35  ;;  %vm1278_vm5 = vcmp.eq.f32.partialorder %v1277_v50, 8.507059e+37 }
 0x3b8   :  { %v1213_v40 = vsel %vm1212_vm11, %v2417_v15, %v1209_v61  ;;  %v1279_v15 = vand.u32 2147483648, %v3105_v47  ;;  %v1276_v14 = vsel %vm1275_vm2, %v3114_v30, %v1272_v26 }
 0x3b9   :  { %v1218_v59 = vsel %vm1215_vm12, %v1217_v48, %v1213_v40  ;;  %v1247_v22 = vadd.f32 %v2423_v63, %v1246_v23 }
 0x3ba   :  { %v2427_v27 = vpop.eup %2426  ;;  %v1301_v10 = vmul.f32 %v2425_v56, %v1218_v59  ;;  %v1280_v5 = vor.u32 1.1754944e-38, %v1279_v15  ;;  %v1295_v56 = vor.u32 1.1754944e-38, %v1294_v51 }
 0x3bb   :  { %v1251_v62 = vsel %vm1250_vm14, %v2423_v63, %v1247_v22  ;;  %v1284_v0 = vmul.f32 %v2427_v27, %v1267_v35  ;;  %vm1289_vm3 = vweird.f32 %v2427_v27 }
 0x3bc   :  { %v1256_v49 = vsel %vm1253_vm15, %v1255_v18, %v1251_v62  ;;  %vm1290_vm6 = vmor %vm1288_vm4, %vm1289_vm3  ;;  %v1281_v61 = vsel %vm1278_vm5, %v1280_v5, %v1276_v14 }
 0x3bd   :  { %v1299_v52 = vmul.f32 %v1256_v49, %v3069_v29  ;;  %v1285_v31 = vsub.f32 1.0, %v1284_v0  ;;  %v2429_v60 = vpop.eup %2428  ;;  %v1292_v29 = vand.u32 2147483647, %v1267_v35 }
 0x3be   :  { %v1306_v47 = vmul.f32 %v2429_v60, %v1281_v61 }
 0x3bf   :  { %v3137_v4 = vadd.f32 %v1301_v10, %v1299_v52  ;;  %v1286_v63 = vmul.f32 %v2427_v27, %v1285_v31  ;;  %vm1293_vm7 = vcmp.eq.f32.partialorder %v1292_v29, 8.507059e+37 }
 0x3c0   :  { %v1308_v40 = vpack.c.bf16 %v1306_v47, %v1306_v47 }
 0x3c1   :  { %2430 = vtanh.f32 %v3137_v4  ;;  %v1287_v55 = vadd.f32 %v2427_v27, %v1286_v63 }
 0x3c2   :  { %v1320_v22 = vunpack.c.l.b16 %v1308_v40 }
 0x3c3   :  { %v1291_v43 = vsel %vm1290_vm6, %v2427_v27, %v1287_v55 }
 0x3c4   :  { %v1296_v48 = vsel %vm1293_vm7, %v1295_v56, %v1291_v43 }
 0x3c7   :  { %v2431_v23 = vpop.eup %2430 }
 0x3c8   :  { %v1307_v11 = vmul.f32 %v2431_v23, %v1296_v48 }
 0x3ca   :  { %v1309_v30 = vpack.c.bf16 %v1307_v11, %v1307_v11  ;;  %v2241_v59 = vpack.c.bf16 %v1307_v11, %v1306_v47 }
 0x3cc   :  { %2242 = vst [vmem:[#allocation9 + $0x20] sm:$0xff] %v2241_v59   ;;  %v1321_v18 = vunpack.c.l.b16 %v1309_v30 }
 0x3ce   :  { %v1322_v62 = vpack.c.b16 %v1321_v18, %v1320_v22 }
 0x3d0   :  { %1332 = vmatmul.bf16.vlgmr.msrb.gmra.mxu0 %v1322_v62  ;;  %1346 = vmatmul.bf16.vlgmr.msrb.gmra.mxu1 %v1322_v62 }
 0x3d1   :  { %1360 = vmatmul.bf16.vlgmr.msrb.gmra.mxu2 %v1322_v62  ;;  %1374 = vmatmul.bf16.vlgmr.msrb.gmra.mxu3 %v1322_v62 }
 0x3d2   :  { %1752 = vmatpush.bf16.msrb.mxu0 %v2667_v3  ;;  %1766 = vmatpush.bf16.msrb.mxu1 %v2669_v7  ;;  %v1314_v3 = vld [vmem:[#allocation6 + $0xa0] sm:$0xff] }
 0x3d3   :  { %1780 = vmatpush.bf16.msrb.mxu2 %v2682_v21  ;;  %1794 = vmatpush.bf16.msrb.mxu3 %v2671_v8  ;;  %v1380_v7 = vunpack.c.l.bf16 %v1314_v3  ;;  %v1381_v8 = vunpack.c.h.bf16 %v1314_v3 }
 0x3d6   :  { %1753 = vmatpush.bf16.msrb.mxu0 %v2674_v12  ;;  %1767 = vmatpush.bf16.msrb.mxu1 %v2678_v16 }
 0x3d7   :  { %1781 = vmatpush.bf16.msrb.mxu2 %v2694_v34  ;;  %1795 = vmatpush.bf16.msrb.mxu3 %v2680_v17 }
 0x3da   :  { %1754 = vmatpush.bf16.msrb.mxu0 %v2686_v28  ;;  %1768 = vmatpush.bf16.msrb.mxu1 %v2690_v32  ;;  %v1315_v28 = vld [vmem:[#allocation6 + $0xa8] sm:$0xff]  ;;  %v1316_v32 = vld [vmem:[#allocation6 + $0xb0] sm:$0xff] }
 0x3db   :  { %1782 = vmatpush.bf16.msrb.mxu2 %v2700_v42  ;;  %1796 = vmatpush.bf16.msrb.mxu3 %v2692_v33  ;;  %v1384_v42 = vunpack.c.l.bf16 %v1316_v32 }
 0x3de   :  { %1755 = vmatpush.bf16.msrb.mxu0 %v2698_v41  ;;  %1769 = vmatpush.bf16.msrb.mxu1 %v2704_v45  ;;  %v1383_v41 = vunpack.c.h.bf16 %v1315_v28  ;;  %v1385_v45 = vunpack.c.h.bf16 %v1316_v32 }
 0x3df   :  { %1783 = vmatpush.bf16.msrb.mxu2 %v2712_v54  ;;  %1797 = vmatpush.bf16.msrb.mxu3 %v2706_v46 }
 0x3e2   :  { %1756 = vmatpush.bf16.msrb.mxu0 %v2710_v53  ;;  %1770 = vmatpush.bf16.msrb.mxu1 %v2716_v57 }
 0x3e3   :  { %1784 = vmatpush.bf16.msrb.mxu2 %v2724_v2  ;;  %1798 = vmatpush.bf16.msrb.mxu3 %v2718_v58 }
 0x3e6   :  { %1757 = vmatpush.bf16.msrb.mxu0 %v2722_v1  ;;  %1771 = vmatpush.bf16.msrb.mxu1 %v2728_v6  ;;  %v1317_v6 = vld [vmem:[#allocation6 + $0xb8] sm:$0xff] }
 0x3e7   :  { %1785 = vmatpush.bf16.msrb.mxu2 %v2736_v20  ;;  %1799 = vmatpush.bf16.msrb.mxu3 %v2730_v9  ;;  %v1386_v60 = vunpack.c.l.bf16 %v1317_v6 }
 0x3ea   :  { %1758 = vmatpush.bf16.msrb.mxu0 %v2734_v19  ;;  %1772 = vmatpush.bf16.msrb.mxu1 %v2740_v24 }
 0x3eb   :  { %1786 = vmatpush.bf16.msrb.mxu2 %v2748_v37  ;;  %1800 = vmatpush.bf16.msrb.mxu3 %v2742_v25 }
 0x3ee   :  { %1759 = vmatpush.bf16.msrb.mxu0 %v2746_v36  ;;  %1773 = vmatpush.bf16.msrb.mxu1 %v2752_v38  ;;  %v1387_v38 = vunpack.c.h.bf16 %v1317_v6 }
 0x3ef   :  { %1787 = vmatpush.bf16.msrb.mxu2 %v2760_v44  ;;  %1801 = vmatpush.bf16.msrb.mxu3 %v2754_v39  ;;  %v1382_v39 = vunpack.c.l.bf16 %v1315_v28 }
 0x44d   :  { %v1333_v12 = vpop.f32.mrf.mxu0  ;;  %v1347_v16 = vpop.f32.mrf.mxu1 }
 0x44e   :  { %v1388_v17 = vadd.f32 %v1380_v7, %v1333_v12  ;;  %v1389_v21 = vadd.f32 %v1381_v8, %v1347_v16 }
 0x450   :  { %v2167_v33 = vmul.f32 -1.442695, %v1388_v17  ;;  %v2169_v34 = vmul.f32 -1.442695, %v1389_v21 }
 0x452   :  { %2432 = vpow2.f32 %v2167_v33 }
 0x453   :  { %2434 = vpow2.f32 %v2169_v34 }
 0x454   :  { %v1375_v46 = vpop.f32.mrf.mxu3  ;;  %v1361_v37 = vpop.f32.mrf.mxu2 }
 0x455   :  { %v1391_v53 = vadd.f32 %v1383_v41, %v1375_v46  ;;  %v1335_v54 = vpop.f32.mrf.mxu0  ;;  %v1349_v57 = vpop.f32.mrf.mxu1  ;;  %v1390_v0 = vadd.f32 %v1382_v39, %v1361_v37 }
 0x456   :  { %v1392_v58 = vadd.f32 %v1384_v42, %v1335_v54  ;;  %v1393_v1 = vadd.f32 %v1385_v45, %v1349_v57 }
 0x457   :  { %v2171_v2 = vmul.f32 -1.442695, %v1391_v53 }
 0x458   :  { %v2433_v9 = vpop.eup %2432  ;;  %v2168_v19 = vmul.f32 -1.442695, %v1392_v58  ;;  %v2170_v25 = vmul.f32 -1.442695, %v1393_v1 }
 0x459   :  { %v2435_v20 = vpop.eup %2434  ;;  %v1402_v24 = vadd.f32 1.0, %v2433_v9  ;;  %2436 = vpow2.f32 %v2171_v2 }
 0x45a   :  { %v1440_v36 = vadd.f32 1.0, %v2435_v20  ;;  %2438 = vpow2.f32 %v2168_v19 }
 0x45b   :  { %2440 = vrcp.f32 %v1402_v24  ;;  %v1413_v61 = vand.u32 2147483647, %v1402_v24  ;;  %v1415_v43 = vand.u32 2147483648, %v1402_v24  ;;  %vm1409_vm10 = vweird.f32 %v1402_v24 }
 0x45c   :  { %2442 = vrcp.f32 %v1440_v36  ;;  %v1377_v44 = vpop.f32.mrf.mxu3  ;;  %v1363_v55 = vpop.f32.mrf.mxu2  ;;  %v1453_v47 = vand.u32 2147483648, %v1440_v36  ;;  %v1451_v48 = vand.u32 2147483647, %v1440_v36  ;;  %vm1447_vm11 = vweird.f32 %v1440_v36 }
 0x45d   :  { %2444 = vpow2.f32 %v2170_v25  ;;  %v1395_v35 = vadd.f32 %v1387_v38, %v1377_v44  ;;  %v1394_v11 = vadd.f32 %v1386_v60, %v1363_v55  ;;  %vm1414_vm13 = vcmp.eq.f32.partialorder %v1413_v61, 8.507059e+37 }
 0x45e   :  { %v1416_v22 = vor.u32 1.1754944e-38, %v1415_v43  ;;  %v1454_v3 = vor.u32 1.1754944e-38, %v1453_v47  ;;  %vm1452_vm15 = vcmp.eq.f32.partialorder %v1451_v48, 8.507059e+37 }
 0x45f   :  { %v2437_v27 = vpop.eup %2436  ;;  %v2172_v52 = vmul.f32 -1.442695, %v1395_v35 }
 0x460   :  { %v2439_v10 = vpop.eup %2438  ;;  %v3173_v49 = vadd.f32 1.0, %v2437_v27 }
 0x461   :  { %v2441_v26 = vpop.eup %2440  ;;  %v3175_v15 = vadd.f32 1.0, %v2439_v10 }
 0x462   :  { %v2443_v31 = vpop.eup %2442  ;;  %v1405_v50 = vmul.f32 %v2441_v26, %v1402_v24  ;;  %2446 = vrcp.f32 %v3173_v49  ;;  %vm1410_vm8 = vweird.f32 %v2441_v26 }
 0x463   :  { %v2445_v63 = vpop.eup %2444  ;;  %v1443_v14 = vmul.f32 %v2443_v31, %v1440_v36  ;;  %2448 = vrcp.f32 %v3175_v15  ;;  %vm1448_vm9 = vweird.f32 %v2443_v31  ;;  %vm1411_vm12 = vmor %vm1409_vm10, %vm1410_vm8  ;;  %v1428_v34 = vand.u32 2147483647, %v3175_v15 }
 0x464   :  { %v1406_v5 = vsub.f32 1.0, %v1405_v50  ;;  %2450 = vtanh.f32 %v1390_v0  ;;  %v3179_v51 = vadd.f32 1.0, %v2445_v63  ;;  %vm1449_vm14 = vmor %vm1447_vm11, %vm1448_vm9  ;;  %v1430_v53 = vand.u32 2147483648, %v3175_v15 }
 0x465   :  { %v1444_v29 = vsub.f32 1.0, %v1443_v14  ;;  %2452 = vpow2.f32 %v2172_v52  ;;  %vm1424_vm1 = vweird.f32 %v3175_v15  ;;  %vm1429_vm4 = vcmp.eq.f32.partialorder %v1428_v34, 8.507059e+37 }
 0x466   :  { %v1407_v56 = vmul.f32 %v2441_v26, %v1406_v5  ;;  %2454 = vrcp.f32 %v3179_v51  ;;  %v1468_v1 = vand.u32 2147483648, %v3179_v51  ;;  %v1466_v6 = vand.u32 2147483647, %v3179_v51 }
 0x467   :  { %v1445_v23 = vmul.f32 %v2443_v31, %v1444_v29  ;;  %2456 = vtanh.f32 %v1394_v11  ;;  %v1431_v20 = vor.u32 1.1754944e-38, %v1430_v53  ;;  %vm1462_vm5 = vweird.f32 %v3179_v51 }
 0x468   :  { %v3182_v40 = vpop.eup %2446  ;;  %v1408_v30 = vadd.f32 %v2441_v26, %v1407_v56  ;;  %v1469_v39 = vor.u32 1.1754944e-38, %v1468_v1  ;;  %vm1467_vm7 = vcmp.eq.f32.partialorder %v1466_v6, 8.507059e+37  ;;  %vm1487_vm9 = vweird.f32 %v3173_v49  ;;  %v1531_v1 = vld [vmem:[#allocation6 + $0xd8] sm:$0xff] }
 0x469   :  { %v2449_v59 = vpop.eup %2448  ;;  %v1446_v18 = vadd.f32 %v2443_v31, %v1445_v23  ;;  %v1483_v8 = vmul.f32 %v3182_v40, %v3173_v49  ;;  %vm1488_vm8 = vweird.f32 %v3182_v40 }
 0x46a   :  { %v2451_v62 = vpop.eup %2450  ;;  %v1412_v7 = vsel %vm1411_vm12, %v2441_v26, %v1408_v30  ;;  %v1420_v12 = vmul.f32 %v2449_v59, %v3175_v15  ;;  %vm1425_vm0 = vweird.f32 %v2449_v59  ;;  %v1493_v26 = vand.u32 2147483648, %v3173_v49  ;;  %vm1489_vm10 = vmor %vm1487_vm9, %vm1488_vm8 }
 0x46b   :  { %v2453_v16 = vpop.eup %2452  ;;  %v1417_v17 = vsel %vm1414_vm13, %v1416_v22, %v1412_v7  ;;  %v1450_v21 = vsel %vm1449_vm14, %v2443_v31, %v1446_v18  ;;  %v1484_v54 = vsub.f32 1.0, %v1483_v8  ;;  %vm1426_vm3 = vmor %vm1424_vm1, %vm1425_vm0  ;;  %v1491_v31 = vand.u32 2147483647, %v3173_v49  ;;  %v1528_v18 = vld [vmem:[#allocation6 + $0xc0] sm:$0xff] }
 0x46c   :  { %v2455_v28 = vpop.eup %2454  ;;  %v1455_v32 = vsel %vm1452_vm15, %v1454_v3, %v1450_v21  ;;  %v1421_v33 = vsub.f32 1.0, %v1420_v12  ;;  %v1481_v41 = vadd.f32 1.0, %v2453_v16  ;;  %v1514_v45 = vmul.f32 %v2451_v62, %v1417_v17  ;;  %v1529_v17 = vld [vmem:[#allocation6 + $0xc8] sm:$0xff]  ;;  %v1530_v21 = vld [vmem:[#allocation6 + $0xd0] sm:$0xff] }
 0x46d   :  { %v1512_v42 = vmul.f32 %v1455_v32, %v3126_v13  ;;  %v1458_v46 = vmul.f32 %v2455_v28, %v3179_v51  ;;  %v2457_v9 = vpop.eup %2456  ;;  %vm1463_vm2 = vweird.f32 %v2455_v28  ;;  %v1485_v24 = vmul.f32 %v3182_v40, %v1484_v54 }
 0x46e   :  { %v1422_v57 = vmul.f32 %v2449_v59, %v1421_v33  ;;  %2458 = vrcp.f32 %v1481_v41  ;;  %vm1464_vm6 = vmor %vm1462_vm5, %vm1463_vm2  ;;  %v1494_v5 = vor.u32 1.1754944e-38, %v1493_v26  ;;  %v1508_v51 = vand.u32 2147483648, %v1481_v41 }
 0x46f   :  { %v1459_v58 = vsub.f32 1.0, %v1458_v46  ;;  %v3194_v19 = vadd.f32 %v1514_v45, %v1512_v42  ;;  %v1486_v0 = vadd.f32 %v3182_v40, %v1485_v24  ;;  %vm1502_vm12 = vweird.f32 %v1481_v41 }
 0x470   :  { %v1423_v2 = vadd.f32 %v2449_v59, %v1422_v57  ;;  %vm1492_vm13 = vcmp.eq.f32.partialorder %v1491_v31, 8.507059e+37  ;;  %v1509_v43 = vor.u32 1.1754944e-38, %v1508_v51  ;;  %v1594_v62 = vunpack.c.l.bf16 %v1528_v18 }
 0x471   :  { %v1460_v13 = vmul.f32 %v2455_v28, %v1459_v58  ;;  %2460 = vtanh.f32 %v3194_v19  ;;  %v1490_v14 = vsel %vm1489_vm10, %v3182_v40, %v1486_v0  ;;  %v1595_v3 = vunpack.c.h.bf16 %v1528_v18 }
 0x472   :  { %v1427_v25 = vsel %vm1426_vm3, %v2449_v59, %v1423_v2  ;;  %v1495_v29 = vsel %vm1492_vm13, %v1494_v5, %v1490_v14  ;;  %v1597_v33 = vunpack.c.h.bf16 %v1529_v17  ;;  %v1598_v34 = vunpack.c.l.bf16 %v1530_v21 }
 0x473   :  { %v1432_v36 = vsel %vm1429_vm4, %v1431_v20, %v1427_v25  ;;  %v1461_v37 = vadd.f32 %v2455_v28, %v1460_v13 }
 0x474   :  { %v2459_v38 = vpop.eup %2458  ;;  %v1515_v35 = vmul.f32 %v2457_v9, %v1432_v36  ;;  %v1601_v36 = vunpack.c.h.bf16 %v1531_v1 }
 0x475   :  { %v1465_v44 = vsel %vm1464_vm6, %v2455_v28, %v1461_v37  ;;  %v1498_v27 = vmul.f32 %v2459_v38, %v1481_v41  ;;  %vm1503_vm11 = vweird.f32 %v2459_v38  ;;  %v1596_v37 = vunpack.c.l.bf16 %v1529_v17 }
 0x476   :  { %v1470_v10 = vsel %vm1467_vm7, %v1469_v39, %v1465_v44  ;;  %vm1504_vm14 = vmor %vm1502_vm12, %vm1503_vm11 }
 0x477   :  { %v1513_v15 = vmul.f32 %v1470_v10, %v3137_v4  ;;  %v1499_v52 = vsub.f32 1.0, %v1498_v27  ;;  %v2461_v60 = vpop.eup %2460  ;;  %v1506_v4 = vand.u32 2147483647, %v1481_v41  ;;  %v1599_v41 = vunpack.c.h.bf16 %v1530_v21 }
 0x478   :  { %v1520_v49 = vmul.f32 %v2461_v60, %v1495_v29  ;;  %v1600_v60 = vunpack.c.l.bf16 %v1531_v1 }
 0x479   :  { %v3205_v50 = vadd.f32 %v1515_v35, %v1513_v15  ;;  %v1500_v63 = vmul.f32 %v2459_v38, %v1499_v52  ;;  %vm1507_vm15 = vcmp.eq.f32.partialorder %v1506_v4, 8.507059e+37 }
 0x47a   :  { %v1522_v48 = vpack.c.bf16 %v1520_v49, %v1520_v49 }
 0x47b   :  { %2462 = vtanh.f32 %v3205_v50  ;;  %v1501_v55 = vadd.f32 %v2459_v38, %v1500_v63 }
 0x47c   :  { %v1534_v30 = vunpack.c.l.b16 %v1522_v48 }
 0x47d   :  { %v1505_v61 = vsel %vm1504_vm14, %v2459_v38, %v1501_v55 }
 0x47e   :  { %v1510_v56 = vsel %vm1507_vm15, %v1509_v43, %v1505_v61 }
 0x481   :  { %v2463_v47 = vpop.eup %2462 }
 0x482   :  { %v1521_v23 = vmul.f32 %v2463_v47, %v1510_v56 }
 0x484   :  { %v1523_v11 = vpack.c.bf16 %v1521_v23, %v1521_v23  ;;  %v2246_v40 = vpack.c.bf16 %v1521_v23, %v1520_v49 }
 0x486   :  { %2247 = vst [vmem:[#allocation9 + $0x28] sm:$0xff] %v2246_v40   ;;  %v1535_v59 = vunpack.c.l.b16 %v1523_v11 }
 0x488   :  { %v1536_v22 = vpack.c.b16 %v1535_v59, %v1534_v30 }
 0x48a   :  { %1546 = vmatmul.bf16.vlgmr.msra.gmra.mxu0 %v1536_v22  ;;  %1560 = vmatmul.bf16.vlgmr.msra.gmra.mxu1 %v1536_v22 }
 0x48b   :  { %1574 = vmatmul.bf16.vlgmr.msra.gmra.mxu2 %v1536_v22  ;;  %1588 = vmatmul.bf16.vlgmr.msra.gmra.mxu3 %v1536_v22 }
 0x507   :  { %v1547_v7 = vpop.f32.mrf.mxu0  ;;  %v1561_v8 = vpop.f32.mrf.mxu1 }
 0x508   :  { %v1602_v12 = vadd.f32 %v1594_v62, %v1547_v7  ;;  %v1603_v16 = vadd.f32 %v1595_v3, %v1561_v8 }
 0x50a   :  { %v2173_v28 = vmul.f32 -1.442695, %v1602_v12  ;;  %v2175_v32 = vmul.f32 -1.442695, %v1603_v16 }
 0x50c   :  { %2464 = vpow2.f32 %v2173_v28 }
 0x50d   :  { %2466 = vpow2.f32 %v2175_v32 }
 0x50e   :  { %v1589_v42 = vpop.f32.mrf.mxu3  ;;  %v1575_v25 = vpop.f32.mrf.mxu2 }
 0x50f   :  { %v1605_v45 = vadd.f32 %v1597_v33, %v1589_v42  ;;  %v1549_v46 = vpop.f32.mrf.mxu0  ;;  %v1563_v53 = vpop.f32.mrf.mxu1  ;;  %v1604_v27 = vadd.f32 %v1596_v37, %v1575_v25 }
 0x510   :  { %v1606_v54 = vadd.f32 %v1598_v34, %v1549_v46  ;;  %v1607_v57 = vadd.f32 %v1599_v41, %v1563_v53 }
 0x511   :  { %v2177_v58 = vmul.f32 -1.442695, %v1605_v45 }
 0x512   :  { %v2465_v2 = vpop.eup %2464  ;;  %v2174_v6 = vmul.f32 -1.442695, %v1606_v54  ;;  %v2176_v20 = vmul.f32 -1.442695, %v1607_v57 }
 0x513   :  { %v2467_v9 = vpop.eup %2466  ;;  %v1616_v13 = vadd.f32 1.0, %v2465_v2  ;;  %2468 = vpow2.f32 %v2177_v58 }
 0x514   :  { %v1654_v24 = vadd.f32 1.0, %v2467_v9  ;;  %2470 = vpow2.f32 %v2174_v6 }
 0x515   :  { %2472 = vrcp.f32 %v1616_v13  ;;  %v1627_v29 = vand.u32 2147483647, %v1616_v13  ;;  %v1629_v61 = vand.u32 2147483648, %v1616_v13  ;;  %vm1623_vm2 = vweird.f32 %v1616_v13 }
 0x516   :  { %2474 = vrcp.f32 %v1654_v24  ;;  %v1591_v38 = vpop.f32.mrf.mxu3  ;;  %v1577_v55 = vpop.f32.mrf.mxu2  ;;  %v1667_v49 = vand.u32 2147483648, %v1654_v24  ;;  %v1665_v56 = vand.u32 2147483647, %v1654_v24  ;;  %vm1661_vm3 = vweird.f32 %v1654_v24 }
 0x517   :  { %2476 = vpow2.f32 %v2176_v20  ;;  %v1609_v39 = vadd.f32 %v1601_v36, %v1591_v38  ;;  %v1608_v23 = vadd.f32 %v1600_v60, %v1577_v55  ;;  %vm1628_vm5 = vcmp.eq.f32.partialorder %v1627_v29, 8.507059e+37 }
 0x518   :  { %v1630_v30 = vor.u32 1.1754944e-38, %v1629_v61  ;;  %v1668_v18 = vor.u32 1.1754944e-38, %v1667_v49  ;;  %vm1666_vm7 = vcmp.eq.f32.partialorder %v1665_v56, 8.507059e+37 }
 0x519   :  { %v2469_v44 = vpop.eup %2468  ;;  %v2178_v15 = vmul.f32 -1.442695, %v1609_v39 }
 0x51a   :  { %v2471_v35 = vpop.eup %2470  ;;  %v3209_v10 = vadd.f32 1.0, %v2469_v44 }
 0x51b   :  { %v2473_v0 = vpop.eup %2472  ;;  %v3211_v26 = vadd.f32 1.0, %v2471_v35 }
 0x51c   :  { %v2475_v52 = vpop.eup %2474  ;;  %v1619_v31 = vmul.f32 %v2473_v0, %v1616_v13  ;;  %2478 = vrcp.f32 %v3209_v10  ;;  %vm1624_vm0 = vweird.f32 %v2473_v0 }
 0x51d   :  { %v2477_v63 = vpop.eup %2476  ;;  %v1657_v14 = vmul.f32 %v2475_v52, %v1654_v24  ;;  %2480 = vrcp.f32 %v3211_v26  ;;  %vm1662_vm1 = vweird.f32 %v2475_v52  ;;  %vm1625_vm4 = vmor %vm1623_vm2, %vm1624_vm0  ;;  %v1642_v32 = vand.u32 2147483647, %v3211_v26 }
 0x51e   :  { %v1620_v5 = vsub.f32 1.0, %v1619_v31  ;;  %2482 = vtanh.f32 %v1604_v27  ;;  %v3215_v51 = vadd.f32 1.0, %v2477_v63  ;;  %vm1663_vm6 = vmor %vm1661_vm3, %vm1662_vm1  ;;  %v1644_v45 = vand.u32 2147483648, %v3211_v26 }
 0x51f   :  { %v1658_v4 = vsub.f32 1.0, %v1657_v14  ;;  %2484 = vpow2.f32 %v2178_v15  ;;  %vm1638_vm9 = vweird.f32 %v3211_v26  ;;  %vm1643_vm12 = vcmp.eq.f32.partialorder %v1642_v32, 8.507059e+37 }
 0x520   :  { %v1621_v43 = vmul.f32 %v2473_v0, %v1620_v5  ;;  %2486 = vrcp.f32 %v3215_v51  ;;  %v1682_v57 = vand.u32 2147483648, %v3215_v51  ;;  %v1680_v1 = vand.u32 2147483647, %v3215_v51 }
 0x521   :  { %v1659_v47 = vmul.f32 %v2475_v52, %v1658_v4  ;;  %2488 = vtanh.f32 %v1608_v23  ;;  %v1645_v9 = vor.u32 1.1754944e-38, %v1644_v45  ;;  %vm1676_vm13 = vweird.f32 %v3215_v51 }
 0x522   :  { %v3218_v48 = vpop.eup %2478  ;;  %v1622_v11 = vadd.f32 %v2473_v0, %v1621_v43  ;;  %v1683_v37 = vor.u32 1.1754944e-38, %v1682_v57  ;;  %vm1681_vm15 = vcmp.eq.f32.partialorder %v1680_v1, 8.507059e+37  ;;  %vm1701_vm1 = vweird.f32 %v3209_v10 }
 0x523   :  { %v2481_v40 = vpop.eup %2480  ;;  %v1660_v59 = vadd.f32 %v2475_v52, %v1659_v47  ;;  %v1697_v3 = vmul.f32 %v3218_v48, %v3209_v10  ;;  %vm1702_vm0 = vweird.f32 %v3218_v48 }
 0x524   :  { %v2483_v22 = vpop.eup %2482  ;;  %v1626_v62 = vsel %vm1625_vm4, %v2473_v0, %v1622_v11  ;;  %v1634_v7 = vmul.f32 %v2481_v40, %v3211_v26  ;;  %vm1639_vm8 = vweird.f32 %v2481_v40  ;;  %v1707_v0 = vand.u32 2147483648, %v3209_v10  ;;  %vm1703_vm2 = vmor %vm1701_vm1, %vm1702_vm0 }
 0x525   :  { %v2485_v8 = vpop.eup %2484  ;;  %v1631_v12 = vsel %vm1628_vm5, %v1630_v30, %v1626_v62  ;;  %v1664_v16 = vsel %vm1663_vm6, %v2475_v52, %v1660_v59  ;;  %v1698_v46 = vsub.f32 1.0, %v1697_v3  ;;  %vm1640_vm11 = vmor %vm1638_vm9, %vm1639_vm8  ;;  %v1705_v52 = vand.u32 2147483647, %v3209_v10  ;;  %v1742_v59 = vld [vmem:[#allocation6 + $0xe0] sm:$0xff] }
 0x526   :  { %v2487_v17 = vpop.eup %2486  ;;  %v1669_v21 = vsel %vm1666_vm7, %v1668_v18, %v1664_v16  ;;  %v1635_v28 = vsub.f32 1.0, %v1634_v7  ;;  %v1695_v33 = vadd.f32 1.0, %v2485_v8  ;;  %v1728_v41 = vmul.f32 %v2483_v22, %v1631_v12  ;;  %v1743_v12 = vld [vmem:[#allocation6 + $0xe8] sm:$0xff]  ;;  %v1744_v16 = vld [vmem:[#allocation6 + $0xf0] sm:$0xff] }
 0x527   :  { %v1726_v34 = vmul.f32 %v1669_v21, %v3194_v19  ;;  %v1672_v42 = vmul.f32 %v2487_v17, %v3215_v51  ;;  %v2489_v2 = vpop.eup %2488  ;;  %vm1677_vm10 = vweird.f32 %v2487_v17  ;;  %v1699_v13 = vmul.f32 %v3218_v48, %v1698_v46 }
 0x528   :  { %v1636_v53 = vmul.f32 %v2481_v40, %v1635_v28  ;;  %2490 = vrcp.f32 %v1695_v33  ;;  %vm1678_vm14 = vmor %vm1676_vm13, %vm1677_vm10  ;;  %v1708_v5 = vor.u32 1.1754944e-38, %v1707_v0  ;;  %v1722_v51 = vand.u32 2147483648, %v1695_v33 }
 0x529   :  { %v1673_v54 = vsub.f32 1.0, %v1672_v42  ;;  %v3230_v6 = vadd.f32 %v1728_v41, %v1726_v34  ;;  %v1700_v27 = vadd.f32 %v3218_v48, %v1699_v13  ;;  %vm1716_vm4 = vweird.f32 %v1695_v33 }
 0x52a   :  { %v1637_v58 = vadd.f32 %v2481_v40, %v1636_v53  ;;  %vm1706_vm5 = vcmp.eq.f32.partialorder %v1705_v52, 8.507059e+37  ;;  %v1723_v61 = vor.u32 1.1754944e-38, %v1722_v51  ;;  %v1808_v22 = vunpack.c.l.bf16 %v1742_v59 }
 0x52b   :  { %v1674_v19 = vmul.f32 %v2487_v17, %v1673_v54  ;;  %2492 = vtanh.f32 %v3230_v6  ;;  %v1704_v14 = vsel %vm1703_vm2, %v3218_v48, %v1700_v27  ;;  %v1809_v18 = vunpack.c.h.bf16 %v1742_v59 }
 0x52c   :  { %v1641_v20 = vsel %vm1640_vm11, %v2481_v40, %v1637_v58  ;;  %v1709_v4 = vsel %vm1706_vm5, %v1708_v5, %v1704_v14  ;;  %v1811_v28 = vunpack.c.h.bf16 %v1743_v12  ;;  %v1812_v32 = vunpack.c.l.bf16 %v1744_v16 }
 0x52d   :  { %v1646_v24 = vsel %vm1643_vm12, %v1645_v9, %v1641_v20  ;;  %v1675_v25 = vadd.f32 %v2487_v17, %v1674_v19  ;;  %v1745_v9 = vld [vmem:[#allocation6 + $0xf8] sm:$0xff] }
 0x52e   :  { %v2491_v36 = vpop.eup %2490  ;;  %v1729_v39 = vmul.f32 %v2489_v2, %v1646_v24  ;;  %v1815_v24 = vunpack.c.h.bf16 %v1745_v9  ;;  %v1814_v51 = vunpack.c.l.bf16 %v1745_v9 }
 0x52f   :  { %v1679_v38 = vsel %vm1678_vm14, %v2487_v17, %v1675_v25  ;;  %v1712_v44 = vmul.f32 %v2491_v36, %v1695_v33  ;;  %vm1717_vm3 = vweird.f32 %v2491_v36 }
 0x530   :  { %v1684_v35 = vsel %vm1681_vm15, %v1683_v37, %v1679_v38  ;;  %vm1718_vm6 = vmor %vm1716_vm4, %vm1717_vm3 }
 0x531   :  { %v1727_v26 = vmul.f32 %v1684_v35, %v3205_v50  ;;  %v1713_v15 = vsub.f32 1.0, %v1712_v44  ;;  %v2493_v60 = vpop.eup %2492  ;;  %v1720_v50 = vand.u32 2147483647, %v1695_v33  ;;  %v1813_v33 = vunpack.c.h.bf16 %v1744_v16 }
 0x532   :  { %v1734_v10 = vmul.f32 %v2493_v60, %v1709_v4 }
 0x533   :  { %v3241_v31 = vadd.f32 %v1729_v39, %v1727_v26  ;;  %v1714_v63 = vmul.f32 %v2491_v36, %v1713_v15  ;;  %vm1721_vm7 = vcmp.eq.f32.partialorder %v1720_v50, 8.507059e+37  ;;  %v1810_v26 = vunpack.c.l.bf16 %v1743_v12 }
 0x534   :  { %v1736_v56 = vpack.c.bf16 %v1734_v10, %v1734_v10 }
 0x535   :  { %2494 = vtanh.f32 %v3241_v31  ;;  %v1715_v55 = vadd.f32 %v2491_v36, %v1714_v63 }
 0x536   :  { %v1748_v11 = vunpack.c.l.b16 %v1736_v56 }
 0x537   :  { %v1719_v29 = vsel %vm1718_vm6, %v2491_v36, %v1715_v55 }
 0x538   :  { %v1724_v43 = vsel %vm1721_vm7, %v1723_v61, %v1719_v29 }
 0x53b   :  { %v2495_v49 = vpop.eup %2494 }
 0x53c   :  { %v1735_v47 = vmul.f32 %v2495_v49, %v1724_v43 }
 0x53e   :  { %v1737_v23 = vpack.c.bf16 %v1735_v47, %v1735_v47  ;;  %v2251_v48 = vpack.c.bf16 %v1735_v47, %v1734_v10 }
 0x540   :  { %2252 = vst [vmem:[#allocation9 + $0x30] sm:$0xff] %v2251_v48   ;;  %v1749_v40 = vunpack.c.l.b16 %v1737_v23 }
 0x542   :  { %v1750_v30 = vpack.c.b16 %v1749_v40, %v1748_v11 }
 0x544   :  { %1760 = vmatmul.bf16.vlgmr.msrb.gmra.mxu0 %v1750_v30  ;;  %1774 = vmatmul.bf16.vlgmr.msrb.gmra.mxu1 %v1750_v30 }
 0x545   :  { %1788 = vmatmul.bf16.vlgmr.msrb.gmra.mxu2 %v1750_v30  ;;  %1802 = vmatmul.bf16.vlgmr.msrb.gmra.mxu3 %v1750_v30 }
 0x5c1   :  { %v1761_v62 = vpop.f32.mrf.mxu0  ;;  %v1775_v3 = vpop.f32.mrf.mxu1 }
 0x5c2   :  { %v1816_v7 = vadd.f32 %v1808_v22, %v1761_v62  ;;  %v1817_v8 = vadd.f32 %v1809_v18, %v1775_v3 }
 0x5c4   :  { %v2179_v17 = vmul.f32 -1.442695, %v1816_v7  ;;  %v2181_v21 = vmul.f32 -1.442695, %v1817_v8 }
 0x5c6   :  { %2496 = vpow2.f32 %v2179_v17 }
 0x5c7   :  { %2498 = vpow2.f32 %v2181_v21 }
 0x5c8   :  { %v1803_v34 = vpop.f32.mrf.mxu3  ;;  %v1789_v20 = vpop.f32.mrf.mxu2 }
 0x5c9   :  { %v1819_v41 = vadd.f32 %v1811_v28, %v1803_v34  ;;  %v1763_v42 = vpop.f32.mrf.mxu0  ;;  %v1777_v45 = vpop.f32.mrf.mxu1  ;;  %v1818_v55 = vadd.f32 %v1810_v26, %v1789_v20 }
 0x5ca   :  { %v1820_v46 = vadd.f32 %v1812_v32, %v1763_v42  ;;  %v1821_v53 = vadd.f32 %v1813_v33, %v1777_v45 }
 0x5cb   :  { %v2183_v54 = vmul.f32 -1.442695, %v1819_v41 }
 0x5cc   :  { %v2497_v57 = vpop.eup %2496  ;;  %v2180_v58 = vmul.f32 -1.442695, %v1820_v46  ;;  %v2182_v19 = vmul.f32 -1.442695, %v1821_v53 }
 0x5cd   :  { %v2499_v1 = vpop.eup %2498  ;;  %v1830_v2 = vadd.f32 1.0, %v2497_v57  ;;  %2500 = vpow2.f32 %v2183_v54 }
 0x5ce   :  { %v1868_v13 = vadd.f32 1.0, %v2499_v1  ;;  %2502 = vpow2.f32 %v2180_v58 }
 0x5cf   :  { %2504 = vrcp.f32 %v1830_v2  ;;  %v1841_v10 = vand.u32 2147483647, %v1830_v2  ;;  %v1843_v61 = vand.u32 2147483648, %v1830_v2  ;;  %vm1837_vm10 = vweird.f32 %v1830_v2 }
 0x5d0   :  { %2506 = vrcp.f32 %v1868_v13  ;;  %v1805_v25 = vpop.f32.mrf.mxu3  ;;  %v1791_v4 = vpop.f32.mrf.mxu2  ;;  %v1881_v49 = vand.u32 2147483648, %v1868_v13  ;;  %v1879_v56 = vand.u32 2147483647, %v1868_v13  ;;  %vm1875_vm11 = vweird.f32 %v1868_v13 }
 0x5d1   :  { %2508 = vpow2.f32 %v2182_v19  ;;  %v1823_v38 = vadd.f32 %v1815_v24, %v1805_v25  ;;  %v1822_v23 = vadd.f32 %v1814_v51, %v1791_v4  ;;  %vm1842_vm14 = vcmp.eq.f32.partialorder %v1841_v10, 8.507059e+37 }
 0x5d2   :  { %v1882_v62 = vor.u32 1.1754944e-38, %v1881_v49  ;;  %v1844_v3 = vor.u32 1.1754944e-38, %v1843_v61  ;;  %vm1880_vm15 = vcmp.eq.f32.partialorder %v1879_v56, 8.507059e+37 }
 0x5d3   :  { %v2501_v36 = vpop.eup %2500  ;;  %v2184_v60 = vmul.f32 -1.442695, %v1823_v38 }
 0x5d4   :  { %v2503_v37 = vpop.eup %2502  ;;  %v3245_v44 = vadd.f32 1.0, %v2501_v36 }
 0x5d5   :  { %v2505_v39 = vpop.eup %2504  ;;  %v3247_v35 = vadd.f32 1.0, %v2503_v37 }
 0x5d6   :  { %v2507_v27 = vpop.eup %2506  ;;  %v1833_v0 = vmul.f32 %v2505_v39, %v1830_v2  ;;  %vm1838_vm8 = vweird.f32 %v2505_v39 }
 0x5d7   :  { %v2509_v15 = vpop.eup %2508  ;;  %v1871_v52 = vmul.f32 %v2507_v27, %v1868_v13  ;;  %2510 = vrcp.f32 %v3247_v35  ;;  %vm1876_vm9 = vweird.f32 %v2507_v27  ;;  %vm3254_vm12 = vmor %vm1837_vm10, %vm1838_vm8  ;;  %v1856_v28 = vand.u32 2147483647, %v3247_v35 }
 0x5d8   :  { %v1834_v63 = vsub.f32 1.0, %v1833_v0  ;;  %v3250_v14 = vadd.f32 1.0, %v2509_v15  ;;  %2512 = vrcp.f32 %v3245_v44  ;;  %vm3260_vm13 = vmor %vm1875_vm11, %vm1876_vm9  ;;  %v1858_v32 = vand.u32 2147483648, %v3247_v35 }
 0x5d9   :  { %v1872_v5 = vsub.f32 1.0, %v1871_v52  ;;  %vm1852_vm2 = vweird.f32 %v3247_v35  ;;  %vm1857_vm5 = vcmp.eq.f32.partialorder %v1856_v28, 8.507059e+37  ;;  %vm1915_vm9 = vweird.f32 %v3245_v44 }
 0x5da   :  { %v1835_v50 = vmul.f32 %v2505_v39, %v1834_v63  ;;  %2514 = vrcp.f32 %v3250_v14  ;;  %vm1890_vm1 = vweird.f32 %v3250_v14  ;;  %v1896_v42 = vand.u32 2147483648, %v3250_v14 }
 0x5db   :  { %v1873_v29 = vmul.f32 %v2507_v27, %v1872_v5  ;;  %2516 = vpow2.f32 %v2184_v60  ;;  %v1894_v57 = vand.u32 2147483647, %v3250_v14  ;;  %v1859_v2 = vor.u32 1.1754944e-38, %v1858_v32 }
 0x5dc   :  { %v1836_v43 = vadd.f32 %v2505_v39, %v1835_v50  ;;  %2518 = vtanh.f32 %v1818_v55  ;;  %v1897_v24 = vor.u32 1.1754944e-38, %v1896_v42  ;;  %v1919_v60 = vand.u32 2147483647, %v3245_v44 }
 0x5dd   :  { %v1874_v47 = vadd.f32 %v2507_v27, %v1873_v29  ;;  %v2511_v48 = vpop.eup %2510  ;;  %2520 = vtanh.f32 %v1822_v23  ;;  %vm1895_vm7 = vcmp.eq.f32.partialorder %v1894_v57, 8.507059e+37 }
 0x5de   :  { %v3258_v40 = vpop.eup %2512  ;;  %v1840_v59 = vsel %vm3254_vm12, %v2505_v39, %v1836_v43  ;;  %v1848_v22 = vmul.f32 %v2511_v48, %v3247_v35  ;;  %vm1853_vm0 = vweird.f32 %v2511_v48 }
 0x5df   :  { %v1878_v7 = vsel %vm3260_vm13, %v2507_v27, %v1874_v47  ;;  %v1845_v17 = vsel %vm1842_vm14, %v1844_v3, %v1840_v59  ;;  %v1911_v21 = vmul.f32 %v3258_v40, %v3245_v44  ;;  %vm1854_vm4 = vmor %vm1852_vm2, %vm1853_vm0  ;;  %vm1916_vm8 = vweird.f32 %v3258_v40 }
 0x5e0   :  { %v2515_v18 = vpop.eup %2514  ;;  %v1849_v8 = vsub.f32 1.0, %v1848_v22  ;;  %v1883_v33 = vsel %vm1880_vm15, %v1882_v62, %v1878_v7  ;;  %vm3299_vm11 = vmor %vm1915_vm9, %vm1916_vm8  ;;  %vm1920_vm14 = vcmp.eq.f32.partialorder %v1919_v60, 8.507059e+37 }
 0x5e1   :  { %v1886_v12 = vmul.f32 %v2515_v18, %v3250_v14  ;;  %v2517_v16 = vpop.eup %2516  ;;  %vm1891_vm3 = vweird.f32 %v2515_v18  ;;  %v1940_v58 = vmul.f32 %v1883_v33, %v3230_v6  ;;  %v1912_v9 = vsub.f32 1.0, %v1911_v21 }
 0x5e2   :  { %v1850_v41 = vmul.f32 %v2511_v48, %v1849_v8  ;;  %v3277_v45 = vadd.f32 1.0, %v2517_v16  ;;  %v2519_v46 = vpop.eup %2518  ;;  %vm1892_vm6 = vmor %vm1890_vm1, %vm1891_vm3 }
 0x5e3   :  { %v1887_v34 = vsub.f32 1.0, %v1886_v12  ;;  %v1942_v1 = vmul.f32 %v2519_v46, %v1845_v17  ;;  %v2521_v19 = vpop.eup %2520  ;;  %v1913_v39 = vmul.f32 %v3258_v40, %v1912_v9 }
 0x5e4   :  { %v1851_v54 = vadd.f32 %v2511_v48, %v1850_v41  ;;  %2522 = vrcp.f32 %v3277_v45  ;;  %v1936_v14 = vand.u32 2147483648, %v3277_v45  ;;  %v1934_v51 = vand.u32 2147483647, %v3277_v45 }
 0x5e5   :  { %v1888_v53 = vmul.f32 %v2515_v18, %v1887_v34  ;;  %v1944_v38 = vadd.f32 %v1942_v1, %v1940_v58  ;;  %v1914_v15 = vadd.f32 %v3258_v40, %v1913_v39  ;;  %vm1930_vm12 = vweird.f32 %v3277_v45 }
 0x5e6   :  { %v1855_v13 = vsel %vm1854_vm4, %v2511_v48, %v1851_v54  ;;  %v1937_v10 = vor.u32 1.1754944e-38, %v1936_v14  ;;  %vm1935_vm15 = vcmp.eq.f32.partialorder %v1934_v51, 8.507059e+37 }
 0x5e7   :  { %v1889_v20 = vadd.f32 %v2515_v18, %v1888_v53  ;;  %v1860_v25 = vsel %vm1857_vm5, %v1859_v2, %v1855_v13  ;;  %2524 = vtanh.f32 %v1944_v38  ;;  %v1918_v50 = vsel %vm3299_vm11, %v3258_v40, %v1914_v15 }
 0x5e8   :  { %v1943_v37 = vmul.f32 %v2521_v19, %v1860_v25 }
 0x5e9   :  { %v1893_v36 = vsel %vm1892_vm6, %v2515_v18, %v1889_v20 }
 0x5ea   :  { %v1898_v6 = vsel %vm1895_vm7, %v1897_v24, %v1893_v36  ;;  %v2523_v27 = vpop.eup %2522 }
 0x5eb   :  { %v1941_v35 = vmul.f32 %v1898_v6, %v3241_v31  ;;  %v1926_v26 = vmul.f32 %v2523_v27, %v3277_v45  ;;  %v1921_v31 = vand.u32 2147483648, %v3245_v44  ;;  %vm1931_vm10 = vweird.f32 %v2523_v27 }
 0x5ec   :  { %vm1932_vm13 = vmor %vm1930_vm12, %vm1931_vm10 }
 0x5ed   :  { %v1945_v0 = vadd.f32 %v1943_v37, %v1941_v35  ;;  %v1927_v52 = vsub.f32 1.0, %v1926_v26  ;;  %v2525_v44 = vpop.eup %2524  ;;  %v1922_v29 = vor.u32 1.1754944e-38, %v1921_v31 }
 0x5ef   :  { %2526 = vtanh.f32 %v1945_v0  ;;  %v2261_v63 = vpack.c.bf16 %v1945_v0, %v1944_v38  ;;  %v1928_v5 = vmul.f32 %v2523_v27, %v1927_v52  ;;  %v1923_v43 = vsel %vm1920_vm14, %v1922_v29, %v1918_v50 }
 0x5f0   :  { %v1948_v56 = vmul.f32 %v2525_v44, %v1923_v43 }
 0x5f1   :  { %2262 = vst [vmem:[#allocation10] sm:$0xff] %v2261_v63   ;;  %v1929_v4 = vadd.f32 %v2523_v27, %v1928_v5 }
 0x5f2   :  { %1991 = dma.vmem_to_hbm [thread:$0]  %s1984_s1, 128, %s1986_s26, [#allocation11], %s2638_s3, %s2638_s3, %s2639_s27  }
 0x5f3   :  { %v1933_v49 = vsel %vm1932_vm13, %v2523_v27, %v1929_v4 }
 0x5f4   :  { %v1938_v47 = vsel %vm1935_vm15, %v1937_v10, %v1933_v49 }
 0x5f5   :  { %v2527_v61 = vpop.eup %2526 }
 0x5f6   :  { %v1949_v23 = vmul.f32 %v2527_v61, %v1938_v47 }
 0x5f8   :  { %v2256_v48 = vpack.c.bf16 %v1949_v23, %v1948_v56 }
 0x5fa   :  { %2257 = vst [vmem:[#allocation9 + $0x38] sm:$0xff] %v2256_v48  }
 0x5fb   :  { %1978 = dma.vmem_to_hbm [thread:$0]  %s1971_s29, 1024, %s1973_s5, [#allocation8], %s2638_s3, %s2638_s3, %s2639_s27  }
 0x5fc   :  { %2628 = dma.done.wait [#allocation8], 1024  }
 0x5fd   :  { %2629 = vsyncadd [#allocation8], 4294966272 }
 0x5fe   :  { %2630 = dma.done.wait [#allocation11], 128  }
 0x5ff   :  { %2631 = vsyncadd [#allocation11], 4294967168 }
 0x600   :  { %2000 = vsyncpa [#allocation7], 1 }
 0x601   :  { %2001 = vsyncpa [#allocation8], 1 }
 0x602   :  { %2002 = vsyncpa [#allocation11], 1 }
 0x603   :  { %2003 = vsyncmov [#allocation3] }
 0x606   :  { %s2004_s6 = vpop.sfrf %2003 }
 0x607   :  { %p2185_p0 = scmp.ne.s32.totalorder %s2004_s6, 0 }
 0x609   :  { %2008 = shalt.err (%p2185_p0)  }

</bundles_post_ra>
